<compile_context>
chip_gen: v6e
topology: v6e:2x2x1
jax: 0.10.0
libtpu: 0.0.40
codegen_flags: <defaults>
</compile_context>

<pallas_src>
import functools

import jax
import jax.numpy as jnp
import numpy as np
from jax.experimental import pallas as pl
from jax.experimental.pallas import tpu as pltpu


# -----------------------------------------------------------------------------
# Kernel 1: sub-pixel conv (nearest-x2 folded into 2x2 taps, taps packed into
#           K=4*Cin) + merged per-channel BatchNorm partial statistics.
#
# Grid (N, T, 2) = (batch n, row tile t, row-subpixel a).
#   x_ref    : (1, 1, TH+2, W+2, Cin)  halo'd padded ORIGINAL rows, bf16
#              (index_map ignores `a` -> block revisited, 1 DMA per (n, t))
#   w_ref    : (4, 4*Cin, Cout)        folded taps, indexed [a*2+b], bf16
#              (constant index_map -> DMA'd once)
#   y_ref    : (1, 1, 1, 2, TH*W, Cout) conv output for (a, b=0/1), bf16
#   stat_ref : (1, 1, 1, 2, Cout)      per-channel [sum, sum_sq], f32
# -----------------------------------------------------------------------------
def _conv_subpixel_kernel(x_ref, w_ref, y_ref, stat_ref):
    a = pl.program_id(2)                     # row sub-pixel (0 or 1)
    TH = x_ref.shape[2] - 2
    W = x_ref.shape[3] - 2
    Cin = x_ref.shape[4]
    Cout = y_ref.shape[5]

    # The two original-image row taps dr = 0, 1 for this row sub-pixel.
    rows0 = x_ref[0, 0, pl.ds(a, TH)]        # (TH, W+2, Cin) bf16
    rows1 = x_ref[0, 0, pl.ds(a + 1, TH)]    # (TH, W+2, Cin) bf16

    s_sum = jnp.zeros((1, Cout), jnp.float32)
    s_sq = jnp.zeros((1, Cout), jnp.float32)

    for b in range(2):                       # column sub-pixel (unrolled)
        # Pack all 4 taps along the contraction axis -> one MXU matmul.
        patch = jnp.concatenate(
            [rows0[:, b:b + W, :], rows0[:, b + 1:b + 1 + W, :],
             rows1[:, b:b + W, :], rows1[:, b + 1:b + 1 + W, :]],
            axis=-1).reshape(TH * W, 4 * Cin)                      # bf16
        acc = jnp.dot(patch, w_ref[a * 2 + b],
                      preferred_element_type=jnp.float32)          # (TH*W, Cout)
        y_ref[0, 0, 0, b] = acc.astype(y_ref.dtype)
        s_sum = s_sum + jnp.sum(acc, axis=0, keepdims=True)
        s_sq = s_sq + jnp.sum(acc * acc, axis=0, keepdims=True)

    stat_ref[0, 0, 0] = jnp.concatenate([s_sum, s_sq], axis=0)     # (2, Cout)


# -----------------------------------------------------------------------------
# Kernel 2: fused BatchNorm (folded to per-channel scale/shift) + GLU.
#   y_ref     : (1, 1, 1, 2, TP, Cout)   bf16 conv output block
#   scale_ref : (1, Cout)                gamma * rsqrt(var + eps)
#   shift_ref : (1, Cout)                beta - mean * scale
#   o_ref     : channels_last  -> (1, 1, 1, 2, TP, Chalf)  bf16
#               otherwise      -> (1, 1, 1, 2, Chalf, TP)  bf16 (lane-dense
#               store with spatial on lanes when Chalf < 128)
# -----------------------------------------------------------------------------
def _bn_glu_kernel(y_ref, scale_ref, shift_ref, o_ref, *, channels_last):
    Chalf = o_ref.shape[5] if channels_last else o_ref.shape[4]
    scale = scale_ref[...]
    shift = shift_ref[...]
    for b in range(2):
        yn = y_ref[0, 0, 0, b].astype(jnp.float32) * scale + shift   # (TP, Cout)
        lin = yn[:, :Chalf]
        gate = yn[:, Chalf:]
        # sigmoid = 1 / (1 + exp(-gate)); exp and approx reciprocal on the EUP.
        sig = pl.reciprocal(1.0 + jnp.exp(-gate), approx=True)
        glu = lin * sig                                              # (TP, Chalf)
        if channels_last:
            o_ref[0, 0, 0, b] = glu.astype(o_ref.dtype)
        else:
            o_ref[0, 0, 0, b] = jnp.transpose(glu).astype(o_ref.dtype)


def _choose_row_tile(h, w, cin, cout, budget_bytes=24 << 20):
    """Largest divisor TH of h whose VMEM working set fits a v7x-safe budget."""
    best = 1
    for th in range(1, h + 1):
        if h % th:
            continue
        x_blk = 2 * (th + 2) * (w + 2) * cin * 2      # bf16 input, double-buffered
        y_blk = 2 * 2 * th * w * cout * 2             # conv out block, x2 buffers
        patch = 2 * th * w * 4 * cin * 2              # packed matmul operands
        acc = th * w * cout * 4                       # f32 matmul result
        glu = 2 * 2 * th * w * (cout // 2) * 2        # BN+GLU out block, x2 buffers
        if x_blk + y_blk + patch + acc + glu <= budget_bytes:
            best = th
    return best


# -----------------------------------------------------------------------------
# Wrapper: matches UpSample.forward semantics (PyTorch NCHW in / NCHW out).
# -----------------------------------------------------------------------------
def upsample_forward(x_nchw, w_oihw, gamma, beta, eps=1e-5):
    N, Cin, H, W = x_nchw.shape
    Cout = w_oihw.shape[0]
    Chalf = Cout // 2

    TH = _choose_row_tile(H, W, Cin, Cout)
    T = H // TH
    TP = TH * W

    # --- input: NCHW -> NHWC, zero-pad by 1, bf16, halo'd row tiles ----------
    # TODO(synk): fold this transpose/pad/halo pass into the conv kernel via a
    # manual halo DMA (pl.ANY + make_async_copy); secondary since the input is
    # small relative to the conv-output HBM traffic.
    x = jnp.transpose(x_nchw, (0, 2, 3, 1))
    x_pad = jnp.pad(x, ((0, 0), (1, 1), (1, 1), (0, 0))).astype(jnp.bfloat16)
    x_tiles = jnp.stack(
        [x_pad[:, t * TH:t * TH + TH + 2] for t in range(T)], axis=1)

    # --- fold nearest-x2 into 4 effective 2x2 kernels, packed along K --------
    # Output row 2i+a sees original rows {i-1+dr} via row-collapse R[a]; columns
    # analogously with R[b].  K order = (dr, dc, ci) to match the patch concat.
    R = jnp.array([[[1., 0., 0.], [0., 1., 1.]],
                   [[1., 1., 0.], [0., 0., 1.]]], jnp.float32)     # [a, dr, kh]
    w_eff = jnp.einsum('adk,bcl,oikl->abdcio', R, R,
                       w_oihw.astype(jnp.float32))                 # (2,2,2,2,Ci,Co)
    w_eff = w_eff.reshape(4, 4 * Cin, Cout).astype(jnp.bfloat16)   # [a*2+b, K, Co]

    conv_cost = pl.CostEstimate(
        flops=int(2 * N * 4 * H * W * 4 * Cin * Cout),
        transcendentals=0,
        bytes_accessed=int(x_tiles.size * 2 + w_eff.size * 2
                           + N * 4 * H * W * Cout * 2 + N * T * 4 * Cout * 4))

    y, stats = pl.pallas_call(
        _conv_subpixel_kernel,
        grid=(N, T, 2),
        in_specs=[
            pl.BlockSpec((1, 1, TH + 2, W + 2, Cin),
                         lambda n, t, a: (n, t, 0, 0, 0)),
            pl.BlockSpec((4, 4 * Cin, Cout), lambda n, t, a: (0, 0, 0)),
        ],
        out_specs=(
            pl.BlockSpec((1, 1, 1, 2, TP, Cout),
                         lambda n, t, a: (n, t, a, 0, 0, 0)),
            pl.BlockSpec((1, 1, 1, 2, Cout), lambda n, t, a: (n, t, a, 0, 0)),
        ),
        out_shape=(
            jax.ShapeDtypeStruct((N, T, 2, 2, TP, Cout), jnp.bfloat16),
            jax.ShapeDtypeStruct((N, T, 2, 2, Cout), jnp.float32),
        ),
        compiler_params=pltpu.CompilerParams(
            dimension_semantics=("parallel", "parallel", "arbitrary"),
            vmem_limit_bytes=48 * 1024 * 1024),
        cost_estimate=conv_cost,
    )(x_tiles, w_eff)

    # --- BatchNorm2d batch statistics (biased) from in-kernel partial sums ---
    cnt = float(N * 4 * H * W)
    mean = jnp.sum(stats[:, :, :, 0, :], axis=(0, 1, 2)) / cnt       # (Cout,)
    ex2 = jnp.sum(stats[:, :, :, 1, :], axis=(0, 1, 2)) / cnt
    var = jnp.maximum(ex2 - mean * mean, 0.0)                        # biased
    scale = gamma.astype(jnp.float32) * jax.lax.rsqrt(var + eps)
    shift = beta.astype(jnp.float32) - mean * scale
    # TODO(synk): PyTorch train-mode BatchNorm2d also updates running_mean /
    # running_var module buffers; this forward-only port does not.

    # --- fused BN + GLU -------------------------------------------------------
    channels_last = (Chalf % 128 == 0)   # small Chalf -> spatial-on-lanes store
    if channels_last:
        glu_shape = (N, T, 2, 2, TP, Chalf)
        glu_block = (1, 1, 1, 2, TP, Chalf)
    else:
        glu_shape = (N, T, 2, 2, Chalf, TP)
        glu_block = (1, 1, 1, 2, Chalf, TP)

    glu_cost = pl.CostEstimate(
        flops=int(N * 4 * H * W * (2 * Cout + 2 * Chalf)),
        transcendentals=int(N * 4 * H * W * Chalf),
        bytes_accessed=int(N * 4 * H * W * Cout * 2 + N * 4 * H * W * Chalf * 2))

    g = pl.pallas_call(
        functools.partial(_bn_glu_kernel, channels_last=channels_last),
        grid=(N, T, 2),
        in_specs=[
            pl.BlockSpec((1, 1, 1, 2, TP, Cout),
                         lambda n, t, a: (n, t, a, 0, 0, 0)),
            pl.BlockSpec((1, Cout), lambda n, t, a: (0, 0)),
            pl.BlockSpec((1, Cout), lambda n, t, a: (0, 0)),
        ],
        out_specs=pl.BlockSpec(glu_block, lambda n, t, a: (n, t, a, 0, 0, 0)),
        out_shape=jax.ShapeDtypeStruct(glu_shape, jnp.bfloat16),
        compiler_params=pltpu.CompilerParams(
            dimension_semantics=("parallel", "parallel", "parallel"),
            vmem_limit_bytes=48 * 1024 * 1024),
        cost_estimate=glu_cost,
    )(y, scale.reshape(1, Cout), shift.reshape(1, Cout))

    # --- pixel-shuffle back to NCHW: single transpose fused with f32 cast ----
    # out[n, c, 2*(t*TH+i)+a, 2*j+b] = g[n, t, a, b, ..., i*W+j, ...]
    if channels_last:
        g = g.reshape(N, T, 2, 2, TH, W, Chalf)            # (n,t,a,b,i,j,c)
        o = jnp.transpose(g, (0, 6, 1, 4, 2, 5, 3))        # (n,c,t,i,a,j,b)
    else:
        g = g.reshape(N, T, 2, 2, Chalf, TH, W)            # (n,t,a,b,c,i,j)
        o = jnp.transpose(g, (0, 4, 1, 5, 2, 6, 3))        # (n,c,t,i,a,j,b)
    return o.reshape(N, Chalf, 2 * H, 2 * W).astype(jnp.float32)


# -----------------------------------------------------------------------------
# Pure-JAX reference (mirrors the PyTorch forward exactly) for validation.
# -----------------------------------------------------------------------------
def reference_forward(x_nchw, w_oihw, gamma, beta, eps=1e-5):
    x = jnp.repeat(jnp.repeat(x_nchw, 2, axis=2), 2, axis=3)
    y = jax.lax.conv_general_dilated(
        x.astype(jnp.float32), w_oihw.astype(jnp.float32),
        window_strides=(1, 1), padding=((1, 1), (1, 1)),
        dimension_numbers=("NCHW", "OIHW", "NCHW"),
        preferred_element_type=jnp.float32)
    mean = jnp.mean(y, axis=(0, 2, 3), keepdims=True)
    var = jnp.mean((y - mean) ** 2, axis=(0, 2, 3), keepdims=True)
    yn = (y - mean) * jax.lax.rsqrt(var + eps)
    yn = yn * gamma.reshape(1, -1, 1, 1) + beta.reshape(1, -1, 1, 1)
    a, b = jnp.split(yn, 2, axis=1)
    return a * jax.nn.sigmoid(b)


if __name__ == "__main__":
    key = jax.random.PRNGKey(0)
    k1, k2, k3, k4 = jax.random.split(key, 4)

    N, Cin, H, W = 2, 4, 16, 16
    Cout = 8  # -> GLU output has Cout // 2 = 4 channels

    x = jax.random.normal(k1, (N, Cin, H, W), jnp.float32)
    conv_w = jax.random.normal(k2, (Cout, Cin, 3, 3), jnp.float32) * 0.1
    bn_gamma = 1.0 + 0.1 * jax.random.normal(k3, (Cout,), jnp.float32)
    bn_beta = 0.1 * jax.random.normal(k4, (Cout,), jnp.float32)

    fwd = jax.jit(upsample_forward)
    out = jax.block_until_ready(fwd(x, conv_w, bn_gamma, bn_beta))
    assert out.shape == (N, Cout // 2, 2 * H, 2 * W), out.shape

    ref = jax.block_until_ready(reference_forward(x, conv_w, bn_gamma, bn_beta))
    # bf16 MXU operands + bf16 intermediates -> slightly looser tolerance.
    np.testing.assert_allclose(np.asarray(out, np.float32), np.asarray(ref),
                               atol=3e-2, rtol=3e-2)

    print("KERNEL_OK")
</pallas_src>

<mosaic_0001>
module attributes {stable_mosaic.version = 11 : i64} {
  func.func @_conv_subpixel_kernel(%arg0: i32, %arg1: i32, %arg2: i32, %arg3: memref<1x1x18x18x4xbf16, #tpu.memory_space<vmem>>, %arg4: memref<4x16x8xbf16, #tpu.memory_space<vmem>>, %arg5: memref<1x1x1x2x256x8xbf16, #tpu.memory_space<vmem>>, %arg6: memref<1x1x1x2x8xf32, #tpu.memory_space<vmem>>) attributes {dimension_semantics = [#tpu.dimension_semantics<parallel>, #tpu.dimension_semantics<parallel>, #tpu.dimension_semantics<arbitrary>], iteration_bounds = array<i64: 2, 1, 2>, scalar_prefetch = 0 : i64, scratch_operands = 0 : i64, tpu.core_type = #tpu.core_type<tc>, window_params = [{transform_indices = @transform_0, window_bounds = array<i64: 1, 1, 18, 18, 4>}, {pipeline_mode = #tpu.pipeline_mode<synchronous>, transform_indices = @transform_1, window_bounds = array<i64: 4, 16, 8>}, {transform_indices = @transform_2, window_bounds = array<i64: 1, 1, 1, 2, 256, 8>}, {transform_indices = @transform_3, window_bounds = array<i64: 1, 1, 1, 2, 8>}]} {
    %c0 = arith.constant 0 : index
    %c0_0 = arith.constant 0 : index
    %0 = arith.index_cast %arg2 : i32 to index
    %c0_1 = arith.constant 0 : index
    %c0_2 = arith.constant 0 : index
    %1 = vector.load %arg3[%c0, %c0_0, %0, %c0_1, %c0_2] : memref<1x1x18x18x4xbf16, #tpu.memory_space<vmem>>, vector<1x1x16x18x4xbf16>
    %2 = vector.shape_cast %1 : vector<1x1x16x18x4xbf16> to vector<16x18x4xbf16>
    %c1_i32 = arith.constant 1 : i32
    %3 = arith.addi %arg2, %c1_i32 : i32
    %c0_3 = arith.constant 0 : index
    %c0_4 = arith.constant 0 : index
    %4 = arith.index_cast %3 : i32 to index
    %c0_5 = arith.constant 0 : index
    %c0_6 = arith.constant 0 : index
    %5 = vector.load %arg3[%c0_3, %c0_4, %4, %c0_5, %c0_6] : memref<1x1x18x18x4xbf16, #tpu.memory_space<vmem>>, vector<1x1x16x18x4xbf16>
    %6 = vector.shape_cast %5 : vector<1x1x16x18x4xbf16> to vector<16x18x4xbf16>
    %cst = arith.constant 0.000000e+00 : f32
    %7 = vector.broadcast %cst : f32 to vector<1x8xf32>
    %cst_7 = arith.constant 0.000000e+00 : f32
    %8 = vector.broadcast %cst_7 : f32 to vector<1x8xf32>
    %9 = vector.extract_strided_slice %2 {offsets = [0, 0, 0], sizes = [16, 16, 4], strides = [1, 1, 1]} : vector<16x18x4xbf16> to vector<16x16x4xbf16>
    %10 = vector.extract_strided_slice %2 {offsets = [0, 1, 0], sizes = [16, 16, 4], strides = [1, 1, 1]} : vector<16x18x4xbf16> to vector<16x16x4xbf16>
    %11 = vector.extract_strided_slice %6 {offsets = [0, 0, 0], sizes = [16, 16, 4], strides = [1, 1, 1]} : vector<16x18x4xbf16> to vector<16x16x4xbf16>
    %12 = vector.extract_strided_slice %6 {offsets = [0, 1, 0], sizes = [16, 16, 4], strides = [1, 1, 1]} : vector<16x18x4xbf16> to vector<16x16x4xbf16>
    %13 = tpu.concatenate %9, %10, %11, %12 in 2 : vector<16x16x4xbf16>, vector<16x16x4xbf16>, vector<16x16x4xbf16>, vector<16x16x4xbf16> -> vector<16x16x16xbf16>
    %14 = vector.shape_cast %13 : vector<16x16x16xbf16> to vector<256x16xbf16>
    %c2_i32 = arith.constant 2 : i32
    %15 = arith.muli %arg2, %c2_i32 : i32
    %c0_i32 = arith.constant 0 : i32
    %16 = arith.addi %15, %c0_i32 : i32
    %17 = arith.index_cast %16 : i32 to index
    %c0_8 = arith.constant 0 : index
    %c0_9 = arith.constant 0 : index
    %18 = vector.load %arg4[%17, %c0_8, %c0_9] : memref<4x16x8xbf16, #tpu.memory_space<vmem>>, vector<1x16x8xbf16>
    %19 = vector.shape_cast %18 : vector<1x16x8xbf16> to vector<16x8xbf16>
    %cst_10 = arith.constant dense<0.000000e+00> : vector<256x8xf32>
    %20 = tpu.matmul %14, %19, %cst_10 {dimension_numbers = #tpu.dot_dimension_numbers<[1], [0], [0], [1], [0, 0, 1, 1], [], []>} : vector<256x16xbf16>, vector<16x8xbf16>, vector<256x8xf32> -> vector<256x8xf32>
    %21 = arith.truncf %20 : vector<256x8xf32> to vector<256x8xbf16>
    %c0_11 = arith.constant 0 : index
    %c0_12 = arith.constant 0 : index
    %c0_13 = arith.constant 0 : index
    %c0_14 = arith.constant 0 : index
    %c0_15 = arith.constant 0 : index
    %c0_16 = arith.constant 0 : index
    %22 = vector.load %arg5[%c0_11, %c0_12, %c0_13, %c0_14, %c0_15, %c0_16] : memref<1x1x1x2x256x8xbf16, #tpu.memory_space<vmem>>, vector<1x1x1x1x256x8xbf16>
    %23 = vector.shape_cast %22 : vector<1x1x1x1x256x8xbf16> to vector<256x8xbf16>
    %24 = vector.shape_cast %21 : vector<256x8xbf16> to vector<1x1x1x1x256x8xbf16>
    tpu.vector_store %arg5[%c0_11, %c0_12, %c0_13, %c0_14, %c0_15, %c0_16], %24 {strides = array<i32>} : memref<1x1x1x2x256x8xbf16, #tpu.memory_space<vmem>>, vector<1x1x1x1x256x8xbf16>,
    %cst_17 = arith.constant dense<0.000000e+00> : vector<8xf32>
    %25 = vector.multi_reduction <add>, %20, %cst_17 [0] : vector<256x8xf32> to vector<8xf32>
    %26 = vector.shape_cast %25 : vector<8xf32> to vector<1x8xf32>
    %27 = arith.addf %7, %26 : vector<1x8xf32>
    %28 = arith.mulf %20, %20 : vector<256x8xf32>
    %cst_18 = arith.constant dense<0.000000e+00> : vector<8xf32>
    %29 = vector.multi_reduction <add>, %28, %cst_18 [0] : vector<256x8xf32> to vector<8xf32>
    %30 = vector.shape_cast %29 : vector<8xf32> to vector<1x8xf32>
    %31 = arith.addf %8, %30 : vector<1x8xf32>
    %32 = vector.extract_strided_slice %2 {offsets = [0, 1, 0], sizes = [16, 16, 4], strides = [1, 1, 1]} : vector<16x18x4xbf16> to vector<16x16x4xbf16>
    %33 = vector.extract_strided_slice %2 {offsets = [0, 2, 0], sizes = [16, 16, 4], strides = [1, 1, 1]} : vector<16x18x4xbf16> to vector<16x16x4xbf16>
    %34 = vector.extract_strided_slice %6 {offsets = [0, 1, 0], sizes = [16, 16, 4], strides = [1, 1, 1]} : vector<16x18x4xbf16> to vector<16x16x4xbf16>
    %35 = vector.extract_strided_slice %6 {offsets = [0, 2, 0], sizes = [16, 16, 4], strides = [1, 1, 1]} : vector<16x18x4xbf16> to vector<16x16x4xbf16>
    %36 = tpu.concatenate %32, %33, %34, %35 in 2 : vector<16x16x4xbf16>, vector<16x16x4xbf16>, vector<16x16x4xbf16>, vector<16x16x4xbf16> -> vector<16x16x16xbf16>
    %37 = vector.shape_cast %36 : vector<16x16x16xbf16> to vector<256x16xbf16>
    %c2_i32_19 = arith.constant 2 : i32
    %38 = arith.muli %arg2, %c2_i32_19 : i32
    %c1_i32_20 = arith.constant 1 : i32
    %39 = arith.addi %38, %c1_i32_20 : i32
    %40 = arith.index_cast %39 : i32 to index
    %c0_21 = arith.constant 0 : index
    %c0_22 = arith.constant 0 : index
    %41 = vector.load %arg4[%40, %c0_21, %c0_22] : memref<4x16x8xbf16, #tpu.memory_space<vmem>>, vector<1x16x8xbf16>
    %42 = vector.shape_cast %41 : vector<1x16x8xbf16> to vector<16x8xbf16>
    %cst_23 = arith.constant dense<0.000000e+00> : vector<256x8xf32>
    %43 = tpu.matmul %37, %42, %cst_23 {dimension_numbers = #tpu.dot_dimension_numbers<[1], [0], [0], [1], [0, 0, 1, 1], [], []>} : vector<256x16xbf16>, vector<16x8xbf16>, vector<256x8xf32> -> vector<256x8xf32>
    %44 = arith.truncf %43 : vector<256x8xf32> to vector<256x8xbf16>
    %c0_24 = arith.constant 0 : index
    %c0_25 = arith.constant 0 : index
    %c0_26 = arith.constant 0 : index
    %c1 = arith.constant 1 : index
    %c0_27 = arith.constant 0 : index
    %c0_28 = arith.constant 0 : index
    %45 = vector.load %arg5[%c0_24, %c0_25, %c0_26, %c1, %c0_27, %c0_28] : memref<1x1x1x2x256x8xbf16, #tpu.memory_space<vmem>>, vector<1x1x1x1x256x8xbf16>
    %46 = vector.shape_cast %45 : vector<1x1x1x1x256x8xbf16> to vector<256x8xbf16>
    %47 = vector.shape_cast %44 : vector<256x8xbf16> to vector<1x1x1x1x256x8xbf16>
    tpu.vector_store %arg5[%c0_24, %c0_25, %c0_26, %c1, %c0_27, %c0_28], %47 {strides = array<i32>} : memref<1x1x1x2x256x8xbf16, #tpu.memory_space<vmem>>, vector<1x1x1x1x256x8xbf16>,
    %cst_29 = arith.constant dense<0.000000e+00> : vector<8xf32>
    %48 = vector.multi_reduction <add>, %43, %cst_29 [0] : vector<256x8xf32> to vector<8xf32>
    %49 = vector.shape_cast %48 : vector<8xf32> to vector<1x8xf32>
    %50 = arith.addf %27, %49 : vector<1x8xf32>
    %51 = arith.mulf %43, %43 : vector<256x8xf32>
    %cst_30 = arith.constant dense<0.000000e+00> : vector<8xf32>
    %52 = vector.multi_reduction <add>, %51, %cst_30 [0] : vector<256x8xf32> to vector<8xf32>
    %53 = vector.shape_cast %52 : vector<8xf32> to vector<1x8xf32>
    %54 = arith.addf %31, %53 : vector<1x8xf32>
    %55 = tpu.concatenate %50, %54 in 0 : vector<1x8xf32>, vector<1x8xf32> -> vector<2x8xf32>
    %c0_31 = arith.constant 0 : index
    %c0_32 = arith.constant 0 : index
    %c0_33 = arith.constant 0 : index
    %c0_34 = arith.constant 0 : index
    %c0_35 = arith.constant 0 : index
    %56 = vector.load %arg6[%c0_31, %c0_32, %c0_33, %c0_34, %c0_35] : memref<1x1x1x2x8xf32, #tpu.memory_space<vmem>>, vector<1x1x1x2x8xf32>
    %57 = vector.shape_cast %56 : vector<1x1x1x2x8xf32> to vector<2x8xf32>
    %58 = vector.shape_cast %55 : vector<2x8xf32> to vector<1x1x1x2x8xf32>
    tpu.vector_store %arg6[%c0_31, %c0_32, %c0_33, %c0_34, %c0_35], %58 {strides = array<i32>} : memref<1x1x1x2x8xf32, #tpu.memory_space<vmem>>, vector<1x1x1x2x8xf32>,
    return
  }
  func.func @transform_0(%arg0: i32, %arg1: i32, %arg2: i32) -> (i32, i32, i32, i32, i32) {
    %c0_i32 = arith.constant 0 : i32
    %c0_i32_0 = arith.constant 0 : i32
    %c0_i32_1 = arith.constant 0 : i32
    %c0_i32_2 = arith.constant 0 : i32
    return %arg0, %arg1, %c0_i32, %c0_i32_0, %c0_i32_1 : i32, i32, i32, i32, i32
  }
  func.func @transform_1(%arg0: i32, %arg1: i32, %arg2: i32) -> (i32, i32, i32) {
    %c0_i32 = arith.constant 0 : i32
    %c0_i32_0 = arith.constant 0 : i32
    %c0_i32_1 = arith.constant 0 : i32
    %c0_i32_2 = arith.constant 0 : i32
    return %c0_i32, %c0_i32_0, %c0_i32_1 : i32, i32, i32
  }
  func.func @transform_2(%arg0: i32, %arg1: i32, %arg2: i32) -> (i32, i32, i32, i32, i32, i32) {
    %c0_i32 = arith.constant 0 : i32
    %c0_i32_0 = arith.constant 0 : i32
    %c0_i32_1 = arith.constant 0 : i32
    %c0_i32_2 = arith.constant 0 : i32
    return %arg0, %arg1, %arg2, %c0_i32, %c0_i32_0, %c0_i32_1 : i32, i32, i32, i32, i32, i32
  }
  func.func @transform_3(%arg0: i32, %arg1: i32, %arg2: i32) -> (i32, i32, i32, i32, i32) {
    %c0_i32 = arith.constant 0 : i32
    %c0_i32_0 = arith.constant 0 : i32
    %c0_i32_1 = arith.constant 0 : i32
    return %arg0, %arg1, %arg2, %c0_i32, %c0_i32_0 : i32, i32, i32, i32, i32
  }
}

module attributes {stable_mosaic.version = 11 : i64} {
  func.func @_bn_glu_kernel(%arg0: i32, %arg1: i32, %arg2: i32, %arg3: memref<1x1x1x2x256x8xbf16, #tpu.memory_space<vmem>>, %arg4: memref<1x8xf32, #tpu.memory_space<vmem>>, %arg5: memref<1x8xf32, #tpu.memory_space<vmem>>, %arg6: memref<1x1x1x2x4x256xbf16, #tpu.memory_space<vmem>>) attributes {dimension_semantics = [#tpu.dimension_semantics<parallel>, #tpu.dimension_semantics<parallel>, #tpu.dimension_semantics<parallel>], iteration_bounds = array<i64: 2, 1, 2>, scalar_prefetch = 0 : i64, scratch_operands = 0 : i64, tpu.core_type = #tpu.core_type<tc>, window_params = [{transform_indices = @transform_0, window_bounds = array<i64: 1, 1, 1, 2, 256, 8>}, {pipeline_mode = #tpu.pipeline_mode<synchronous>, transform_indices = @transform_1, window_bounds = array<i64: 1, 8>}, {pipeline_mode = #tpu.pipeline_mode<synchronous>, transform_indices = @transform_2, window_bounds = array<i64: 1, 8>}, {transform_indices = @transform_3, window_bounds = array<i64: 1, 1, 1, 2, 4, 256>}]} {
    %c0 = arith.constant 0 : index
    %c0_0 = arith.constant 0 : index
    %0 = vector.load %arg4[%c0, %c0_0] : memref<1x8xf32, #tpu.memory_space<vmem>>, vector<1x8xf32>
    %c0_1 = arith.constant 0 : index
    %c0_2 = arith.constant 0 : index
    %1 = vector.load %arg5[%c0_1, %c0_2] : memref<1x8xf32, #tpu.memory_space<vmem>>, vector<1x8xf32>
    %c0_3 = arith.constant 0 : index
    %c0_4 = arith.constant 0 : index
    %c0_5 = arith.constant 0 : index
    %c0_6 = arith.constant 0 : index
    %c0_7 = arith.constant 0 : index
    %c0_8 = arith.constant 0 : index
    %2 = vector.load %arg3[%c0_3, %c0_4, %c0_5, %c0_6, %c0_7, %c0_8] : memref<1x1x1x2x256x8xbf16, #tpu.memory_space<vmem>>, vector<1x1x1x1x256x8xbf16>
    %3 = vector.shape_cast %2 : vector<1x1x1x1x256x8xbf16> to vector<256x8xbf16>
    %4 = arith.extf %3 : vector<256x8xbf16> to vector<256x8xf32>
    %5 = vector.broadcast %0 : vector<1x8xf32> to vector<256x8xf32>
    %6 = arith.mulf %4, %5 : vector<256x8xf32>
    %7 = vector.broadcast %1 : vector<1x8xf32> to vector<256x8xf32>
    %8 = arith.addf %6, %7 : vector<256x8xf32>
    %9 = vector.extract_strided_slice %8 {offsets = [0, 0], sizes = [256, 4], strides = [1, 1]} : vector<256x8xf32> to vector<256x4xf32>
    %10 = vector.extract_strided_slice %8 {offsets = [0, 4], sizes = [256, 4], strides = [1, 1]} : vector<256x8xf32> to vector<256x4xf32>
    %cst = arith.constant 0.000000e+00 : f32
    %11 = vector.broadcast %cst : f32 to vector<256x4xf32>
    %12 = arith.subf %11, %10 : vector<256x4xf32>
    %13 = math.exp %12 : vector<256x4xf32>
    %cst_9 = arith.constant 1.000000e+00 : f32
    %14 = vector.broadcast %cst_9 : f32 to vector<256x4xf32>
    %15 = arith.addf %14, %13 : vector<256x4xf32>
    %16 = tpu.reciprocal %15 {approx = true} : vector<256x4xf32> -> vector<256x4xf32>
    %17 = arith.mulf %9, %16 : vector<256x4xf32>
    %18 = tpu.transpose %17, [1, 0] : vector<256x4xf32> -> vector<4x256xf32>
    %19 = arith.truncf %18 : vector<4x256xf32> to vector<4x256xbf16>
    %c0_10 = arith.constant 0 : index
    %c0_11 = arith.constant 0 : index
    %c0_12 = arith.constant 0 : index
    %c0_13 = arith.constant 0 : index
    %c0_14 = arith.constant 0 : index
    %c0_15 = arith.constant 0 : index
    %20 = vector.load %arg6[%c0_10, %c0_11, %c0_12, %c0_13, %c0_14, %c0_15] : memref<1x1x1x2x4x256xbf16, #tpu.memory_space<vmem>>, vector<1x1x1x1x4x256xbf16>
    %21 = vector.shape_cast %20 : vector<1x1x1x1x4x256xbf16> to vector<4x256xbf16>
    %22 = vector.shape_cast %19 : vector<4x256xbf16> to vector<1x1x1x1x4x256xbf16>
    tpu.vector_store %arg6[%c0_10, %c0_11, %c0_12, %c0_13, %c0_14, %c0_15], %22 {strides = array<i32>} : memref<1x1x1x2x4x256xbf16, #tpu.memory_space<vmem>>, vector<1x1x1x1x4x256xbf16>,
    %c0_16 = arith.constant 0 : index
    %c0_17 = arith.constant 0 : index
    %c0_18 = arith.constant 0 : index
    %c1 = arith.constant 1 : index
    %c0_19 = arith.constant 0 : index
    %c0_20 = arith.constant 0 : index
    %23 = vector.load %arg3[%c0_16, %c0_17, %c0_18, %c1, %c0_19, %c0_20] : memref<1x1x1x2x256x8xbf16, #tpu.memory_space<vmem>>, vector<1x1x1x1x256x8xbf16>
    %24 = vector.shape_cast %23 : vector<1x1x1x1x256x8xbf16> to vector<256x8xbf16>
    %25 = arith.extf %24 : vector<256x8xbf16> to vector<256x8xf32>
    %26 = vector.broadcast %0 : vector<1x8xf32> to vector<256x8xf32>
    %27 = arith.mulf %25, %26 : vector<256x8xf32>
    %28 = vector.broadcast %1 : vector<1x8xf32> to vector<256x8xf32>
    %29 = arith.addf %27, %28 : vector<256x8xf32>
    %30 = vector.extract_strided_slice %29 {offsets = [0, 0], sizes = [256, 4], strides = [1, 1]} : vector<256x8xf32> to vector<256x4xf32>
    %31 = vector.extract_strided_slice %29 {offsets = [0, 4], sizes = [256, 4], strides = [1, 1]} : vector<256x8xf32> to vector<256x4xf32>
    %cst_21 = arith.constant 0.000000e+00 : f32
    %32 = vector.broadcast %cst_21 : f32 to vector<256x4xf32>
    %33 = arith.subf %32, %31 : vector<256x4xf32>
    %34 = math.exp %33 : vector<256x4xf32>
    %cst_22 = arith.constant 1.000000e+00 : f32
    %35 = vector.broadcast %cst_22 : f32 to vector<256x4xf32>
    %36 = arith.addf %35, %34 : vector<256x4xf32>
    %37 = tpu.reciprocal %36 {approx = true} : vector<256x4xf32> -> vector<256x4xf32>
    %38 = arith.mulf %30, %37 : vector<256x4xf32>
    %39 = tpu.transpose %38, [1, 0] : vector<256x4xf32> -> vector<4x256xf32>
    %40 = arith.truncf %39 : vector<4x256xf32> to vector<4x256xbf16>
    %c0_23 = arith.constant 0 : index
    %c0_24 = arith.constant 0 : index
    %c0_25 = arith.constant 0 : index
    %c1_26 = arith.constant 1 : index
    %c0_27 = arith.constant 0 : index
    %c0_28 = arith.constant 0 : index
    %41 = vector.load %arg6[%c0_23, %c0_24, %c0_25, %c1_26, %c0_27, %c0_28] : memref<1x1x1x2x4x256xbf16, #tpu.memory_space<vmem>>, vector<1x1x1x1x4x256xbf16>
    %42 = vector.shape_cast %41 : vector<1x1x1x1x4x256xbf16> to vector<4x256xbf16>
    %43 = vector.shape_cast %40 : vector<4x256xbf16> to vector<1x1x1x1x4x256xbf16>
    tpu.vector_store %arg6[%c0_23, %c0_24, %c0_25, %c1_26, %c0_27, %c0_28], %43 {strides = array<i32>} : memref<1x1x1x2x4x256xbf16, #tpu.memory_space<vmem>>, vector<1x1x1x1x4x256xbf16>,
    return
  }
  func.func @transform_0(%arg0: i32, %arg1: i32, %arg2: i32) -> (i32, i32, i32, i32, i32, i32) {
    %c0_i32 = arith.constant 0 : i32
    %c0_i32_0 = arith.constant 0 : i32
    %c0_i32_1 = arith.constant 0 : i32
    %c0_i32_2 = arith.constant 0 : i32
    return %arg0, %arg1, %arg2, %c0_i32, %c0_i32_0, %c0_i32_1 : i32, i32, i32, i32, i32, i32
  }
  func.func @transform_1(%arg0: i32, %arg1: i32, %arg2: i32) -> (i32, i32) {
    %c0_i32 = arith.constant 0 : i32
    %c0_i32_0 = arith.constant 0 : i32
    %c0_i32_1 = arith.constant 0 : i32
    return %c0_i32, %c0_i32_0 : i32, i32
  }
  func.func @transform_2(%arg0: i32, %arg1: i32, %arg2: i32) -> (i32, i32) {
    %c0_i32 = arith.constant 0 : i32
    %c0_i32_0 = arith.constant 0 : i32
    %c0_i32_1 = arith.constant 0 : i32
    return %c0_i32, %c0_i32_0 : i32, i32
  }
  func.func @transform_3(%arg0: i32, %arg1: i32, %arg2: i32) -> (i32, i32, i32, i32, i32, i32) {
    %c0_i32 = arith.constant 0 : i32
    %c0_i32_0 = arith.constant 0 : i32
    %c0_i32_1 = arith.constant 0 : i32
    %c0_i32_2 = arith.constant 0 : i32
    return %arg0, %arg1, %arg2, %c0_i32, %c0_i32_0, %c0_i32_1 : i32, i32, i32, i32, i32, i32
  }
}

</mosaic_0001>

<bundles_post_ra>
// kernel: upsample_forward.3
= control target key start
LH: loop header
LB: loop body
LE: loop exit
PB: predicated region body
PF: predicated region fallthrough
CT: control target
= control target key end

     0   :  { %s2071_s12 = smov 0   ;;  %s2073_s13 = smov 0   ;;  %s2712_s0 = inlined_call_operand.vmem [shape: bf16[2,1,2,2,256,8], index: 0, kind: input, shape index: {}]   ;;  %s2713_s1 = inlined_call_operand.vmem [shape: f32[1,8], index: 1, kind: input, shape index: {}]   ;;  %s2714_s2 = inlined_call_operand.vmem [shape: f32[1,8], index: 2, kind: input, shape index: {}]   ;;  %s2715_s3 = inlined_call_operand.vmem [shape: bf16[2,1,2,2,4,256], index: 3, kind: output, shape index: {}]  }
   0x1   :  { %s2075_s14 = smov 0   ;;  %s2077_s15 = smov 0  }
   0x2   :  { %s2079_s16 = smov 0  }
   0x3 LB: > { %s25_s17 = sadd.s32 1, %s2040_s14  ;;  %s32_s18 = sadd.s32 1, %s2044_s15  ;;  %s2048_s16 = sphi %s2079_s16, %s13_s16   ;;  %s2044_s15 = sphi %s2077_s15, %s2815_s15   ;;  %s2040_s14 = sphi %s2075_s14, %s2814_s14   ;;  %s2036_s13 = sphi %s2073_s13, %s2813_s13   ;;  %s2032_s12 = sphi %s2071_s12, %s2812_s12  }
   0x4   : > { %p26_p0 = scmp.ge.s32.totalorder %s25_s17, 2  ;;  %p1430_p1 = scmp.ge.s32.totalorder %s2048_s16, 1 }
   0x5   : > { %p172_p2 = scmp.lt.s32.totalorder %s2048_s16, 5 }
   0x6   : > { %s2817_s17 = smov (%p26_p0, %s25_s17), 0  ;;  %s2819_s18 = smov (!%p26_p0, %s32_s18), %s2044_s15 }
   0x7   : > { %p173_p3 = pnand %p1430_p1, %p172_p2  ;;  %p34_p4 = scmp.ge.s32.totalorder %s2819_s18, 2 }
   0x9   : > { %s2821_s18 = smov (%p34_p4, %s2819_s18), 0  ;;  %176 = sbr.rel (%p173_p3) target bundleno = 435 (0x1b3), region = 32 }
   0xe   : > { %p212_p5 = scmp.lt.s32.totalorder %s2036_s13, 1  ;;  %p216_p6 = scmp.lt.s32.totalorder %s2032_s12, 1  ;;  %v2115_v0 = vld [vmem:[%s2713_s1] ss:$0 sm:$0xff] }
   0xf   : > { %v2124_v9 = vld [vmem:[%s2714_s2] ss:$0 sm:$0xff]  ;;  %s2050_s30 = smov 124  }
  0x10   : > { %s2823_s13 = smov (!%p212_p5, %s2036_s13), 1  ;;  %s2825_s12 = smov (!%p216_p6, %s2032_s12), 1 }
  0x11   : > { %s1432_s19 = sshll.u32 %s2823_s13, 7  ;;  %s1431_s20 = sshll.u32 %s2825_s12, 6 }
  0x12   : > { %s222_s21 = sadd.s32 %s1432_s19, %s1431_s20  ;;  %s1434_s8 = sshll.u32 %s2825_s12, 2 }
  0x13   : > { %s1433_s22 = sshll.u32 %s222_s21, 2  ;;  %s1435_s9 = sshll.u32 %s2823_s13, 3 }
  0x14   : > { %s2110_s25 = scalar_lea.vmem %s2712_s0, %s1433_s22  ;;  %s235_s10 = sadd.s32 %s1435_s9, %s1434_s8 }
  0x15   : > { %v1606_v1 = vld [vmem:[%s2110_s25 + $0x8] sm:$0xff]   ;;  %v1479_v2 = vld [vmem:[%s2110_s25] sm:$0xff]   ;;  %v1607_v3 = vld [vmem:[%s2110_s25 + $0x10] sm:$0xff]   ;;  %s1436_s11 = sshll.u32 %s235_s10, 1 }
  0x16   : > { %v1484_v4 = vunpack.c.l.bf16 %v1606_v1  ;;  %v1485_v5 = vunpack.c.h.bf16 %v1606_v1  ;;  %v1480_v6 = vunpack.c.l.bf16 %v1479_v2  ;;  %v1481_v7 = vunpack.c.h.bf16 %v1479_v2  ;;  %v1608_v8 = vld [vmem:[%s2110_s25 + $0x18] sm:$0xff]   ;;  %v1609_v30 = vld [vmem:[%s2110_s25 + $0x20] sm:$0xff]   ;;  %v1610_v39 = vld [vmem:[%s2110_s25 + $0x28] sm:$0xff]   ;;  %s237_s21 = scalar_lea.vmem %s2715_s3, %s1436_s11 }
  0x17   : > { %v1489_v10 = vunpack.c.h.bf16 %v1607_v3  ;;  %v1488_v11 = vunpack.c.l.bf16 %v1607_v3  ;;  %v1493_v12 = vunpack.c.h.bf16 %v1608_v8  ;;  %v1492_v13 = vunpack.c.l.bf16 %v1608_v8  ;;  %v1611_v40 = vld [vmem:[%s2110_s25 + $0x30] sm:$0xff]  }
  0x18   : > { %v312_v14 = vmul.f32 %v1484_v4, %v2115_v0  ;;  %v313_v15 = vmul.f32 %v1485_v5, %v2115_v0  ;;  %v310_v16 = vmul.f32 %v1480_v6, %v2115_v0  ;;  %v311_v17 = vmul.f32 %v1481_v7, %v2115_v0  ;;  %v1612_v4 = vld [vmem:[%s2110_s25 + $0x38] sm:$0xff]  }
  0x19   : > { %v315_v18 = vmul.f32 %v1489_v10, %v2115_v0  ;;  %v314_v19 = vmul.f32 %v1488_v11, %v2115_v0  ;;  %v317_v20 = vmul.f32 %v1493_v12, %v2115_v0  ;;  %v316_v21 = vmul.f32 %v1492_v13, %v2115_v0  ;;  %v1613_v12 = vld [vmem:[%s2110_s25 + $0x40] sm:$0xff]  }
  0x1a   : > { %v2135_v22 = vadd.f32 %v2124_v9, %v312_v14  ;;  %v2138_v23 = vadd.f32 %v2124_v9, %v313_v15  ;;  %v2141_v24 = vadd.f32 %v2124_v9, %v310_v16  ;;  %v2144_v25 = vadd.f32 %v2124_v9, %v311_v17  ;;  %v1614_v16 = vld [vmem:[%s2110_s25 + $0x48] sm:$0xff]  }
  0x1b   : > { %v2147_v26 = vadd.f32 %v2124_v9, %v315_v18  ;;  %v2150_v27 = vadd.f32 %v2124_v9, %v314_v19  ;;  %v2153_v28 = vadd.f32 %v2124_v9, %v317_v20  ;;  %v2156_v29 = vadd.f32 %v2124_v9, %v316_v21 }
  0x1c   : > { %v382_v31 = vsub.f32 0.0, %v2135_v22  ;;  %v383_v32 = vsub.f32 0.0, %v2138_v23  ;;  %v380_v33 = vsub.f32 0.0, %v2141_v24  ;;  %v381_v34 = vsub.f32 0.0, %v2144_v25 }
  0x1d   : > { %v385_v35 = vsub.f32 0.0, %v2147_v26  ;;  %v384_v36 = vsub.f32 0.0, %v2150_v27  ;;  %v387_v37 = vsub.f32 0.0, %v2153_v28  ;;  %v386_v38 = vsub.f32 0.0, %v2156_v29 }
  0x1e   : > { %v416_v41 = vmul.f32 1.442695, %v382_v31  ;;  %v418_v42 = vmul.f32 1.442695, %v383_v32  ;;  %v412_v43 = vmul.f32 1.442695, %v380_v33  ;;  %v1497_v44 = vunpack.c.h.bf16 %v1609_v30 }
  0x1f   : > { %v414_v45 = vmul.f32 1.442695, %v381_v34  ;;  %v422_v46 = vmul.f32 1.442695, %v385_v35  ;;  %v420_v47 = vmul.f32 1.442695, %v384_v36  ;;  %v1496_v48 = vunpack.c.l.bf16 %v1609_v30 }
  0x20   : > { %1752 = vpow2.f32 %v416_v41  ;;  %v426_v49 = vmul.f32 1.442695, %v387_v37  ;;  %v424_v50 = vmul.f32 1.442695, %v386_v38  ;;  %v319_v51 = vmul.f32 %v1497_v44, %v2115_v0 }
  0x21   : > { %1754 = vpow2.f32 %v418_v42  ;;  %v318_v52 = vmul.f32 %v1496_v48, %v2115_v0  ;;  %v1501_v53 = vunpack.c.h.bf16 %v1610_v39  ;;  %v1500_v54 = vunpack.c.l.bf16 %v1610_v39 }
  0x22   : > { %1756 = vpow2.f32 %v412_v43  ;;  %v2172_v55 = vadd.f32 %v2124_v9, %v319_v51  ;;  %v1505_v56 = vunpack.c.h.bf16 %v1611_v40  ;;  %v1504_v57 = vunpack.c.l.bf16 %v1611_v40 }
  0x23   : > { %1758 = vpow2.f32 %v414_v45  ;;  %v2175_v58 = vadd.f32 %v2124_v9, %v318_v52  ;;  %v321_v59 = vmul.f32 %v1501_v53, %v2115_v0  ;;  %v320_v60 = vmul.f32 %v1500_v54, %v2115_v0  ;;  %v1615_v54 = vld [vmem:[%s2110_s25 + $0x50] sm:$0xff]  }
  0x24   : > { %1760 = vpow2.f32 %v422_v46  ;;  %v389_v61 = vsub.f32 0.0, %v2172_v55  ;;  %v323_v62 = vmul.f32 %v1505_v56, %v2115_v0  ;;  %v322_v63 = vmul.f32 %v1504_v57, %v2115_v0 }
  0x25   : > { %1762 = vpow2.f32 %v420_v47  ;;  %v388_v1 = vsub.f32 0.0, %v2175_v58  ;;  %v2184_v2 = vadd.f32 %v2124_v9, %v321_v59  ;;  %v2187_v3 = vadd.f32 %v2124_v9, %v320_v60 }
  0x26   : > { %1764 = vpow2.f32 %v426_v49  ;;  %v430_v5 = vmul.f32 1.442695, %v389_v61  ;;  %v2191_v6 = vadd.f32 %v2124_v9, %v323_v62  ;;  %v2194_v7 = vadd.f32 %v2124_v9, %v322_v63  ;;  %v2226_v61 = vld [vmem:[%s2110_s25 + $0x58] sm:$0xff]  }
  0x27   : > { %1766 = vpow2.f32 %v424_v50  ;;  %v428_v8 = vmul.f32 1.442695, %v388_v1  ;;  %v391_v10 = vsub.f32 0.0, %v2184_v2  ;;  %v390_v11 = vsub.f32 0.0, %v2187_v3 }
  0x28   : > { %1768 = vpow2.f32 %v430_v5  ;;  %v393_v13 = vsub.f32 0.0, %v2191_v6  ;;  %v392_v14 = vsub.f32 0.0, %v2194_v7  ;;  %v1509_v15 = vunpack.c.h.bf16 %v1612_v4  ;;  %v2231_v5 = vld [vmem:[%s2110_s25 + $0x60] sm:$0xff]  }
  0x29   : > { %1770 = vpow2.f32 %v428_v8  ;;  %v434_v17 = vmul.f32 1.442695, %v391_v10  ;;  %v432_v18 = vmul.f32 1.442695, %v390_v11  ;;  %v1508_v19 = vunpack.c.l.bf16 %v1612_v4 }
  0x2a   : > { %v438_v20 = vmul.f32 1.442695, %v393_v13  ;;  %v436_v21 = vmul.f32 1.442695, %v392_v14  ;;  %v325_v30 = vmul.f32 %v1509_v15, %v2115_v0  ;;  %v1513_v31 = vunpack.c.h.bf16 %v1613_v12 }
  0x2b   : > { %1772 = vpow2.f32 %v434_v17  ;;  %v324_v32 = vmul.f32 %v1508_v19, %v2115_v0  ;;  %v1512_v33 = vunpack.c.l.bf16 %v1613_v12  ;;  %v1517_v34 = vunpack.c.h.bf16 %v1614_v16 }
  0x2c   : > { %1774 = vpow2.f32 %v432_v18  ;;  %v2205_v35 = vadd.f32 %v2124_v9, %v325_v30  ;;  %v327_v36 = vmul.f32 %v1513_v31, %v2115_v0  ;;  %v1516_v47 = vunpack.c.l.bf16 %v1614_v16 }
  0x2d   : > { %v1753_v37 = vpop.eup %1752  ;;  %1776 = vpow2.f32 %v438_v20  ;;  %v2209_v38 = vadd.f32 %v2124_v9, %v324_v32  ;;  %v326_v39 = vmul.f32 %v1512_v33, %v2115_v0  ;;  %v329_v43 = vmul.f32 %v1517_v34, %v2115_v0 }
  0x2e   : > { %v1755_v40 = vpop.eup %1754  ;;  %v478_v41 = vadd.f32 1.0, %v1753_v37  ;;  %v395_v42 = vsub.f32 0.0, %v2205_v35  ;;  %1778 = vpow2.f32 %v436_v21  ;;  %v2215_v46 = vadd.f32 %v2124_v9, %v327_v36 }
  0x2f   : > { %v1757_v44 = vpop.eup %1756  ;;  %v479_v45 = vadd.f32 1.0, %v1755_v40  ;;  %v2218_v50 = vadd.f32 %v2124_v9, %v326_v39  ;;  %v394_v53 = vsub.f32 0.0, %v2209_v38  ;;  %v2223_v60 = vadd.f32 %v2124_v9, %v329_v43 }
  0x30   : > { %v1759_v48 = vpop.eup %1758  ;;  %1780 = vrcp.f32 %v478_v41  ;;  %v476_v49 = vadd.f32 1.0, %v1757_v44  ;;  %v442_v59 = vmul.f32 1.442695, %v395_v42  ;;  %v397_v1 = vsub.f32 0.0, %v2215_v46 }
  0x31   : > { %v1761_v51 = vpop.eup %1760  ;;  %1782 = vrcp.f32 %v479_v45  ;;  %v477_v52 = vadd.f32 1.0, %v1759_v48  ;;  %v328_v4 = vmul.f32 %v1516_v47, %v2115_v0  ;;  %v396_v11 = vsub.f32 0.0, %v2218_v50  ;;  %v2252_v48 = vld [vmem:[%s2110_s25 + $0x68] sm:$0xff]  }
  0x32   : > { %v1763_v56 = vpop.eup %1762  ;;  %1784 = vrcp.f32 %v476_v49  ;;  %v481_v57 = vadd.f32 1.0, %v1761_v51  ;;  %v1521_v12 = vunpack.c.h.bf16 %v1615_v54  ;;  %v1525_v16 = vunpack.c.h.bf16 %v2226_v61 }
  0x33   : > { %v1765_v62 = vpop.eup %1764  ;;  %1786 = vrcp.f32 %v477_v52  ;;  %v480_v63 = vadd.f32 1.0, %v1763_v56  ;;  %v2235_v15 = vadd.f32 %v2124_v9, %v328_v4  ;;  %v1529_v20 = vunpack.c.h.bf16 %v2231_v5 }
  0x34   : > { %v1767_v8 = vpop.eup %1766  ;;  %1788 = vrcp.f32 %v481_v57  ;;  %v483_v10 = vadd.f32 1.0, %v1765_v62  ;;  %v331_v19 = vmul.f32 %v1521_v12, %v2115_v0  ;;  %v399_v30 = vsub.f32 0.0, %v2223_v60 }
  0x35   : > { %v1769_v13 = vpop.eup %1768  ;;  %1790 = vrcp.f32 %v480_v63  ;;  %v482_v14 = vadd.f32 1.0, %v1767_v8  ;;  %v333_v31 = vmul.f32 %v1525_v16, %v2115_v0  ;;  %v398_v33 = vsub.f32 0.0, %v2235_v15 }
  0x36   : > { %v1771_v17 = vpop.eup %1770  ;;  %1792 = vrcp.f32 %v483_v10  ;;  %v485_v18 = vadd.f32 1.0, %v1769_v13  ;;  %v2244_v34 = vadd.f32 %v2124_v9, %v331_v19  ;;  %v335_v36 = vmul.f32 %v1529_v20, %v2115_v0  ;;  %v2276_v19 = vld [vmem:[%s2110_s25 + $0x80] sm:$0xff]  }
  0x37   : > { %1794 = vrcp.f32 %v482_v14  ;;  %v484_v21 = vadd.f32 1.0, %v1771_v17  ;;  %v1520_v37 = vunpack.c.l.bf16 %v1615_v54  ;;  %v440_v41 = vmul.f32 1.442695, %v394_v53  ;;  %v2256_v54 = vld [vmem:[%s2110_s25 + $0x70] sm:$0xff]  }
  0x38   : > { %v1773_v32 = vpop.eup %1772  ;;  %1796 = vrcp.f32 %v485_v18  ;;  %v2248_v42 = vadd.f32 %v2124_v9, %v333_v31  ;;  %v446_v45 = vmul.f32 1.442695, %v397_v1  ;;  %v401_v47 = vsub.f32 0.0, %v2244_v34 }
  0x39   : > { %v1775_v39 = vpop.eup %1774  ;;  %v487_v40 = vadd.f32 1.0, %v1773_v32  ;;  %1798 = vpow2.f32 %v442_v59  ;;  %v444_v51 = vmul.f32 1.442695, %v396_v11  ;;  %v330_v52 = vmul.f32 %v1520_v37, %v2115_v0  ;;  %v2262_v59 = vld [vmem:[%s2110_s25 + $0x78] sm:$0xff]  }
  0x3a   : > { %v1777_v43 = vpop.eup %1776  ;;  %v486_v44 = vadd.f32 1.0, %v1775_v39  ;;  %1800 = vrcp.f32 %v484_v21  ;;  %v450_v56 = vmul.f32 1.442695, %v399_v30  ;;  %v448_v57 = vmul.f32 1.442695, %v398_v33 }
  0x3b   : > { %v489_v49 = vadd.f32 1.0, %v1777_v43  ;;  %v1779_v53 = vpop.eup %1778  ;;  %1802 = vrcp.f32 %v487_v40  ;;  %v2259_v62 = vadd.f32 %v2124_v9, %v335_v36  ;;  %v403_v1 = vsub.f32 0.0, %v2248_v42 }
  0x3c   : > { %1804 = vrcp.f32 %v486_v44  ;;  %v2266_v4 = vadd.f32 %v2124_v9, %v330_v52  ;;  %v1533_v8 = vunpack.c.h.bf16 %v2252_v48  ;;  %v454_v11 = vmul.f32 1.442695, %v401_v47 }
  0x3d   : > { %v1781_v63 = vpop.eup %1780  ;;  %1806 = vrcp.f32 %v489_v49  ;;  %v1537_v12 = vunpack.c.h.bf16 %v2256_v54  ;;  %v1524_v13 = vunpack.c.l.bf16 %v2226_v61  ;;  %v1541_v18 = vunpack.c.h.bf16 %v2262_v59 }
  0x3e   : > { %v1783_v10 = vpop.eup %1782  ;;  %576 = vrot.lane.b32.xlu1 %v1781_v63, %s2050_s30  ;;  %1808 = vpow2.f32 %v440_v41  ;;  %v400_v16 = vsub.f32 0.0, %v2266_v4  ;;  %v337_v17 = vmul.f32 %v1533_v8, %v2115_v0  ;;  %v405_v21 = vsub.f32 0.0, %v2259_v62 }
  0x3f   : > { %v1785_v14 = vpop.eup %1784  ;;  %1810 = vpow2.f32 %v446_v45  ;;  %v339_v30 = vmul.f32 %v1537_v12, %v2115_v0  ;;  %v332_v61 = vmul.f32 %v1524_v13, %v2115_v0  ;;  %v488_v32 = vadd.f32 1.0, %v1779_v53 }
  0x40   : > { %v1787_v20 = vpop.eup %1786  ;;  %572 = vrot.lane.b32.xlu0 %v1785_v14, %s2050_s30  ;;  %1812 = vpow2.f32 %v444_v51  ;;  %v458_v33 = vmul.f32 1.442695, %v403_v1  ;;  %v2283_v36 = vadd.f32 %v2124_v9, %v337_v17  ;;  %v1544_v41 = vunpack.c.l.bf16 %v2276_v19 }
  0x41   : > { %v1789_v31 = vpop.eup %1788  ;;  %1814 = vpow2.f32 %v450_v56  ;;  %v2287_v39 = vadd.f32 %v2124_v9, %v339_v30  ;;  %v2290_v40 = vadd.f32 %v2124_v9, %v332_v61  ;;  %v452_v44 = vmul.f32 1.442695, %v400_v16 }
  0x42   : > { %v1791_v37 = vpop.eup %1790  ;;  %578 = vrot.lane.b32.xlu1 %v1783_v10, %s2050_s30  ;;  %1816 = vpow2.f32 %v448_v57  ;;  %v341_v45 = vmul.f32 %v1541_v18, %v2115_v0  ;;  %v1528_v47 = vunpack.c.l.bf16 %v2231_v5  ;;  %v462_v51 = vmul.f32 1.442695, %v405_v21 }
  0x43   : > { %v1793_v43 = vpop.eup %1792  ;;  %1818 = vpow2.f32 %v454_v11  ;;  %v407_v52 = vsub.f32 0.0, %v2283_v36  ;;  %v402_v53 = vsub.f32 0.0, %v2290_v40  ;;  %v409_v56 = vsub.f32 0.0, %v2287_v39 }
  0x44   : > { %v1795_v49 = vpop.eup %1794  ;;  %574 = vrot.lane.b32.xlu0 %v1787_v20, %s2050_s30  ;;  %1820 = vrcp.f32 %v488_v32  ;;  %v334_v63 = vmul.f32 %v1528_v47, %v2115_v0  ;;  %v843_v5 = vmul.f32 %v1544_v41, %v2115_v0  ;;  %v2303_v10 = vadd.f32 %v2124_v9, %v341_v45  ;;  %v1622_v20 = vld [vmem:[%s2110_s25 + $0x88] sm:$0xff]  }
  0x45   : > { %v1797_v57 = vpop.eup %1796  ;;  %1822 = vpow2.f32 %v458_v33  ;;  %v456_v8 = vmul.f32 1.442695, %v402_v53  ;;  %v466_v14 = vmul.f32 1.442695, %v407_v52  ;;  %v470_v17 = vmul.f32 1.442695, %v409_v56 }
  0x46   : > { %582 = vrot.lane.b32.xlu1 %v1789_v31, %s2050_s30  ;;  %v1799_v1 = vpop.eup %1798  ;;  %1824 = vpow2.f32 %v452_v44  ;;  %v2306_v11 = vadd.f32 %v2124_v9, %v334_v63  ;;  %v1545_v30 = vunpack.c.h.bf16 %v2276_v19  ;;  %v411_v31 = vsub.f32 0.0, %v2303_v10 }
  0x47   : > { %v1801_v12 = vpop.eup %1800  ;;  %v491_v13 = vadd.f32 1.0, %v1799_v1  ;;  %1826 = vpow2.f32 %v462_v51  ;;  %v2315_v32 = vadd.f32 %v2124_v9, %v843_v5  ;;  %v1548_v41 = vunpack.c.l.bf16 %v1622_v20 }
  0x48   : > { %580 = vrot.lane.b32.xlu0 %v1791_v37, %s2050_s30  ;;  %v1803_v16 = vpop.eup %1802  ;;  %v404_v18 = vsub.f32 0.0, %v2306_v11  ;;  %v1532_v44 = vunpack.c.l.bf16 %v2252_v48  ;;  %v844_v51 = vmul.f32 %v1545_v30, %v2115_v0  ;;  %v474_v56 = vmul.f32 1.442695, %v411_v31 }
  0x49   : > { %v1805_v21 = vpop.eup %1804  ;;  %1828 = vrcp.f32 %v491_v13  ;;  %2748 = vst [vmem:[#allocation2_spill] sm:$0xff] %v2315_v32  ;;  %v845_v5 = vmul.f32 %v1548_v41, %v2115_v0 }
  0x4a   : > { %586 = vrot.lane.b32.xlu1 %v1793_v43, %s2050_s30  ;;  %v1807_v61 = vpop.eup %1806  ;;  %1830 = vpow2.f32 %v456_v8  ;;  %v460_v33 = vmul.f32 1.442695, %v404_v18  ;;  %v336_v1 = vmul.f32 %v1532_v44, %v2115_v0  ;;  %v2330_v30 = vadd.f32 %v2124_v9, %v844_v51 }
  0x4b   : > { %v1809_v37 = vpop.eup %1808  ;;  %1832 = vpow2.f32 %v466_v14  ;;  %v1549_v14 = vunpack.c.h.bf16 %v1622_v20  ;;  %v2336_v20 = vadd.f32 %v2124_v9, %v845_v5 }
  0x4c   : > { %584 = vrot.lane.b32.xlu0 %v1795_v49, %s2050_s30  ;;  %v1811_v45 = vpop.eup %1810  ;;  %v490_v43 = vadd.f32 1.0, %v1809_v37  ;;  %1834 = vpow2.f32 %v470_v17  ;;  %v907_v49 = vsub.f32 0.0, %v2315_v32  ;;  %2749 = vst [vmem:[#allocation3_spill] sm:$0xff] %v2330_v30 }
  0x4d   : > { %v1813_v47 = vpop.eup %1812  ;;  %v493_v19 = vadd.f32 1.0, %v1811_v45  ;;  %1836 = vpow2.f32 %v460_v33  ;;  %2750 = vst [vmem:[#allocation4_spill] sm:$0xff] %v2336_v20 }
  0x4e   : > { %590 = vrot.lane.b32.xlu1 %v1797_v57, %s2050_s30  ;;  %v1815_v52 = vpop.eup %1814  ;;  %1838 = vrcp.f32 %v490_v43  ;;  %v492_v53 = vadd.f32 1.0, %v1813_v47  ;;  %v2326_v57 = vld [vmem:[%s2110_s25 + $0x90] sm:$0xff]   ;;  %v939_v33 = vmul.f32 1.442695, %v907_v49 }
  0x4f   : > { %v1817_v63 = vpop.eup %1816  ;;  %1840 = vrcp.f32 %v493_v19  ;;  %v495_v48 = vadd.f32 1.0, %v1815_v52  ;;  %v1552_v37 = vunpack.c.l.bf16 %v2326_v57 }
  0x50   : > { %588 = vrot.lane.b32.xlu0 %v1801_v12, %s2050_s30  ;;  %v1819_v8 = vpop.eup %1818  ;;  %1842 = vrcp.f32 %v492_v53  ;;  %v494_v13 = vadd.f32 1.0, %v1817_v63  ;;  %v1536_v12 = vunpack.c.l.bf16 %v2256_v54  ;;  %v846_v54 = vmul.f32 %v1549_v14, %v2115_v0 }
  0x51   : > { %v1821_v17 = vpop.eup %1820  ;;  %1844 = vrcp.f32 %v495_v48  ;;  %v497_v18 = vadd.f32 1.0, %v1819_v8  ;;  %v847_v51 = vmul.f32 %v1552_v37, %v2115_v0  ;;  %v1540_v53 = vunpack.c.l.bf16 %v2262_v59 }
  0x52   : > { %594 = vrot.lane.b32.xlu1 %v1803_v16, %s2050_s30  ;;  %v1823_v31 = vpop.eup %1822  ;;  %1846 = vpow2.f32 %v474_v56  ;;  %v2339_v16 = vadd.f32 %v2124_v9, %v336_v1  ;;  %v338_v44 = vmul.f32 %v1536_v12, %v2115_v0  ;;  %v2354_v1 = vadd.f32 %v2124_v9, %v846_v54 }
  0x53   : > { %v1825_v41 = vpop.eup %1824  ;;  %1848 = vrcp.f32 %v494_v13  ;;  %v499_v47 = vadd.f32 1.0, %v1823_v31  ;;  %v340_v8 = vmul.f32 %v1540_v53, %v2115_v0  ;;  %v1553_v14 = vunpack.c.h.bf16 %v2326_v57 }
  0x54   : > { %592 = vrot.lane.b32.xlu0 %v1805_v21, %s2050_s30  ;;  %v1827_v45 = vpop.eup %1826  ;;  %v496_v43 = vadd.f32 1.0, %v1825_v41  ;;  %1850 = vrcp.f32 %v497_v18  ;;  %v908_v21 = vsub.f32 0.0, %v2330_v30  ;;  %v2347_v52 = vadd.f32 %v2124_v9, %v338_v44  ;;  %2751 = vst [vmem:[#allocation5_spill] sm:$0xff] %v2354_v1 }
  0x55   : > { %v501_v49 = vadd.f32 1.0, %v1827_v45  ;;  %1852 = vpow2.f32 %v939_v33  ;;  %v406_v63 = vsub.f32 0.0, %v2339_v16  ;;  %v2362_v31 = vadd.f32 %v2124_v9, %v340_v8 }
  0x56   : > { %598 = vrot.lane.b32.xlu1 %v1807_v61, %s2050_s30  ;;  %v1829_v19 = vpop.eup %1828  ;;  %v909_v61 = vsub.f32 0.0, %v2336_v20  ;;  %1854 = vrcp.f32 %v496_v43  ;;  %v941_v59 = vmul.f32 1.442695, %v908_v21  ;;  %v408_v12 = vsub.f32 0.0, %v2347_v52 }
  0x57   : > { %v1831_v56 = vpop.eup %1830  ;;  %1856 = vrcp.f32 %v499_v47  ;;  %v464_v44 = vmul.f32 1.442695, %v406_v63  ;;  %v910_v43 = vsub.f32 0.0, %v2354_v1  ;;  %v2367_v57 = vadd.f32 %v2124_v9, %v847_v51 }
  0x58   : > { %596 = vrot.lane.b32.xlu0 %v1821_v17, %s2050_s30  ;;  %v1833_v48 = vpop.eup %1832  ;;  %v498_v5 = vadd.f32 1.0, %v1831_v56  ;;  %v1624_v17 = vld [vmem:[%s2110_s25 + $0x98] sm:$0xff]   ;;  %1858 = vrcp.f32 %v501_v49  ;;  %v943_v41 = vmul.f32 1.442695, %v909_v61  ;;  %v410_v53 = vsub.f32 0.0, %v2362_v31 }
  0x59   : > { %v1835_v13 = vpop.eup %1834  ;;  %2752 = vst [vmem:[#allocation6_spill] sm:$0xff] %v2367_v57  ;;  %v1556_v54 = vunpack.c.l.bf16 %v1624_v17  ;;  %v503_v21 = vadd.f32 1.0, %v1833_v48  ;;  %v468_v49 = vmul.f32 1.442695, %v408_v12  ;;  %v1557_v63 = vunpack.c.h.bf16 %v1624_v17 }
  0x5a   : > { %602 = vrot.lane.b32.xlu1 %v1829_v19, %s2050_s30  ;;  %v1837_v18 = vpop.eup %1836  ;;  %1860 = vrcp.f32 %v498_v5  ;;  %v848_v19 = vmul.f32 %v1553_v14, %v2115_v0  ;;  %v505_v61 = vadd.f32 1.0, %v1835_v13  ;;  %v945_v51 = vmul.f32 1.442695, %v910_v43  ;;  %v1629_v13 = vld [vmem:[%s2110_s25 + $0xc0] sm:$0xff]  }
  0x5b   : > { %v1839_v33 = vpop.eup %1838  ;;  %v500_v37 = vadd.f32 1.0, %v1837_v18  ;;  %1862 = vpow2.f32 %v941_v59  ;;  %v849_v8 = vmul.f32 %v1556_v54, %v2115_v0  ;;  %v911_v59 = vsub.f32 0.0, %v2367_v57 }
  0x5c   : > { %v1841_v45 = vpop.eup %1840  ;;  %600 = vrot.lane.b32.xlu0 %v1839_v33, %s2050_s30  ;;  %v2377_v14 = vadd.f32 %v2124_v9, %v848_v19  ;;  %v472_v18 = vmul.f32 1.442695, %v410_v53  ;;  %v850_v17 = vmul.f32 %v1557_v63, %v2115_v0  ;;  %v1577_v19 = vunpack.c.h.bf16 %v1629_v13  ;;  %v2391_v53 = vld [vmem:[%s2110_s25 + $0xe8] sm:$0xff]  }
  0x5d   : > { %v1843_v47 = vpop.eup %1842  ;;  %1864 = vrcp.f32 %v500_v37  ;;  %v947_v43 = vmul.f32 1.442695, %v911_v59  ;;  %v1597_v59 = vunpack.c.h.bf16 %v2391_v53 }
  0x5e   : > { %606 = vrot.lane.b32.xlu1 %v1841_v45, %s2050_s30  ;;  %v1845_v56 = vpop.eup %1844  ;;  %1866 = vpow2.f32 %v464_v44  ;;  %2753 = vst [vmem:[#allocation7_spill] sm:$0xff] %v2377_v14  ;;  %v1576_v44 = vunpack.c.l.bf16 %v1629_v13  ;;  %v912_v54 = vsub.f32 0.0, %v2377_v14 }
  0x5f   : > { %v1847_v5 = vpop.eup %1846  ;;  %1868 = vpow2.f32 %v943_v41  ;;  %v2383_v41 = vadd.f32 %v2124_v9, %v849_v8 }
  0x60   : > { %604 = vrot.lane.b32.xlu0 %v1843_v47, %s2050_s30  ;;  %v1849_v48 = vpop.eup %1848  ;;  %1870 = vrcp.f32 %v503_v21  ;;  %v507_v37 = vadd.f32 1.0, %v1847_v5  ;;  %v2388_v21 = vadd.f32 %v2124_v9, %v850_v17  ;;  %v859_v63 = vmul.f32 %v1576_v44, %v2115_v0  ;;  %v1630_v5 = vld [vmem:[%s2110_s25 + $0xc8] sm:$0xff]  }
  0x61   : > { %v1851_v12 = vpop.eup %1850  ;;  %1872 = vpow2.f32 %v468_v49  ;;  %2754 = vst [vmem:[#allocation8_spill] sm:$0xff] %v2383_v41  ;;  %v949_v8 = vmul.f32 1.442695, %v912_v54  ;;  %v1580_v17 = vunpack.c.l.bf16 %v1630_v5 }
  0x62   : > { %610 = vrot.lane.b32.xlu1 %v1845_v56, %s2050_s30  ;;  %1874 = vrcp.f32 %v505_v61  ;;  %v1853_v33 = vpop.eup %1852  ;;  %2755 = vst [vmem:[#allocation9_spill] sm:$0xff] %v2388_v21  ;;  %v913_v61 = vsub.f32 0.0, %v2383_v41  ;;  %v914_v13 = vsub.f32 0.0, %v2388_v21  ;;  %v2403_v44 = vadd.f32 %v2124_v9, %v859_v63 }
  0x63   : > { %1876 = vpow2.f32 %v945_v51  ;;  %v1855_v45 = vpop.eup %1854  ;;  %v1003_v49 = vadd.f32 1.0, %v1853_v33  ;;  %v1581_v21 = vunpack.c.h.bf16 %v1630_v5 }
  0x64   : > { %608 = vrot.lane.b32.xlu0 %v1849_v48, %s2050_s30  ;;  %1878 = vpow2.f32 %v472_v18  ;;  %v1857_v47 = vpop.eup %1856  ;;  %2756 = vst [vmem:[#allocation10_spill] sm:$0xff] %v2403_v44  ;;  %v953_v14 = vmul.f32 1.442695, %v914_v13 }
  0x65   : > { %v1859_v56 = vpop.eup %1858  ;;  %1880 = vrcp.f32 %v507_v37  ;;  %v951_v37 = vmul.f32 1.442695, %v913_v61  ;;  %v861_v61 = vmul.f32 %v1580_v17, %v2115_v0  ;;  %v862_v17 = vmul.f32 %v1581_v21, %v2115_v0 }
  0x66   : > { %614 = vrot.lane.b32.xlu1 %v1851_v12, %s2050_s30  ;;  %1882 = vpow2.f32 %v947_v43  ;;  %v860_v12 = vmul.f32 %v1577_v19, %v2115_v0  ;;  %v870_v19 = vmul.f32 %v1597_v59, %v2115_v0 }
  0x67   : > { %v1861_v51 = vpop.eup %1860  ;;  %1884 = vrcp.f32 %v1003_v49 }
  0x68   : > { %612 = vrot.lane.b32.xlu0 %v1855_v45, %s2050_s30  ;;  %v1863_v48 = vpop.eup %1862  ;;  %1886 = vpow2.f32 %v949_v8  ;;  %v2408_v49 = vadd.f32 %v2124_v9, %v860_v12  ;;  %v923_v8 = vsub.f32 0.0, %v2403_v44  ;;  %v2416_v13 = vadd.f32 %v2124_v9, %v870_v19 }
  0x69   : > { %v1004_v43 = vadd.f32 1.0, %v1863_v48  ;;  %v1631_v48 = vld [vmem:[%s2110_s25 + $0xd0] sm:$0xff]  }
  0x6a   : > { %618 = vrot.lane.b32.xlu1 %v1857_v47, %s2050_s30  ;;  %v1865_v18 = vpop.eup %1864  ;;  %2757 = vst [vmem:[#allocation11_spill] sm:$0xff] %v2408_v49  ;;  %2758 = vst [vmem:[#allocation12_spill] sm:$0xff] %v2416_v13  ;;  %v1585_v21 = vunpack.c.h.bf16 %v1631_v48 }
  0x6b   : > { %v1867_v33 = vpop.eup %1866 }
  0x6c   : > { %616 = vrot.lane.b32.xlu0 %v1861_v51, %s2050_s30  ;;  %v1869_v45 = vpop.eup %1868  ;;  %v502_v54 = vadd.f32 1.0, %v1867_v33  ;;  %v924_v33 = vsub.f32 0.0, %v2408_v49 }
  0x6d   : > { %v1871_v47 = vpop.eup %1870 }
  0x6e   : > { %622 = vrot.lane.b32.xlu1 %v1859_v56, %s2050_s30  ;;  %v1873_v41 = vpop.eup %1872  ;;  %1888 = vrcp.f32 %v502_v54  ;;  %v1005_v56 = vadd.f32 1.0, %v1869_v45  ;;  %v973_v19 = vmul.f32 1.442695, %v924_v33 }
  0x6f   : > { %v1875_v63 = vpop.eup %1874  ;;  %v504_v51 = vadd.f32 1.0, %v1873_v41  ;;  %1890 = vpow2.f32 %v951_v37  ;;  %v971_v41 = vmul.f32 1.442695, %v923_v8  ;;  %v2421_v37 = vadd.f32 %v2124_v9, %v861_v61 }
  0x70   : > { %620 = vrot.lane.b32.xlu0 %v1865_v18, %s2050_s30  ;;  %v1877_v5 = vpop.eup %1876  ;;  %1892 = vrcp.f32 %v1004_v43  ;;  %v1584_v18 = vunpack.c.l.bf16 %v1631_v48 }
  0x71   : > { %v1879_v59 = vpop.eup %1878  ;;  %1894 = vrcp.f32 %v504_v51  ;;  %2759 = vst [vmem:[#allocation13_spill] sm:$0xff] %v2421_v37  ;;  %v1006_v43 = vadd.f32 1.0, %v1877_v5  ;;  %v1632_v5 = vld [vmem:[%s2110_s25 + $0xd8] sm:$0xff]  }
  0x72   : > { %626 = vrot.lane.b32.xlu1 %v1871_v47, %s2050_s30  ;;  %v506_v12 = vadd.f32 1.0, %v1879_v59  ;;  %1896 = vpow2.f32 %v953_v14  ;;  %v1881_v45 = vpop.eup %1880  ;;  %v934_v47 = vsub.f32 0.0, %v2416_v13  ;;  %v2426_v14 = vadd.f32 %v2124_v9, %v862_v17 }
  0x73   : > { %1898 = vrcp.f32 %v1005_v56  ;;  %v1883_v54 = vpop.eup %1882  ;;  %v925_v56 = vsub.f32 0.0, %v2421_v37  ;;  %v863_v61 = vmul.f32 %v1584_v18, %v2115_v0 }
  0x74   : > { %1900 = vrcp.f32 %v506_v12  ;;  %2760 = vst [vmem:[#allocation14_spill] sm:$0xff] %v2426_v14  ;;  %v1885_v51 = vpop.eup %1884  ;;  %v993_v59 = vmul.f32 1.442695, %v934_v47  ;;  %v864_v12 = vmul.f32 %v1585_v21, %v2115_v0  ;;  %v926_v48 = vsub.f32 0.0, %v2426_v14 }
  0x75   : > { %1902 = vpow2.f32 %v971_v41  ;;  %v1887_v8 = vpop.eup %1886  ;;  %v975_v17 = vmul.f32 1.442695, %v925_v56  ;;  %v2435_v41 = vadd.f32 %v2124_v9, %v863_v61  ;;  %v1589_v61 = vunpack.c.h.bf16 %v1632_v5 }
  0x76   : > { %630 = vrot.lane.b32.xlu1 %v1875_v63, %s2050_s30  ;;  %1904 = vrcp.f32 %v1006_v43  ;;  %v1007_v63 = vadd.f32 1.0, %v1883_v54  ;;  %v1008_v18 = vadd.f32 1.0, %v1887_v8  ;;  %v2440_v47 = vadd.f32 %v2124_v9, %v864_v12 }
  0x77   : > { %1906 = vpow2.f32 %v973_v19  ;;  %2761 = vst [vmem:[#allocation15_spill] sm:$0xff] %v2435_v41  ;;  %v977_v19 = vmul.f32 1.442695, %v926_v48  ;;  %v927_v56 = vsub.f32 0.0, %v2435_v41 }
  0x78   : > { %1908 = vrcp.f32 %v1007_v63  ;;  %2762 = vst [vmem:[#allocation16_spill] sm:$0xff] %v2440_v47  ;;  %v1625_v63 = vld [vmem:[%s2110_s25 + $0xa0] sm:$0xff]  }
  0x79   : > { %1910 = vpow2.f32 %v993_v59  ;;  %v928_v59 = vsub.f32 0.0, %v2440_v47  ;;  %v979_v12 = vmul.f32 1.442695, %v927_v56  ;;  %v1560_v48 = vunpack.c.l.bf16 %v1625_v63 }
  0x7a   : > { %634 = vrot.lane.b32.xlu1 %v1881_v45, %s2050_s30  ;;  %v1588_v45 = vunpack.c.l.bf16 %v1632_v5  ;;  %1912 = vpow2.f32 %v975_v17  ;;  %v866_v17 = vmul.f32 %v1589_v61, %v2115_v0 }
  0x7b   : > { %v1889_v13 = vpop.eup %1888  ;;  %1914 = vrcp.f32 %v1008_v18  ;;  %v851_v56 = vmul.f32 %v1560_v48, %v2115_v0  ;;  %v2474_v48 = vld [vmem:[%s2713_s1] ss:$0 sm:$0xff] }
  0x7c   : > { %v1891_v33 = vpop.eup %1890  ;;  %624 = vrot.lane.b32.xlu0 %v1889_v13, %s2050_s30  ;;  %1916 = vpow2.f32 %v977_v19  ;;  %v2456_v19 = vadd.f32 %v2124_v9, %v866_v17 }
  0x7d   : > { %v1893_v43 = vpop.eup %1892  ;;  %v1009_v13 = vadd.f32 1.0, %v1891_v33 }
  0x7e   : > { %1099 = vrot.lane.b32.xlu1 %v1885_v51, %s2050_s30  ;;  %v1895_v54 = vpop.eup %1894  ;;  %v865_v51 = vmul.f32 %v1588_v45, %v2115_v0  ;;  %2764 = vst [vmem:[#allocation18_spill] sm:$0xff] %v2456_v19  ;;  %v2465_v0 = vld [vmem:[%s2714_s2] ss:$0 sm:$0xff] }
  0x7f   : > { %v1897_v21 = vpop.eup %1896  ;;  %1918 = vrcp.f32 %v1009_v13 }
  0x80   : > { %v1899_v57 = vpop.eup %1898  ;;  %628 = vrot.lane.b32.xlu0 %v1895_v54, %s2050_s30  ;;  %v1010_v18 = vadd.f32 1.0, %v1897_v21  ;;  %v2452_v33 = vadd.f32 %v2124_v9, %v865_v51  ;;  %v981_v54 = vmul.f32 1.442695, %v928_v59  ;;  %1920 = vpow2.f32 %v979_v12 }
  0x81   : > { %v1901_v8 = vpop.eup %1900  ;;  %v930_v59 = vsub.f32 0.0, %v2456_v19  ;;  %v2468_v9 = vadd.f32 %v2465_v0, %v851_v56 }
  0x82   : > { %1101 = vrot.lane.b32.xlu1 %v1893_v43, %s2050_s30  ;;  %v1903_v5 = vpop.eup %1902  ;;  %2763 = vst [vmem:[#allocation17_spill] sm:$0xff] %v2452_v33  ;;  %v1633_v43 = vld [vmem:[%s2110_s25 + $0xe0] sm:$0xff]   ;;  %1922 = vrcp.f32 %v1010_v18  ;;  %v929_v13 = vsub.f32 0.0, %v2452_v33  ;;  %v1561_v18 = vunpack.c.h.bf16 %v1625_v63 }
  0x83   : > { %v1905_v45 = vpop.eup %1904  ;;  %v1592_v21 = vunpack.c.l.bf16 %v1633_v43  ;;  %1924 = vpow2.f32 %v981_v54  ;;  %2765 = vst [vmem:[#allocation19_spill] sm:$0xff] %v2468_v9  ;;  %v1593_v56 = vunpack.c.h.bf16 %v1633_v43 }
  0x84   : > { %632 = vrot.lane.b32.xlu0 %v1901_v8, %s2050_s30  ;;  %v1907_v61 = vpop.eup %1906  ;;  %v983_v17 = vmul.f32 1.442695, %v929_v13 }
  0x85   : > { %v1909_v8 = vpop.eup %1908  ;;  %v1020_v47 = vadd.f32 1.0, %v1907_v61  ;;  %v985_v61 = vmul.f32 1.442695, %v930_v59 }
  0x86   : > { %1103 = vrot.lane.b32.xlu1 %v1899_v57, %s2050_s30  ;;  %v1019_v57 = vadd.f32 1.0, %v1903_v5  ;;  %v1911_v51 = vpop.eup %1910  ;;  %v867_v5 = vmul.f32 %v2474_v48, %v1592_v21 }
  0x87   : > { %v1030_v41 = vadd.f32 1.0, %v1911_v51  ;;  %v1913_v12 = vpop.eup %1912  ;;  %v1626_v51 = vld [vmem:[%s2110_s25 + $0xa8] sm:$0xff]  }
  0x88   : > { %1926 = vrcp.f32 %v1019_v57  ;;  %v1021_v54 = vadd.f32 1.0, %v1913_v12  ;;  %v915_v57 = vsub.f32 0.0, %v2468_v9  ;;  %v2481_v13 = vadd.f32 %v2465_v0, %v867_v5 }
  0x89   : > { %1928 = vrcp.f32 %v1030_v41  ;;  %v1564_v63 = vunpack.c.l.bf16 %v1626_v51 }
  0x8a   : > { %1105 = vrot.lane.b32.xlu1 %v1905_v45, %s2050_s30  ;;  %v1915_v45 = vpop.eup %1914  ;;  %1930 = vrcp.f32 %v1020_v47  ;;  %2766 = vst [vmem:[#allocation20_spill] sm:$0xff] %v2481_v13  ;;  %v868_v47 = vmul.f32 %v2474_v48, %v1593_v56  ;;  %v955_v43 = vmul.f32 1.442695, %v915_v57  ;;  %v931_v12 = vsub.f32 0.0, %v2481_v13 }
  0x8b   : > { %v1917_v19 = vpop.eup %1916  ;;  %1932 = vpow2.f32 %v983_v17 }
  0x8c   : > { %v1919_v21 = vpop.eup %1918  ;;  %1934 = vrcp.f32 %v1021_v54  ;;  %v1022_v41 = vadd.f32 1.0, %v1917_v19  ;;  %v2492_v19 = vadd.f32 %v2465_v0, %v868_v47  ;;  %v1596_v54 = vunpack.c.l.bf16 %v2391_v53 }
  0x8d   : > { %v1921_v59 = vpop.eup %1920  ;;  %1936 = vpow2.f32 %v985_v61  ;;  %v987_v61 = vmul.f32 1.442695, %v931_v12  ;;  %v1627_v12 = vld [vmem:[%s2110_s25 + $0xb0] sm:$0xff]  }
  0x8e   : > { %1107 = vrot.lane.b32.xlu1 %v1909_v8, %s2050_s30  ;;  %v852_v8 = vmul.f32 %v2474_v48, %v1561_v18  ;;  %1938 = vrcp.f32 %v1022_v41  ;;  %v1023_v9 = vadd.f32 1.0, %v1921_v59  ;;  %2768 = vst [vmem:[#allocation22_spill] sm:$0xff] %v2492_v19  ;;  %v932_v47 = vsub.f32 0.0, %v2492_v19 }
  0x8f   : > { %v1923_v5 = vpop.eup %1922  ;;  %1940 = vpow2.f32 %v955_v43  ;;  %v869_v53 = vmul.f32 %v2474_v48, %v1596_v54 }
  0x90   : > { %v2488_v17 = vadd.f32 %v2465_v0, %v852_v8  ;;  %v1925_v18 = vpop.eup %1924  ;;  %1942 = vrcp.f32 %v1023_v9  ;;  %v989_v9 = vmul.f32 1.442695, %v932_v47 }
  0x91   : > { %v1024_v41 = vadd.f32 1.0, %v1925_v18  ;;  %1944 = vpow2.f32 %v987_v61  ;;  %v2508_v18 = vadd.f32 %v2465_v0, %v869_v53 }
  0x92   : > { %1109 = vrot.lane.b32.xlu1 %v1915_v45, %s2050_s30  ;;  %2767 = vst [vmem:[#allocation21_spill] sm:$0xff] %v2488_v17  ;;  %v853_v45 = vmul.f32 %v2474_v48, %v1564_v63  ;;  %v916_v56 = vsub.f32 0.0, %v2488_v17  ;;  %v1565_v63 = vunpack.c.h.bf16 %v1626_v51 }
  0x93   : > { %1946 = vrcp.f32 %v1024_v41  ;;  %2770 = vst [vmem:[#allocation24_spill] sm:$0xff] %v2508_v18 }
  0x94   : > { %v957_v43 = vmul.f32 1.442695, %v916_v56  ;;  %v854_v51 = vmul.f32 %v2474_v48, %v1565_v63  ;;  %v933_v63 = vsub.f32 0.0, %v2508_v18 }
  0x95   : > { %v1927_v57 = vpop.eup %1926 }
  0x96   : > { %1111 = vrot.lane.b32.xlu1 %v1919_v21, %s2050_s30  ;;  %v1929_v8 = vpop.eup %1928  ;;  %v2498_v21 = vadd.f32 %v2465_v0, %v853_v45  ;;  %1948 = vpow2.f32 %v957_v43  ;;  %v2513_v19 = vadd.f32 %v2465_v0, %v854_v51 }
  0x97   : > { %1153 = vrot.lane.b32.xlu0 %v1929_v8, %s2050_s30  ;;  %v1931_v59 = vpop.eup %1930  ;;  %v1568_v8 = vunpack.c.l.bf16 %v1627_v12  ;;  %1950 = vpow2.f32 %v989_v9 }
  0x98   : > { %2769 = vst [vmem:[#allocation23_spill] sm:$0xff] %v2498_v21  ;;  %v917_v45 = vsub.f32 0.0, %v2498_v21  ;;  %2771 = vst [vmem:[#allocation25_spill] sm:$0xff] %v2513_v19  ;;  %v918_v43 = vsub.f32 0.0, %v2513_v19 }
  0x99   : > { %v855_v41 = vmul.f32 %v2474_v48, %v1568_v8 }
  0x9a   : > { %1113 = vrot.lane.b32.xlu1 %v1923_v5, %s2050_s30  ;;  %v1933_v5 = vpop.eup %1932  ;;  %v959_v56 = vmul.f32 1.442695, %v917_v45  ;;  %v991_v45 = vmul.f32 1.442695, %v933_v63  ;;  %v961_v19 = vmul.f32 1.442695, %v918_v43 }
  0x9b   : > { %v1935_v17 = vpop.eup %1934  ;;  %v1025_v54 = vadd.f32 1.0, %v1933_v5  ;;  %v1569_v5 = vunpack.c.h.bf16 %v1627_v12  ;;  %v2520_v51 = vadd.f32 %v2465_v0, %v855_v41 }
  0x9c   : > { %v1937_v61 = vpop.eup %1936 }
  0x9d   : > { %v1939_v53 = vpop.eup %1938  ;;  %1952 = vrcp.f32 %v1025_v54  ;;  %v1026_v21 = vadd.f32 1.0, %v1937_v61  ;;  %2772 = vst [vmem:[#allocation26_spill] sm:$0xff] %v2520_v51  ;;  %v856_v54 = vmul.f32 %v2474_v48, %v1569_v5  ;;  %v919_v12 = vsub.f32 0.0, %v2520_v51 }
  0x9e   : > { %1131 = vrot.lane.b32.xlu1 %v1927_v57, %s2050_s30  ;;  %v1635_v57 = vld [vmem:[%s2110_s25 + $0xf0] sm:$0xff]   ;;  %1954 = vpow2.f32 %v959_v56 }
  0x9f   : > { %v1600_v47 = vunpack.c.l.bf16 %v1635_v57  ;;  %1956 = vrcp.f32 %v1026_v21  ;;  %v1601_v61 = vunpack.c.h.bf16 %v1635_v57  ;;  %v963_v43 = vmul.f32 1.442695, %v919_v12 }
  0xa0   : > { %1958 = vpow2.f32 %v991_v45 }
  0xa1   : > { %v871_v9 = vmul.f32 %v2474_v48, %v1600_v47  ;;  %v1628_v47 = vld [vmem:[%s2110_s25 + $0xb8] sm:$0xff]   ;;  %v872_v57 = vmul.f32 %v2474_v48, %v1601_v61 }
  0xa2   : > { %1133 = vrot.lane.b32.xlu1 %v1931_v59, %s2050_s30  ;;  %v1941_v59 = vpop.eup %1940  ;;  %v1572_v45 = vunpack.c.l.bf16 %v1628_v47 }
  0xa3   : > { %v1943_v18 = vpop.eup %1942  ;;  %v1011_v8 = vadd.f32 1.0, %v1941_v59  ;;  %v2527_v56 = vadd.f32 %v2465_v0, %v871_v9  ;;  %v2534_v59 = vadd.f32 %v2465_v0, %v856_v54  ;;  %v1636_v9 = vld [vmem:[%s2110_s25 + $0xf8] sm:$0xff]   ;;  %v2545_v54 = vadd.f32 %v2465_v0, %v872_v57 }
  0xa4   : > { %v1604_v61 = vunpack.c.l.bf16 %v1636_v9 }
  0xa5   : > { %2773 = vst [vmem:[#allocation27_spill] sm:$0xff] %v2527_v56  ;;  %1960 = vrcp.f32 %v1011_v8  ;;  %2774 = vst [vmem:[#allocation28_spill] sm:$0xff] %v2534_v59  ;;  %v935_v5 = vsub.f32 0.0, %v2527_v56  ;;  %v920_v12 = vsub.f32 0.0, %v2534_v59  ;;  %v857_v56 = vmul.f32 %v2474_v48, %v1572_v45 }
  0xa6   : > { %1135 = vrot.lane.b32.xlu1 %v1935_v17, %s2050_s30  ;;  %v1945_v17 = vpop.eup %1944  ;;  %1962 = vpow2.f32 %v961_v19  ;;  %2775 = vst [vmem:[#allocation29_spill] sm:$0xff] %v2545_v54  ;;  %v936_v57 = vsub.f32 0.0, %v2545_v54 }
  0xa7   : > { %v1947_v63 = vpop.eup %1946  ;;  %v1027_v41 = vadd.f32 1.0, %v1945_v17  ;;  %v995_v19 = vmul.f32 1.442695, %v935_v5  ;;  %v965_v14 = vmul.f32 1.442695, %v920_v12  ;;  %v873_v5 = vmul.f32 %v2474_v48, %v1604_v61 }
  0xa8   : > { %v1949_v21 = vpop.eup %1948  ;;  %v997_v54 = vmul.f32 1.442695, %v936_v57 }
  0xa9   : > { %v1951_v51 = vpop.eup %1950  ;;  %1964 = vrcp.f32 %v1027_v41 }
  0xaa   : > { %1137 = vrot.lane.b32.xlu1 %v1939_v53, %s2050_s30  ;;  %v1953_v8 = vpop.eup %1952  ;;  %1966 = vpow2.f32 %v963_v43  ;;  %v2556_v43 = vadd.f32 %v2465_v0, %v857_v56  ;;  %v2566_v56 = vadd.f32 %v2465_v0, %v873_v5 }
  0xab   : > { %v1955_v33 = vpop.eup %1954 }
  0xac   : > { %v1957_v41 = vpop.eup %1956  ;;  %2776 = vst [vmem:[#allocation30_spill] sm:$0xff] %v2556_v43  ;;  %2777 = vst [vmem:[#allocation31_spill] sm:$0xff] %v2566_v56  ;;  %v937_v57 = vsub.f32 0.0, %v2566_v56 }
  0xad   : > { %v1959_v45 = vpop.eup %1958 }
  0xae   : > { %1139 = vrot.lane.b32.xlu1 %v1943_v18, %s2050_s30  ;;  %v1012_v18 = vadd.f32 1.0, %v1949_v21 }
  0xb0   : > { %v2531_v53 = vpop.permute.xlu1 %576  ;;  %1968 = vrcp.f32 %v1012_v18  ;;  %v1013_v18 = vadd.f32 1.0, %v1955_v33 }
  0xb1   : > { %1970 = vpow2.f32 %v995_v19  ;;  %v921_v19 = vsub.f32 0.0, %v2556_v43 }
  0xb2   : > { %v2539_v13 = vpop.permute.xlu0 %572  ;;  %1141 = vrot.lane.b32.xlu1 %v1947_v63, %s2050_s30  ;;  %v1028_v63 = vadd.f32 1.0, %v1951_v51  ;;  %v1573_v51 = vunpack.c.h.bf16 %v1628_v47  ;;  %v1605_v47 = vunpack.c.h.bf16 %v1636_v9 }
  0xb4   : > { %v2542_v17 = vpop.permute.xlu1 %578  ;;  %1972 = vrcp.f32 %v1028_v63  ;;  %v858_v33 = vmul.f32 %v2474_v48, %v1573_v51 }
  0xb5   : > { %1974 = vpow2.f32 %v965_v14  ;;  %v967_v14 = vmul.f32 1.442695, %v921_v19 }
  0xb6   : > { %v2549_v1 = vpop.permute.xlu0 %574  ;;  %1143 = vrot.lane.b32.xlu1 %v1953_v8, %s2050_s30  ;;  %v1961_v8 = vpop.eup %1960  ;;  %1976 = vrcp.f32 %v1013_v18  ;;  %v2579_v18 = vadd.f32 %v2465_v0, %v858_v33 }
  0xb7   : > { %v1963_v12 = vpop.eup %1962  ;;  %1978 = vpow2.f32 %v997_v54  ;;  %v999_v54 = vmul.f32 1.442695, %v937_v57  ;;  %v669_v32 = vmul.f32 %v2549_v1, %v2144_v25  ;;  %v670_v25 = vmul.f32 %v2531_v53, %v2135_v22 }
  0xb8   : > { %v2552_v21 = vpop.permute.xlu1 %582  ;;  %v1965_v63 = vpop.eup %1964  ;;  %v1014_v30 = vadd.f32 1.0, %v1963_v12  ;;  %2778 = vst [vmem:[#allocation32_spill] sm:$0xff] %v2579_v18 }
  0xb9   : > { %v1967_v43 = vpop.eup %1966 }
  0xba   : > { %v2559_v59 = vpop.permute.xlu0 %580  ;;  %1145 = vrot.lane.b32.xlu1 %v1957_v41, %s2050_s30  ;;  %v1029_v41 = vadd.f32 1.0, %v1959_v45  ;;  %v874_v45 = vmul.f32 %v2474_v48, %v1605_v47  ;;  %v1015_v56 = vadd.f32 1.0, %v1967_v43 }
  0xbc   : > { %v2562_v20 = vpop.permute.xlu1 %586  ;;  %1980 = vrcp.f32 %v1029_v41  ;;  %v922_v41 = vsub.f32 0.0, %v2579_v18  ;;  %v2589_v12 = vadd.f32 %v2465_v0, %v874_v45 }
  0xbd   : > { %v1969_v9 = vpop.eup %1968  ;;  %1982 = vpow2.f32 %v967_v14 }
  0xbe   : > { %v2568_v61 = vpop.permute.xlu0 %584  ;;  %1115 = vrot.lane.b32.xlu1 %v1961_v8, %s2050_s30  ;;  %v1971_v8 = vpop.eup %1970  ;;  %1984 = vrcp.f32 %v1014_v30  ;;  %2779 = vst [vmem:[#allocation33_spill] sm:$0xff] %v2589_v12  ;;  %v969_v57 = vmul.f32 1.442695, %v922_v41  ;;  %v938_v30 = vsub.f32 0.0, %v2589_v12 }
  0xbf   : > { %v1031_v48 = vadd.f32 1.0, %v1971_v8  ;;  %1986 = vpow2.f32 %v999_v54 }
  0xc0   : > { %v2572_v37 = vpop.permute.xlu1 %590  ;;  %1988 = vrcp.f32 %v1015_v56  ;;  %v1001_v8 = vmul.f32 1.442695, %v938_v30  ;;  %v668_v56 = vmul.f32 %v2539_v13, %v2141_v24 }
  0xc1   : > { %v1973_v33 = vpop.eup %1972  ;;  %1990 = vrcp.f32 %v1031_v48 }
  0xc2   : > { %v2575_v5 = vpop.permute.xlu0 %588  ;;  %1147 = vrot.lane.b32.xlu1 %v1965_v63, %s2050_s30  ;;  %v1975_v47 = vpop.eup %1974  ;;  %1992 = vpow2.f32 %v969_v57 }
  0xc3   : > { %v1977_v43 = vpop.eup %1976  ;;  %v1016_v0 = vadd.f32 1.0, %v1975_v47 }
  0xc4   : > { %v2582_v51 = vpop.permute.xlu1 %594  ;;  %v1979_v45 = vpop.eup %1978 }
  0xc5   : > { %1994 = vrcp.f32 %v1016_v0  ;;  %v1032_v41 = vadd.f32 1.0, %v1979_v45 }
  0xc6   : > { %v2584_v19 = vpop.permute.xlu0 %592  ;;  %1117 = vrot.lane.b32.xlu1 %v1969_v9, %s2050_s30  ;;  %1996 = vpow2.f32 %v1001_v8 }
  0xc7   : > { %1998 = vrcp.f32 %v1032_v41  ;;  %v672_v41 = vmul.f32 %v2559_v59, %v2150_v27  ;;  %v673_v27 = vmul.f32 %v2552_v21, %v2147_v26  ;;  %v676_v21 = vmul.f32 %v2575_v5, %v2175_v58 }
  0xc8   : > { %v2591_v63 = vpop.permute.xlu1 %598  ;;  %v678_v58 = vmul.f32 %v2584_v19, %v2187_v3 }
  0xc9   : > { %v1981_v54 = vpop.eup %1980 }
  0xca   : > { %v2593_v14 = vpop.permute.xlu0 %596  ;;  %1149 = vrot.lane.b32.xlu1 %v1973_v33, %s2050_s30  ;;  %v1983_v33 = vpop.eup %1982 }
  0xcb   : > { %v1985_v48 = vpop.eup %1984  ;;  %v1017_v57 = vadd.f32 1.0, %v1983_v33 }
  0xcc   : > { %v2597_v9 = vpop.permute.xlu1 %602  ;;  %v1987_v30 = vpop.eup %1986 }
  0xcd   : > { %v1989_v24 = vpop.eup %1988  ;;  %2000 = vrcp.f32 %v1017_v57  ;;  %v1033_v33 = vadd.f32 1.0, %v1987_v30 }
  0xce   : > { %1119 = vrot.lane.b32.xlu1 %v1977_v43, %s2050_s30  ;;  %v2600_v18 = vpop.permute.xlu0 %600  ;;  %v1991_v8 = vpop.eup %1990 }
  0xcf   : > { %2002 = vrcp.f32 %v1033_v33 }
  0xd0   : > { %v607_v49 = vpop.permute.xlu1 %606 }
  0xd1   : > { %v685_v0 = vmul.f32 %v607_v49, %v2215_v46 }
  0xd2   : > { %1151 = vrot.lane.b32.xlu1 %v1981_v54, %s2050_s30  ;;  %v605_v47 = vpop.permute.xlu0 %604 }
  0xd3   : > { %v684_v12 = vmul.f32 %v605_v47, %v2218_v50  ;;  %v1680_v54 = vpack.i.bf16 %v685_v0, %v669_v32  ;;  %v1993_v47 = vpop.eup %1992 }
  0xd4   : > { %v611_v43 = vpop.permute.xlu1 %610  ;;  %v1995_v49 = vpop.eup %1994  ;;  %v1018_v32 = vadd.f32 1.0, %v1993_v47 }
  0xd5   : > { %v1678_v44 = vpack.i.bf16 %v684_v12, %v668_v56  ;;  %v687_v12 = vmul.f32 %v611_v43, %v2223_v60  ;;  %v671_v56 = vmul.f32 %v2542_v17, %v2138_v23 }
  0xd6   : > { %1121 = vrot.lane.b32.xlu1 %v1985_v48, %s2050_s30  ;;  %v609_v13 = vpop.permute.xlu0 %608  ;;  %2004 = vrcp.f32 %v1018_v32 }
  0xd7   : > { %1679 = vxpose.xlu0.b32.start [1/16] (narrow) %v1678_v44, 8  ;;  %v686_v50 = vmul.f32 %v609_v13, %v2235_v15  ;;  %v1997_v15 = vpop.eup %1996  ;;  %v1684_v48 = vpack.i.bf16 %v687_v12, %v671_v56 }
  0xd8   : > { %v615_v45 = vpop.permute.xlu1 %614  ;;  %v1034_v60 = vadd.f32 1.0, %v1997_v15  ;;  %v1999_v43 = vpop.eup %1998 }
  0xd9   : > { %v1682_v44 = vpack.i.bf16 %v686_v50, %v670_v25 }
  0xda   : > { %1123 = vrot.lane.b32.xlu1 %v1989_v24, %s2050_s30  ;;  %v613_v1 = vpop.permute.xlu0 %612  ;;  %v689_v24 = vmul.f32 %v615_v45, %v2244_v34  ;;  %2006 = vrcp.f32 %v1034_v60  ;;  %v2001_v23 = vpop.eup %2000 }
  0xdb   : > { %1681 = vxpose.xlu0.b32.cont [2/16] (narrow) %v1680_v54, 8  ;;  %v688_v53 = vmul.f32 %v613_v1, %v2266_v4  ;;  %v674_v4 = vmul.f32 %v2568_v61, %v2156_v29  ;;  %v675_v29 = vmul.f32 %v2562_v20, %v2153_v28  ;;  %v677_v28 = vmul.f32 %v2572_v37, %v2172_v55 }
  0xdc   : > { %v619_v46 = vpop.permute.xlu1 %618  ;;  %v1688_v13 = vpack.i.bf16 %v689_v24, %v673_v27  ;;  %v680_v55 = vmul.f32 %v2593_v14, %v2194_v7 }
  0xdd   : > { %v1686_v57 = vpack.i.bf16 %v688_v53, %v672_v41  ;;  %v691_v50 = vmul.f32 %v619_v46, %v2248_v42 }
  0xde   : > { %1155 = vrot.lane.b32.xlu1 %v1991_v8, %s2050_s30  ;;  %v617_v0 = vpop.permute.xlu0 %616  ;;  %v2003_v8 = vpop.eup %2002 }
  0xdf   : > { %1683 = vxpose.xlu0.b32.cont [3/16] (narrow) %v1682_v44, 8  ;;  %v690_v17 = vmul.f32 %v617_v0, %v2290_v40  ;;  %v1692_v33 = vpack.i.bf16 %v691_v50, %v675_v29 }
  0xe0   : > { %v623_v22 = vpop.permute.xlu1 %622 }
  0xe1   : > { %v1690_v54 = vpack.i.bf16 %v690_v17, %v674_v4  ;;  %v693_v1 = vmul.f32 %v623_v22, %v2259_v62  ;;  %v679_v62 = vmul.f32 %v2582_v51, %v2184_v2  ;;  %v682_v2 = vmul.f32 %v2600_v18, %v2209_v38  ;;  %v2780_v38 = vld [vmem:[#allocation10_spill] sm:$0xff] }
  0xe2   : > { %1125 = vrot.lane.b32.xlu1 %v1995_v49, %s2050_s30  ;;  %v621_v45 = vpop.permute.xlu0 %620 }
  0xe3   : > { %1685 = vxpose.xlu0.b32.cont [4/16] (narrow) %v1684_v48, 8  ;;  %v2005_v26 = vpop.eup %2004  ;;  %v692_v61 = vmul.f32 %v621_v45, %v2306_v11  ;;  %v1696_v5 = vpack.i.bf16 %v693_v1, %v677_v28  ;;  %v683_v48 = vmul.f32 %v2597_v9, %v2205_v35  ;;  %v2784_v35 = vld [vmem:[#allocation13_spill] sm:$0xff]  ;;  %v2791_v1 = vld [vmem:[#allocation7_spill] sm:$0xff] }
  0xe4   : > { %v627_v30 = vpop.permute.xlu1 %626  ;;  %v2787_v45 = vld [vmem:[#allocation5_spill] sm:$0xff] }
  0xe5   : > { %v1694_v25 = vpack.i.bf16 %v692_v61, %v676_v21  ;;  %v695_v32 = vmul.f32 %v627_v30, %v2283_v36  ;;  %v681_v36 = vmul.f32 %v2591_v63, %v2191_v6  ;;  %v2782_v30 = vld [vmem:[#allocation11_spill] sm:$0xff]  ;;  %v2789_v61 = vld [vmem:[#allocation6_spill] sm:$0xff] }
  0xe6   : > { %1157 = vrot.lane.b32.xlu1 %v1999_v43, %s2050_s30  ;;  %v2781_v43 = vld [vmem:[#allocation2_spill] sm:$0xff]  ;;  %v2788_v21 = vld [vmem:[#allocation15_spill] sm:$0xff] }
  0xe7   : > { %1687 = vxpose.xlu0.b32.cont [5/16] (narrow) %v1686_v57, 8  ;;  %v2007_v47 = vpop.eup %2006  ;;  %v1700_v19 = vpack.i.bf16 %v695_v32, %v679_v62  ;;  %v2794_v62 = vld [vmem:[#allocation18_spill] sm:$0xff] }
  0xe8   : > { %v631_v59 = vpop.permute.xlu1 %630 }
  0xe9   : > { %v697_v41 = vmul.f32 %v631_v59, %v2287_v39  ;;  %v2785_v59 = vld [vmem:[#allocation4_spill] sm:$0xff] }
  0xea   : > { %1127 = vrot.lane.b32.xlu1 %v2001_v23, %s2050_s30  ;;  %v2783_v23 = vld [vmem:[#allocation3_spill] sm:$0xff] }
  0xeb   : > { %1689 = vxpose.xlu0.b32.cont [6/16] (narrow) %v1688_v13, 8  ;;  %v1704_v14 = vpack.i.bf16 %v697_v41, %v681_v36 }
  0xec   : > { %v635_v34 = vpop.permute.xlu1 %634 }
  0xed   : > { %v699_v53 = vmul.f32 %v635_v34, %v2303_v10 }
  0xee   : > { %1159 = vrot.lane.b32.xlu1 %v2003_v8, %s2050_s30  ;;  %v625_v46 = vpop.permute.xlu0 %624 }
  0xef   : > { %1691 = vxpose.xlu0.b32.cont [7/16] (narrow) %v1690_v54, 8  ;;  %v694_v20 = vmul.f32 %v625_v46, %v2339_v16  ;;  %v1708_v60 = vpack.i.bf16 %v699_v53, %v683_v48  ;;  %v2786_v54 = vld [vmem:[#allocation14_spill] sm:$0xff] }
  0xf0   : > { %v1100_v40 = vpop.permute.xlu1 %1099 }
  0xf1   : > { %v1698_v49 = vpack.i.bf16 %v694_v20, %v678_v58  ;;  %v1195_v57 = vmul.f32 %v1100_v40, %v2781_v43  ;;  %v2792_v20 = vld [vmem:[#allocation17_spill] sm:$0xff] }
  0xf2   : > { %1129 = vrot.lane.b32.xlu1 %v2005_v26, %s2050_s30  ;;  %v629_v44 = vpop.permute.xlu0 %628 }
  0xf3   : > { %1693 = vxpose.xlu0.b32.cont [8/16] (narrow) %v1692_v33, 8  ;;  %v696_v3 = vmul.f32 %v629_v44, %v2347_v52 }
  0xf4   : > { %v1102_v42 = vpop.permute.xlu1 %1101 }
  0xf5   : > { %v1702_v15 = vpack.i.bf16 %v696_v3, %v680_v55  ;;  %v1196_v27 = vmul.f32 %v1102_v42, %v2783_v23  ;;  %v2790_v42 = vld [vmem:[#allocation16_spill] sm:$0xff] }
  0xf6   : > { %1161 = vrot.lane.b32.xlu1 %v2007_v47, %s2050_s30  ;;  %v633_v56 = vpop.permute.xlu0 %632 }
  0xf7   : > { %1695 = vxpose.xlu0.b32.cont [9/16] (narrow) %v1694_v25, 8  ;;  %v698_v7 = vmul.f32 %v633_v56, %v2362_v31  ;;  %v2796_v56 = vld [vmem:[#allocation20_spill] sm:$0xff] }
  0xf8   : > { %v1104_v11 = vpop.permute.xlu1 %1103 }
  0xf9   : > { %v1706_v22 = vpack.i.bf16 %v698_v7, %v682_v2  ;;  %v1197_v17 = vmul.f32 %v1104_v11, %v2785_v59 }
  0xfb   : > { %1697 = vxpose.xlu0.b32.cont [10/16] (narrow) %v1696_v5, 8 }
  0xfc   : > { %v1106_v12 = vpop.permute.xlu1 %1105 }
  0xfd   : > { %v1198_v50 = vmul.f32 %v1106_v12, %v2787_v45 }
  0xff   : > { %1699 = vxpose.xlu0.b32.cont [11/16] (narrow) %v1698_v49, 8  ;;  %v2793_v49 = vld [vmem:[#allocation8_spill] sm:$0xff] }
 0x100   : > { %v1108_v37 = vpop.permute.xlu1 %1107 }
 0x101   : > { %v1199_v33 = vmul.f32 %v1108_v37, %v2789_v61  ;;  %v2795_v37 = vld [vmem:[#allocation9_spill] sm:$0xff] }
 0x103   : > { %1701 = vxpose.xlu0.b32.cont [12/16] (narrow) %v1700_v19, 8 }
 0x104   : > { %v1110_v16 = vpop.permute.xlu1 %1109 }
 0x105   : > { %v1200_v28 = vmul.f32 %v1110_v16, %v2791_v1  ;;  %v2797_v16 = vld [vmem:[#allocation19_spill] sm:$0xff] }
 0x107   : > { %1703 = vxpose.xlu0.b32.cont [13/16] (narrow) %v1702_v15, 8 }
 0x108   : > { %v1112_v51 = vpop.permute.xlu1 %1111 }
 0x109   : > { %v1201_v12 = vmul.f32 %v1112_v51, %v2793_v49  ;;  %v2799_v51 = vld [vmem:[#allocation21_spill] sm:$0xff] }
 0x10a   : > { %v2811_v49 = vld [vmem:[#allocation33_spill] sm:$0xff] }
 0x10b   : > { %1705 = vxpose.xlu0.b32.cont [14/16] (narrow) %v1704_v14, 8  ;;  %v2798_v14 = vld [vmem:[#allocation22_spill] sm:$0xff] }
 0x10c   : > { %v1114_v52 = vpop.permute.xlu1 %1113 }
 0x10d   : > { %v1202_v3 = vmul.f32 %v1114_v52, %v2795_v37 }
 0x10f   : > { %1707 = vxpose.xlu0.b32.cont [15/16] (narrow) %v1706_v22, 8 }
 0x110   : > { %v1132_v39 = vpop.permute.xlu1 %1131 }
 0x111   : > { %v1211_v18 = vmul.f32 %v1132_v39, %v2780_v38  ;;  %v2801_v38 = vld [vmem:[#allocation24_spill] sm:$0xff] }
 0x113   : > { %1709 = vxpose.xlu0.b32.end [16/16] (narrow) %v1708_v60, 8  ;;  %v1715_v24 = vpack.i.bf16 %v1211_v18, %v1195_v57  ;;  %v1154_v60 = vpop.permute.xlu0 %1153  ;;  %v2802_v57 = vld [vmem:[#allocation12_spill] sm:$0xff] }
 0x114   : > { %v1134_v6 = vpop.permute.xlu1 %1133 }
 0x115   : > { %v1212_v0 = vmul.f32 %v1134_v6, %v2782_v30  ;;  %v2800_v6 = vld [vmem:[#allocation23_spill] sm:$0xff] }
 0x117   : > { %v1717_v4 = vpack.i.bf16 %v1212_v0, %v1196_v27  ;;  %v2803_v0 = vld [vmem:[#allocation25_spill] sm:$0xff] }
 0x118   : > { %v1136_v63 = vpop.permute.xlu1 %1135 }
 0x119   : > { %v1213_v9 = vmul.f32 %v1136_v63, %v2784_v35 }
 0x11b   : > { %v1719_v8 = vpack.i.bf16 %v1213_v9, %v1197_v17  ;;  %v2805_v9 = vld [vmem:[#allocation27_spill] sm:$0xff] }
 0x11c   : > { %v1138_v31 = vpop.permute.xlu1 %1137 }
 0x11d   : > { %v1214_v34 = vmul.f32 %v1138_v31, %v2786_v54  ;;  %v1222_v31 = vmul.f32 %v1154_v60, %v2802_v57 }
 0x11f   : > { %1716 = vxpose.xlu1.b32.start [1/16] (narrow) %v1715_v24, 8  ;;  %v1721_v29 = vpack.i.bf16 %v1214_v34, %v1198_v50 }
 0x120   : > { %v1140_v10 = vpop.permute.xlu1 %1139 }
 0x121   : > { %v1215_v40 = vmul.f32 %v1140_v10, %v2788_v21  ;;  %v2807_v21 = vld [vmem:[#allocation29_spill] sm:$0xff] }
 0x123   : > { %1718 = vxpose.xlu1.b32.cont [2/16] (narrow) %v1717_v4, 8  ;;  %v1723_v25 = vpack.i.bf16 %v1215_v40, %v1199_v33  ;;  %v2804_v4 = vld [vmem:[#allocation26_spill] sm:$0xff] }
 0x124   : > { %v1142_v13 = vpop.permute.xlu1 %1141 }
 0x125   : > { %v1216_v46 = vmul.f32 %v1142_v13, %v2790_v42 }
 0x127   : > { %1720 = vxpose.xlu1.b32.cont [3/16] (narrow) %v1719_v8, 8  ;;  %v1725_v11 = vpack.i.bf16 %v1216_v46, %v1200_v28  ;;  %v2809_v46 = vld [vmem:[#allocation31_spill] sm:$0xff] }
 0x128   : > { %v1144_v26 = vpop.permute.xlu1 %1143 }
 0x129   : > { %v1217_v5 = vmul.f32 %v1144_v26, %v2792_v20  ;;  %v2806_v26 = vld [vmem:[#allocation28_spill] sm:$0xff] }
 0x12a   : > { %v2810_v20 = vld [vmem:[#allocation32_spill] sm:$0xff] }
 0x12b   : > { %1722 = vxpose.xlu1.b32.cont [4/16] (narrow) %v1721_v29, 8  ;;  %v1727_v32 = vpack.i.bf16 %v1217_v5, %v1201_v12 }
 0x12c   : > { %v1146_v47 = vpop.permute.xlu1 %1145 }
 0x12d   : > { %v1218_v55 = vmul.f32 %v1146_v47, %v2794_v62 }
 0x12f   : > { %1724 = vxpose.xlu1.b32.cont [5/16] (narrow) %v1723_v25, 8  ;;  %v1729_v15 = vpack.i.bf16 %v1218_v55, %v1202_v3  ;;  %v2808_v25 = vld [vmem:[#allocation30_spill] sm:$0xff] }
 0x130   : > { %v1116_v58 = vpop.permute.xlu1 %1115 }
 0x131   : > { %v1203_v36 = vmul.f32 %v1116_v58, %v2797_v16 }
 0x133   : > { %1726 = vxpose.xlu1.b32.cont [6/16] (narrow) %v1725_v11, 8 }
 0x134   : > { %v1148_v44 = vpop.permute.xlu1 %1147 }
 0x135   : > { %v1219_v41 = vmul.f32 %v1148_v44, %v2796_v56 }
 0x137   : > { %1728 = vxpose.xlu1.b32.cont [7/16] (narrow) %v1727_v32, 8  ;;  %v1731_v7 = vpack.i.bf16 %v1219_v41, %v1203_v36 }
 0x138   : > { %v1118_v19 = vpop.permute.xlu1 %1117 }
 0x139   : > { %v1204_v53 = vmul.f32 %v1118_v19, %v2799_v51 }
 0x13b   : > { %1730 = vxpose.xlu1.b32.cont [8/16] (narrow) %v1729_v15, 8 }
 0x13c   : > { %v1150_v2 = vpop.permute.xlu1 %1149 }
 0x13d   : > { %v1220_v22 = vmul.f32 %v1150_v2, %v2798_v14 }
 0x13f   : > { %1732 = vxpose.xlu1.b32.cont [9/16] (narrow) %v1731_v7, 8  ;;  %v1733_v39 = vpack.i.bf16 %v1220_v22, %v1204_v53 }
 0x140   : > { %v1120_v48 = vpop.permute.xlu1 %1119 }
 0x141   : > { %v1205_v63 = vmul.f32 %v1120_v48, %v2800_v6 }
 0x143   : > { %1734 = vxpose.xlu1.b32.cont [10/16] (narrow) %v1733_v39, 8 }
 0x144   : > { %v1152_v52 = vpop.permute.xlu1 %1151 }
 0x145   : > { %v1221_v18 = vmul.f32 %v1152_v52, %v2801_v38 }
 0x147   : > { %v1735_v43 = vpack.i.bf16 %v1221_v18, %v1205_v63 }
 0x148   : > { %v1122_v30 = vpop.permute.xlu1 %1121 }
 0x149   : > { %v1206_v24 = vmul.f32 %v1122_v30, %v2803_v0  ;;  %1736 = vxpose.xlu1.b32.cont [11/16] (narrow) %v1735_v43, 8 }
 0x14b   : > { %v1737_v23 = vpack.i.bf16 %v1222_v31, %v1206_v24 }
 0x14c   : > { %v1124_v27 = vpop.permute.xlu1 %1123 }
 0x14d   : > { %1738 = vxpose.xlu1.b32.cont [12/16] (narrow) %v1737_v23, 8  ;;  %v1207_v35 = vmul.f32 %v1124_v27, %v2804_v4 }
 0x150   : > { %v1156_v10 = vpop.permute.xlu1 %1155 }
 0x151   : > { %v1223_v59 = vmul.f32 %v1156_v10, %v2805_v9 }
 0x153   : > { %v1739_v17 = vpack.i.bf16 %v1223_v59, %v1207_v35  ;;  %v1710_v8 = vpop.trf.xlu0 }
 0x154   : > { %v1126_v13 = vpop.permute.xlu1 %1125  ;;  %v1714_v54 = vunpack.i.h.bf16 %v1710_v8  ;;  %v1711_v34 = vunpack.i.l.bf16 %v1710_v8 }
 0x155   : > { %1740 = vxpose.xlu1.b32.cont [13/16] (narrow) %v1739_v17, 8  ;;  %v1208_v29 = vmul.f32 %v1126_v13, %v2806_v26 }
 0x156   : > { %v1439_v50 = vpack.c.bf16 %v1714_v54, %v1711_v34 }
 0x158   : > { %v1158_v45 = vpop.permute.xlu1 %1157  ;;  %1440 = vst.sshfl [vmem:[%s237_s21] sm:$0x33 pattern:$0x76325410] %v1439_v50 }
 0x159   : > { %v1224_v40 = vmul.f32 %v1158_v45, %v2807_v21 }
 0x15b   : > { %v1741_v61 = vpack.i.bf16 %v1224_v40, %v1208_v29 }
 0x15c   : > { %v1128_v33 = vpop.permute.xlu1 %1127 }
 0x15d   : > { %1742 = vxpose.xlu1.b32.cont [14/16] (narrow) %v1741_v61, 8  ;;  %v1209_v42 = vmul.f32 %v1128_v33, %v2808_v25 }
 0x160   : > { %v1160_v47 = vpop.permute.xlu1 %1159 }
 0x161   : > { %v1225_v1 = vmul.f32 %v1160_v47, %v2809_v46 }
 0x163   : > { %v1743_v28 = vpack.i.bf16 %v1225_v1, %v1209_v42 }
 0x164   : > { %v1130_v58 = vpop.permute.xlu1 %1129 }
 0x165   : > { %1744 = vxpose.xlu1.b32.cont [15/16] (narrow) %v1743_v28, 8  ;;  %v1210_v5 = vmul.f32 %v1130_v58, %v2810_v20 }
 0x168   : > { %v1162_v11 = vpop.permute.xlu1 %1161 }
 0x169   : > { %v1226_v12 = vmul.f32 %v1162_v11, %v2811_v49 }
 0x16b   : > { %v1745_v44 = vpack.i.bf16 %v1226_v12, %v1210_v5 }
 0x16d   : > { %1746 = vxpose.xlu1.b32.end [16/16] (narrow) %v1745_v44, 8 }
 0x1ad   : > { %v1747_v32 = vpop.trf.xlu1 }
 0x1ae   : > { %v1751_v62 = vunpack.i.h.bf16 %v1747_v32  ;;  %v1748_v55 = vunpack.i.l.bf16 %v1747_v32 }
 0x1b0   : > { %v1473_v37 = vpack.c.bf16 %v1751_v62, %v1748_v55 }
 0x1b2   : > { %1477 = vst.sshfl [vmem:[%s237_s21 + $0x4] sm:$0x33 pattern:$0x76325410] %v1473_v37 }
 0x1b3 PF: > { %s13_s16 = sadd.s32 1, %s2048_s16   ;;  %s2812_s12 = smov %s2040_s14 }
 0x1b4   : > { %p10_p7 = scmp.ge.s32.totalorder %s13_s16, 6   ;;  %s2813_s13 = smov %s2044_s15 }
 0x1b5   : > { %s2814_s14 = smov %s2817_s17  ;;  %s2815_s15 = smov %s2821_s18 }
 0x1b6   :  { %12 = sbr.rel (!%p10_p7) target bundleno = 3 (0x3), region = 64 }

// kernel: upsample_forward.2
= control target key start
LH: loop header
LB: loop body
LE: loop exit
PB: predicated region body
PF: predicated region fallthrough
CT: control target
= control target key end

     0   :  { %s3502_s12 = smov 0   ;;  %s3504_s13 = smov 0   ;;  %s4443_s0 = inlined_call_operand.vmem [shape: bf16[2,1,18,18,4], index: 0, kind: input, shape index: {}]   ;;  %s4444_s1 = inlined_call_operand.vmem [shape: bf16[4,16,8], index: 1, kind: input, shape index: {}]   ;;  %s4445_s2 = inlined_call_operand.vmem [shape: bf16[2,1,2,2,256,8], index: 2, kind: output, shape index: {0}]   ;;  %s4446_s3 = inlined_call_operand.vmem [shape: f32[2,1,2,2,8], index: 3, kind: output, shape index: {1}]  }
   0x1   :  { %s3506_s14 = smov 0   ;;  %s3508_s15 = smov 0  }
   0x2   :  { %s3510_s16 = smov 0  }
   0x3 LB: > { %s26_s17 = sadd.s32 1, %s3469_s14  ;;  %s33_s18 = sadd.s32 1, %s3473_s15  ;;  %s3477_s16 = sphi %s3510_s16, %s14_s16   ;;  %s3473_s15 = sphi %s3508_s15, %s4450_s15   ;;  %s3469_s14 = sphi %s3506_s14, %s4449_s14   ;;  %s3465_s13 = sphi %s3504_s13, %s4448_s13   ;;  %s3461_s12 = sphi %s3502_s12, %s4447_s12  }
   0x4   : > { %p27_p0 = scmp.ge.s32.totalorder %s26_s17, 2  ;;  %p2900_p1 = scmp.ge.s32.totalorder %s3477_s16, 1 }
   0x5   : > { %p173_p2 = scmp.lt.s32.totalorder %s3477_s16, 5 }
   0x6   : > { %s4452_s17 = smov (%p27_p0, %s26_s17), 0  ;;  %s4454_s18 = smov (!%p27_p0, %s33_s18), %s3473_s15 }
   0x7   : > { %p174_p3 = pnand %p2900_p1, %p173_p2  ;;  %p35_p4 = scmp.ge.s32.totalorder %s4454_s18, 2 }
   0x8   : > { %p221_p5 = scmp.lt.s32.totalorder (!%p174_p3), %s3465_s13, 1  ;;  %s3159_s19 = smul.u32 (!%p174_p3), 12, %s3461_s12 }
   0x9   : > { %s4456_s18 = smov (%p35_p4, %s4454_s18), 0  ;;  %177 = sbr.rel (%p174_p3) target bundleno = 558 (0x22e), region = 28 }
   0xa   : > { %s3479_s25 = smov (!%p174_p3), 8   ;;  %s3480_s26 = smov (!%p174_p3), 4  }
   0xb   : > { %s3481_s27 = smov (!%p174_p3), 12   ;;  %s3161_s28 = sshll.u32 (!%p174_p3), %s3461_s12, 4 }
   0xc   : > { %s1198_s4 = scalar_lea.vmem (!%p174_p3), %s4444_s1, %s3161_s28  ;;  %p234_p6 = scmp.lt.s32.totalorder (!%p174_p3), %s3461_s12, 1 }
   0xe   : > { %s4458_s13 = smov (!%p221_p5, %s3465_s13), 1  ;;  %vm487_vm0 = vsmask.f32 7424  ;;  %vm1096_vm1 = vcmask 31744   ;;  %vm1129_vm2 = vcmask 64512   ;;  %vm1162_vm3 = vcmask 97280  }
   0xf   : > { %s3329_s20 = smul.u32 216, %s4458_s13  ;;  %vm1207_vm4 = vcmask 130048   ;;  %s4460_s12 = smov (!%p234_p6, %s3461_s12), 1  ;;  %vm1529_vm5 = vcmask 60416   ;;  %vm2704_vm6 = vcmask 1040384   ;;  %vm2706_vm7 = vcmask 58368  }
  0x10   : > { %s2902_s5 = sshll.u32 %s4460_s12, 6  ;;  %s2903_s6 = sshll.u32 %s4458_s13, 7 }
  0x11   : > { %s229_s23 = scalar_lea.vmem %s4443_s0, %s3329_s20  ;;  %s240_s7 = sadd.s32 %s2903_s6, %s2902_s5 }
  0x12   : > { %s3541_s24 = scalar_lea.vmem %s229_s23, %s3159_s19  ;;  %s2904_s8 = sshll.u32 %s240_s7, 2 }
  0x13   : > { %v3373_v0 = vld [vmem:[%s3541_s24 + $0xc] sm:$0xff]   ;;  %v3545_v1 = vld [vmem:[%s3541_s24 + $0x14] ss:$0 sps:$4 sm:$0x11]   ;;  %v3375_v2 = vld [vmem:[%s3541_s24 + $0x18] sm:$0xff]   ;;  %s4093_s11 = scalar_lea.vmem %s4445_s2, %s2904_s8  ;;  %s2905_s19 = sshll.u32 %s4458_s13, 1 }
  0x14   : > { %792 = vrot.lane.b32.xlu1 %v3373_v0, %s3479_s25  ;;  %v3550_v3 = vld [vmem:[%s3541_s24] sm:$0xff]   ;;  %1798 = vrot.lane.b32.xlu0 %v3545_v1, %s3479_s25  ;;  %v3555_v4 = vld [vmem:[%s3541_s24 + $0xc] sm:$0xff]   ;;  %v875_v5 = vshll.u32 %v3373_v0, 16  ;;  %v887_v13 = vshll.u32 %v3375_v2, 16  ;;  %v873_v18 = vshrl.u32 %v3373_v0, 16  ;;  %v880_v22 = vshll.u32 %v3545_v1, 16  ;;  %s252_s20 = sadd.s32 %s2905_s19, %s4460_s12 }
  0x15   : > { %v3558_v6 = vld [vmem:[%s3541_s24 + $0x8] ss:$0 sps:$4 sm:$0x11]   ;;  %v489_v7 = vshrl.u32 %v3550_v3, 16  ;;  %v491_v8 = vshll.u32 %v3550_v3, 16  ;;  %v501_v11 = vshrl.u32 %v3555_v4, 16 }
  0x16   : > { %v496_v9 = vshll.u32 %v3558_v6, 16  ;;  %v1734_v10 = vshrl.u32 %v3558_v6, 16  ;;  %v503_v12 = vshll.u32 %v3555_v4, 16  ;;  %v3568_v15 = vld [vmem:[%s3541_s24 + $0x14] ss:$0 sps:$4 sm:$0x11]  }
  0x17   : > { %v493_v14 = vrot.slane %v491_v8, 1  ;;  %v877_v19 = vrot.slane %v875_v5, 1  ;;  %v508_v21 = vshll.u32 %v3568_v15, 16  ;;  %v3380_v23 = vld [vmem:[%s3541_s24 + $0x20] ss:$0 sps:$4 sm:$0x11]  }
  0x18   : > { %794 = vrot.lane.b32.xlu1 %v3375_v2, %s3479_s25  ;;  %v498_v16 = vrot.slane %v496_v9, 1  ;;  %v505_v17 = vrot.slane %v503_v12, 1  ;;  %v3574_v24 = vld [vmem:[%s3541_s24 + $0x24] sm:$0xff]   ;;  %v1736_v26 = vshrl.u32 %v3568_v15, 16  ;;  %v885_v29 = vshrl.u32 %v3375_v2, 16  ;;  %v3585_v33 = vld [vmem:[%s3541_s24 + $0x18] sm:$0xff]  }
  0x19   : > { %v494_v20 = vor.u32 %v493_v14, %v489_v7  ;;  %v510_v28 = vrot.slane %v508_v21, 1  ;;  %v889_v30 = vrot.slane %v887_v13, 1  ;;  %v3581_v31 = vld [vmem:[%s3541_s24 + $0x2c] ss:$0 sps:$4 sm:$0x11]   ;;  %v527_v32 = vshll.u32 %v3574_v24, 16 }
  0x1a   : > { %v506_v25 = vor.u32 %v505_v17, %v501_v11  ;;  %v878_v35 = vor.u32 %v877_v19, %v873_v18  ;;  %v882_v36 = vrot.slane %v880_v22, 1  ;;  %v892_v37 = vshll.u32 %v3380_v23, 16  ;;  %v3592_v41 = vld [vmem:[%s3541_s24 + $0x20] ss:$0 sps:$4 sm:$0x11]   ;;  %v3386_v52 = vld [vmem:[%s3541_s24 + $0x24] sm:$0xff]  }
  0x1b   : > { %v499_v27 = vsel %vm487_vm0, %v494_v20, %v498_v16  ;;  %v525_v38 = vshrl.u32 %v3574_v24, 16  ;;  %v529_v39 = vrot.slane %v527_v32, 1  ;;  %v532_v40 = vshll.u32 %v3581_v31, 16  ;;  %v3387_v59 = vld [vmem:[%s3541_s24 + $0x2c] ss:$0 sps:$4 sm:$0x11]  }
  0x1c   : > { %1766 = vrot.lane.b32.xlu1 %v1734_v10, %s3480_s26  ;;  %680 = vrot.lane.b32.xlu0 %v499_v27, %s3480_s26  ;;  %v511_v34 = vsel %vm487_vm0, %v506_v25, %v510_v28  ;;  %v515_v42 = vshll.u32 %v3585_v33, 16  ;;  %v883_v43 = vsel %vm487_vm0, %v878_v35, %v882_v36  ;;  %v890_v44 = vor.u32 %v889_v30, %v885_v29  ;;  %v3385_v60 = vld [vmem:[%s3541_s24 + $0x30] sm:$0xff]   ;;  %v3388_v5 = vld [vmem:[%s3541_s24 + $0x38] ss:$0 sps:$4 sm:$0x11]   ;;  %s2906_s21 = sshll.u32 %s252_s20, 1 }
  0x1d   : > { %v894_v45 = vrot.slane %v892_v37, 1  ;;  %v1832_v46 = vshrl.u32 %v3380_v23, 16  ;;  %v530_v47 = vor.u32 %v529_v39, %v525_v38  ;;  %v534_v48 = vrot.slane %v532_v40, 1  ;;  %v3616_v7 = vld [vmem:[%s3541_s24 + $0x3c] sm:$0xff]   ;;  %v3628_v20 = vld [vmem:[%s3541_s24 + $0x30] sm:$0xff]  }
  0x1e   : > { %v513_v49 = vshrl.u32 %v3585_v33, 16  ;;  %v517_v50 = vrot.slane %v515_v42, 1  ;;  %v520_v51 = vshll.u32 %v3592_v41, 16  ;;  %v1830_v55 = vshrl.u32 %v3545_v1, 16 }
  0x1f   : > { %v895_v53 = vsel %vm487_vm0, %v890_v44, %v894_v45  ;;  %v535_v54 = vsel %vm487_vm0, %v530_v47, %v534_v48  ;;  %v899_v56 = vshll.u32 %v3386_v52, 16  ;;  %v911_v61 = vshll.u32 %v3385_v60, 16  ;;  %v3620_v13 = vld [vmem:[%s3541_s24 + $0x44] ss:$0 sps:$4 sm:$0x11]   ;;  %v3393_v44 = vld [vmem:[%s3541_s24 + $0x48] sm:$0xff]  }
  0x20   : > { %1768 = vrot.lane.b32.xlu1 %v1736_v26, %s3480_s26  ;;  %682 = vrot.lane.b32.xlu0 %v511_v34, %s3480_s26  ;;  %v518_v57 = vor.u32 %v517_v50, %v513_v49  ;;  %v522_v58 = vrot.slane %v520_v51, 1  ;;  %v897_v63 = vshrl.u32 %v3386_v52, 16  ;;  %v904_v2 = vshll.u32 %v3387_v59, 16  ;;  %v3636_v26 = vld [vmem:[%s3541_s24 + $0x38] ss:$0 sps:$4 sm:$0x11]  }
  0x21   : > { %v901_v0 = vrot.slane %v899_v56, 1  ;;  %v1738_v1 = vshrl.u32 %v3592_v41, 16  ;;  %v909_v8 = vshrl.u32 %v3385_v60, 16  ;;  %v913_v11 = vrot.slane %v911_v61, 1  ;;  %v3394_v34 = vld [vmem:[%s3541_s24 + $0x3c] sm:$0xff]  }
  0x22   : > { %v523_v62 = vsel %vm487_vm0, %v518_v57, %v522_v58  ;;  %v906_v10 = vrot.slane %v904_v2, 1  ;;  %v916_v12 = vshll.u32 %v3388_v5, 16  ;;  %v1740_v14 = vshrl.u32 %v3581_v31, 16  ;;  %v3647_v38 = vld [vmem:[%s3541_s24 + $0x44] ss:$0 sps:$4 sm:$0x11]  }
  0x23   : > { %v902_v9 = vor.u32 %v901_v0, %v897_v63  ;;  %v551_v16 = vshll.u32 %v3616_v7, 16  ;;  %v914_v18 = vor.u32 %v913_v11, %v909_v8  ;;  %v549_v21 = vshrl.u32 %v3616_v7, 16  ;;  %v3396_v49 = vld [vmem:[%s3541_s24 + $0x50] ss:$0 sps:$4 sm:$0x11]   ;;  %v3672_v0 = vld [vmem:[%s3541_s24 + $0x48] sm:$0xff]  }
  0x24   : > { %1800 = vrot.lane.b32.xlu1 %v3380_v23, %s3479_s25  ;;  %1064 = vrot.lane.b32.xlu0 %v883_v43, %s3481_s27  ;;  %v918_v19 = vrot.slane %v916_v12, 1  ;;  %v556_v23 = vshll.u32 %v3620_v13, 16  ;;  %v539_v27 = vshll.u32 %v3628_v20, 16  ;;  %v1836_v28 = vshrl.u32 %v3388_v5, 16  ;;  %v3419_v2 = vld [vmem:[%s1198_s4] sm:$0xff]   ;;  %v3422_v12 = vld [vmem:[%s1198_s4 + $0x8] sm:$0xff]  }
  0x25   : > { %v907_v17 = vsel %vm487_vm0, %v902_v9, %v906_v10  ;;  %v553_v22 = vrot.slane %v551_v16, 1  ;;  %v537_v32 = vshrl.u32 %v3628_v20, 16  ;;  %v544_v36 = vshll.u32 %v3636_v26, 16  ;;  %v3682_v9 = vld [vmem:[%s3541_s24 + $0x50] ss:$0 sps:$4 sm:$0x11]   ;;  %3261 = vmatprep.subr.bf16.mxu0 %v3419_v2  ;;  %3295 = vmatprep.subr.bf16.mxu1 %v3422_v12 }
  0x26   : > { %v919_v25 = vsel %vm487_vm0, %v914_v18, %v918_v19  ;;  %v558_v30 = vrot.slane %v556_v23, 1  ;;  %v541_v35 = vrot.slane %v539_v27, 1  ;;  %v1834_v39 = vshrl.u32 %v3387_v59, 16  ;;  %3262 = vmatpush3.bf16.msra.mxu0 %v3419_v2  ;;  %v3402_v19 = vld [vmem:[%s3541_s24 + $0x54] sm:$0xff]   ;;  %3296 = vmatpush3.bf16.msra.mxu1 %v3422_v12  ;;  %v3401_v27 = vld [vmem:[%s3541_s24 + $0x60] sm:$0xff]  }
  0x27   : > { %v554_v29 = vor.u32 %v553_v22, %v549_v21  ;;  %v923_v40 = vshll.u32 %v3394_v34, 16  ;;  %v546_v43 = vrot.slane %v544_v36, 1  ;;  %v935_v45 = vshll.u32 %v3393_v44, 16  ;;  %v3404_v36 = vld [vmem:[%s3541_s24 + $0x68] ss:$0 sps:$4 sm:$0x11]  }
  0x28   : > { %1864 = vrot.lane.b32.xlu1 %v1832_v46, %s3481_s27  ;;  %1066 = vrot.lane.b32.xlu0 %v895_v53, %s3481_s27  ;;  %v542_v42 = vor.u32 %v541_v35, %v537_v32  ;;  %v921_v46 = vshrl.u32 %v3394_v34, 16  ;;  %v928_v48 = vshll.u32 %v3647_v38, 16  ;;  %v1742_v51 = vshrl.u32 %v3636_v26, 16 }
  0x29   : > { %v559_v37 = vsel %vm487_vm0, %v554_v29, %v558_v30  ;;  %v925_v47 = vrot.slane %v923_v40, 1  ;;  %v933_v53 = vshrl.u32 %v3393_v44, 16  ;;  %v937_v56 = vrot.slane %v935_v45, 1 }
  0x2a   : > { %v547_v50 = vsel %vm487_vm0, %v542_v42, %v546_v43  ;;  %v940_v57 = vshll.u32 %v3396_v49, 16  ;;  %v1744_v58 = vshrl.u32 %v3620_v13, 16  ;;  %v563_v11 = vshll.u32 %v3672_v0, 16  ;;  %v3705_v42 = vld [vmem:[%s3541_s24 + $0x6c] sm:$0xff]  }
  0x2b   : > { %v561_v18 = vshrl.u32 %v3672_v0, 16  ;;  %v568_v22 = vshll.u32 %v3682_v9, 16  ;;  %v1838_v23 = vshrl.u32 %v3647_v38, 16  ;;  %v947_v32 = vshll.u32 %v3402_v19, 16 }
  0x2c   : > { %686 = vrot.lane.b32.xlu1 %v535_v54, %s3480_s26  ;;  %1862 = vrot.lane.b32.xlu0 %v1830_v55, %s3481_s27  ;;  %v926_v54 = vor.u32 %v925_v47, %v921_v46  ;;  %v930_v55 = vrot.slane %v928_v48, 1  ;;  %v942_v63 = vrot.slane %v940_v57, 1  ;;  %v565_v21 = vrot.slane %v563_v11, 1  ;;  %v3410_v11 = vld [vmem:[%s3541_s24 + $0x6c] sm:$0xff]  }
  0x2d   : > { %v570_v30 = vrot.slane %v568_v22, 1  ;;  %v945_v35 = vshrl.u32 %v3402_v19, 16  ;;  %v957_v43 = vshrl.u32 %v3401_v27, 16  ;;  %v964_v47 = vshll.u32 %v3404_v36, 16 }
  0x2e   : > { %v931_v61 = vsel %vm487_vm0, %v926_v54, %v930_v55  ;;  %v566_v29 = vor.u32 %v565_v21, %v561_v18  ;;  %v3717_v55 = vld [vmem:[%s3541_s24 + $0x60] sm:$0xff]   ;;  %v971_v18 = vshll.u32 %v3410_v11, 16  ;;  %v3409_v21 = vld [vmem:[%s3541_s24 + $0x78] sm:$0xff]  }
  0x2f   : > { %v966_v54 = vrot.slane %v964_v47, 1  ;;  %v983_v22 = vshll.u32 %v3409_v21, 16  ;;  %v3757_v47 = vld [vmem:[%s3541_s24 + $0x78] sm:$0xff]  }
  0x30   : > { %798 = vrot.lane.b32.xlu1 %v3385_v60, %s3479_s25  ;;  %684 = vrot.lane.b32.xlu0 %v523_v62, %s3480_s26  ;;  %v938_v62 = vor.u32 %v937_v56, %v933_v53  ;;  %v597_v56 = vshrl.u32 %v3705_v42, 16 }
  0x32   : > { %v943_v10 = vsel %vm487_vm0, %v938_v62, %v942_v63  ;;  %v587_v62 = vshll.u32 %v3717_v55, 16  ;;  %v1844_v63 = vshrl.u32 %v3404_v36, 16 }
  0x34   : > { %1770 = vrot.lane.b32.xlu1 %v1738_v1, %s3480_s26  ;;  %796 = vrot.lane.b32.xlu0 %v3386_v52, %s3479_s25  ;;  %v3659_v52 = vld [vmem:[%s3541_s24 + $0x54] sm:$0xff]  }
  0x35   : > { %v575_v60 = vshll.u32 %v3659_v52, 16 }
  0x37   : > { %v577_v1 = vrot.slane %v575_v60, 1 }
  0x38   : > { %1772 = vrot.lane.b32.xlu1 %v1740_v14, %s3480_s26  ;;  %1068 = vrot.lane.b32.xlu0 %v907_v17, %s3481_s27  ;;  %v1840_v14 = vshrl.u32 %v3396_v49, 16 }
  0x3c   : > { %1804 = vrot.lane.b32.xlu1 %v3388_v5, %s3479_s25  ;;  %1070 = vrot.lane.b32.xlu0 %v919_v25, %s3481_s27  ;;  %v573_v5 = vshrl.u32 %v3659_v52, 16 }
  0x3e   : > { %v578_v16 = vor.u32 %v577_v1, %v573_v5  ;;  %v585_v1 = vshrl.u32 %v3717_v55, 16 }
  0x40   : > { %1868 = vrot.lane.b32.xlu1 %v1836_v28, %s3481_s27  ;;  %1802 = vrot.lane.b32.xlu0 %v3387_v59, %s3479_s25  ;;  %v3665_v59 = vld [vmem:[%s3541_s24 + $0x5c] ss:$0 sps:$4 sm:$0x11]  }
  0x41   : > { %v580_v8 = vshll.u32 %v3665_v59, 16  ;;  %v3403_v28 = vld [vmem:[%s3541_s24 + $0x5c] ss:$0 sps:$4 sm:$0x11]   ;;  %v1748_v48 = vshrl.u32 %v3665_v59, 16 }
  0x42   : > { %v952_v40 = vshll.u32 %v3403_v28, 16 }
  0x43   : > { %v582_v17 = vrot.slane %v580_v8, 1  ;;  %v589_v8 = vrot.slane %v587_v62, 1 }
  0x44   : > { %690 = vrot.lane.b32.xlu1 %v559_v37, %s3480_s26  ;;  %1866 = vrot.lane.b32.xlu0 %v1834_v39, %s3481_s27  ;;  %v571_v37 = vsel %vm487_vm0, %v566_v29, %v570_v30  ;;  %v949_v39 = vrot.slane %v947_v32, 1  ;;  %v954_v45 = vrot.slane %v952_v40, 1  ;;  %v3412_v30 = vld [vmem:[%s3541_s24 + $0x80] ss:$0 sps:$4 sm:$0x11]   ;;  %v3745_v32 = vld [vmem:[%s3541_s24 + $0x84] sm:$0xff]  }
  0x45   : > { %v583_v25 = vsel %vm487_vm0, %v578_v16, %v582_v17  ;;  %v590_v16 = vor.u32 %v589_v8, %v585_v1  ;;  %v3418_v1 = vld [vmem:[%s3541_s24 + $0x84] sm:$0xff]  }
  0x48   : > { %802 = vrot.lane.b32.xlu1 %v3393_v44, %s3479_s25  ;;  %688 = vrot.lane.b32.xlu0 %v547_v50, %s3480_s26  ;;  %v950_v44 = vor.u32 %v949_v39, %v945_v35  ;;  %v599_v50 = vshll.u32 %v3705_v42, 16  ;;  %v988_v39 = vshll.u32 %v3412_v30, 16 }
  0x4a   : > { %v601_v57 = vrot.slane %v599_v50, 1 }
  0x4c   : > { %1774 = vrot.lane.b32.xlu1 %v1742_v51, %s3480_s26  ;;  %800 = vrot.lane.b32.xlu0 %v3394_v34, %s3479_s25  ;;  %v959_v34 = vshll.u32 %v3401_v27, 16  ;;  %v955_v51 = vsel %vm487_vm0, %v950_v44, %v954_v45  ;;  %v602_v2 = vor.u32 %v601_v57, %v597_v56  ;;  %v611_v56 = vshll.u32 %v3757_v47, 16 }
  0x4d   : > { %v1848_v57 = vshrl.u32 %v3412_v30, 16 }
  0x4e   : > { %v961_v46 = vrot.slane %v959_v34, 1  ;;  %v981_v34 = vshrl.u32 %v3409_v21, 16 }
  0x50   : > { %1776 = vrot.lane.b32.xlu1 %v1744_v58, %s3480_s26  ;;  %1072 = vrot.lane.b32.xlu0 %v931_v61, %s3481_s27  ;;  %v962_v53 = vor.u32 %v961_v46, %v957_v43  ;;  %v3725_v61 = vld [vmem:[%s3541_s24 + $0x68] ss:$0 sps:$4 sm:$0x11]   ;;  %v623_v43 = vshll.u32 %v3745_v32, 16  ;;  %v990_v46 = vrot.slane %v988_v39, 1 }
  0x52   : > { %v967_v60 = vsel %vm487_vm0, %v962_v53, %v966_v54  ;;  %v625_v50 = vrot.slane %v623_v43, 1  ;;  %v3765_v54 = vld [vmem:[%s3541_s24 + $0x80] ss:$0 sps:$4 sm:$0x11]  }
  0x54   : > { %1808 = vrot.lane.b32.xlu1 %v3396_v49, %s3479_s25  ;;  %1074 = vrot.lane.b32.xlu0 %v943_v10, %s3481_s27  ;;  %v3711_v49 = vld [vmem:[%s3541_s24 + $0x74] ss:$0 sps:$4 sm:$0x11]   ;;  %v592_v10 = vshll.u32 %v3725_v61, 16 }
  0x55   : > { %v604_v58 = vshll.u32 %v3711_v49, 16  ;;  %v1752_v40 = vshrl.u32 %v3711_v49, 16 }
  0x56   : > { %v594_v17 = vrot.slane %v592_v10, 1 }
  0x57   : > { %v606_v5 = vrot.slane %v604_v58, 1 }
  0x58   : > { %1872 = vrot.lane.b32.xlu1 %v1840_v14, %s3481_s27  ;;  %1806 = vrot.lane.b32.xlu0 %v3647_v38, %s3479_s25  ;;  %v1746_v38 = vshrl.u32 %v3682_v9, 16  ;;  %v1842_v14 = vshrl.u32 %v3403_v28, 16 }
  0x59   : > { %v607_v12 = vsel %vm487_vm0, %v602_v2, %v606_v5  ;;  %v613_v2 = vrot.slane %v611_v56, 1  ;;  %v616_v5 = vshll.u32 %v3765_v54, 16 }
  0x5c   : > { %694 = vrot.lane.b32.xlu1 %v583_v25, %s3480_s26  ;;  %1870 = vrot.lane.b32.xlu0 %v1838_v23, %s3481_s27  ;;  %v595_v23 = vsel %vm487_vm0, %v590_v16, %v594_v17  ;;  %v969_v25 = vshrl.u32 %v3410_v11, 16  ;;  %v618_v16 = vrot.slane %v616_v5, 1  ;;  %v995_v17 = vshll.u32 %v3418_v1, 16 }
  0x60   : > { %806 = vrot.lane.b32.xlu1 %v3401_v27, %s3479_s25  ;;  %692 = vrot.lane.b32.xlu0 %v571_v37, %s3480_s26  ;;  %v973_v27 = vrot.slane %v971_v18, 1  ;;  %v985_v37 = vrot.slane %v983_v22, 1  ;;  %v3779_v18 = vld [vmem:[%s3541_s24 + $0x8c] ss:$0 sps:$4 sm:$0x11]  }
  0x62   : > { %v974_v35 = vor.u32 %v973_v27, %v969_v25  ;;  %v986_v45 = vor.u32 %v985_v37, %v981_v34  ;;  %v993_v27 = vshrl.u32 %v3418_v1, 16  ;;  %v1754_v34 = vshrl.u32 %v3765_v54, 16 }
  0x64   : > { %1778 = vrot.lane.b32.xlu1 %v1746_v38, %s3480_s26  ;;  %804 = vrot.lane.b32.xlu0 %v3402_v19, %s3479_s25  ;;  %v3411_v19 = vld [vmem:[%s3541_s24 + $0x74] ss:$0 sps:$4 sm:$0x11]   ;;  %v3751_v38 = vld [vmem:[%s3541_s24 + $0x8c] ss:$0 sps:$4 sm:$0x11]   ;;  %v991_v53 = vsel %vm487_vm0, %v986_v45, %v990_v46 }
  0x65   : > { %v976_v29 = vshll.u32 %v3411_v19, 16  ;;  %v1756_v46 = vshrl.u32 %v3751_v38, 16 }
  0x68   : > { %1780 = vrot.lane.b32.xlu1 %v1748_v48, %s3480_s26  ;;  %1076 = vrot.lane.b32.xlu0 %v955_v51, %s3481_s27  ;;  %v621_v48 = vshrl.u32 %v3745_v32, 16  ;;  %v628_v51 = vshll.u32 %v3751_v38, 16 }
  0x6a   : > { %v626_v58 = vor.u32 %v625_v50, %v621_v48  ;;  %v3801_v50 = vld [vmem:[%s3541_s24 + $0xa4] ss:$0 sps:$4 sm:$0x11]  }
  0x6c   : > { %1812 = vrot.lane.b32.xlu1 %v3404_v36, %s3479_s25  ;;  %1078 = vrot.lane.b32.xlu0 %v967_v60, %s3481_s27  ;;  %v978_v36 = vrot.slane %v976_v29, 1  ;;  %v630_v60 = vrot.slane %v628_v51, 1  ;;  %v997_v29 = vrot.slane %v995_v17, 1 }
  0x6e   : > { %v979_v44 = vsel %vm487_vm0, %v974_v35, %v978_v36  ;;  %v631_v8 = vsel %vm487_vm0, %v626_v58, %v630_v60  ;;  %v3792_v35 = vld [vmem:[%s3541_s24 + $0x9c] sm:$0xff]   ;;  %v998_v39 = vor.u32 %v997_v29, %v993_v27  ;;  %v3807_v60 = vld [vmem:[%s3541_s24 + $0x90] sm:$0xff]  }
  0x6f   : > { %v647_v51 = vshll.u32 %v3792_v35, 16  ;;  %v645_v5 = vshrl.u32 %v3792_v35, 16 }
  0x70   : > { %1876 = vrot.lane.b32.xlu1 %v1844_v63, %s3481_s27  ;;  %1810 = vrot.lane.b32.xlu0 %v3403_v28, %s3479_s25  ;;  %v1750_v28 = vshrl.u32 %v3725_v61, 16  ;;  %v609_v63 = vshrl.u32 %v3757_v47, 16 }
  0x74   : > { %698 = vrot.lane.b32.xlu1 %v607_v12, %s3480_s26  ;;  %1874 = vrot.lane.b32.xlu0 %v1842_v14, %s3481_s27  ;;  %v1846_v12 = vshrl.u32 %v3411_v19, 16  ;;  %v614_v14 = vor.u32 %v613_v2, %v609_v63 }
  0x76   : > { %v619_v25 = vsel %vm487_vm0, %v614_v14, %v618_v16  ;;  %v652_v14 = vshll.u32 %v3801_v50, 16  ;;  %v3821_v16 = vld [vmem:[%s3541_s24 + $0x98] ss:$0 sps:$4 sm:$0x11]  }
  0x78   : > { %810 = vrot.lane.b32.xlu1 %v3409_v21, %s3479_s25  ;;  %696 = vrot.lane.b32.xlu0 %v595_v23, %s3480_s26  ;;  %v3417_v21 = vld [vmem:[%s3541_s24 + $0x90] sm:$0xff]  }
  0x79   : > { %v1007_v23 = vshll.u32 %v3417_v21, 16  ;;  %v1005_v37 = vshrl.u32 %v3417_v21, 16 }
  0x7b   : > { %v1009_v43 = vrot.slane %v1007_v23, 1 }
  0x7c   : > { %1782 = vrot.lane.b32.xlu1 %v1750_v28, %s3480_s26  ;;  %808 = vrot.lane.b32.xlu0 %v3410_v11, %s3479_s25 }
  0x80   : > { %1784 = vrot.lane.b32.xlu1 %v1752_v40, %s3480_s26  ;;  %1080 = vrot.lane.b32.xlu0 %v979_v44, %s3481_s27 }
  0x84   : > { %1816 = vrot.lane.b32.xlu1 %v3412_v30, %s3479_s25  ;;  %1082 = vrot.lane.b32.xlu0 %v991_v53, %s3481_s27  ;;  %v1000_v30 = vshll.u32 %v3779_v18, 16 }
  0x86   : > { %v793_v62 = vpop.permute.xlu1 %792  ;;  %v3776_v10 = vpop.permute.xlu0 %1798  ;;  %v1002_v40 = vrot.slane %v1000_v30, 1 }
  0x88   : > { %1880 = vrot.lane.b32.xlu1 %v1848_v57, %s3481_s27  ;;  %1814 = vrot.lane.b32.xlu0 %v3411_v19, %s3479_s25  ;;  %v3787_v19 = vld [vmem:[%s3541_s24 + $0x98] ss:$0 sps:$4 sm:$0x11]   ;;  %v1003_v56 = vsel %vm487_vm0, %v998_v39, %v1002_v40  ;;  %v1010_v57 = vor.u32 %v1009_v43, %v1005_v37  ;;  %v640_v39 = vshll.u32 %v3821_v16, 16  ;;  %v633_v43 = vshrl.u32 %v3807_v60, 16 }
  0x89   : > { %v1012_v44 = vshll.u32 %v3787_v19, 16  ;;  %v1852_v29 = vshrl.u32 %v3787_v19, 16 }
  0x8a   : > { %v795_v11 = vpop.permute.xlu1 %794 }
  0x8b   : > { %v1014_v58 = vrot.slane %v1012_v44, 1 }
  0x8c   : > { %702 = vrot.lane.b32.xlu1 %v631_v8, %s3480_s26  ;;  %1878 = vrot.lane.b32.xlu0 %v1846_v12, %s3481_s27  ;;  %v649_v12 = vrot.slane %v647_v51, 1 }
  0x8d   : > { %v1015_v17 = vsel %vm487_vm0, %v1010_v57, %v1014_v58 }
  0x8e   : > { %v1767_v22 = vpop.permute.xlu1 %1766  ;;  %v681_v28 = vpop.permute.xlu0 %680 }
  0x8f   : > { %v1098_v48 = vsel %vm1096_vm1, %v3550_v3, %v681_v28  ;;  %v1895_v30 = vsel %vm1096_vm1, %v3558_v6, %v1767_v22 }
  0x90   : > { %814 = vrot.lane.b32.xlu1 %v3417_v21, %s3479_s25  ;;  %700 = vrot.lane.b32.xlu0 %v619_v25, %s3480_s26  ;;  %v1131_v2 = vsel %vm1129_vm2, %v1098_v48, %v793_v62  ;;  %v635_v21 = vshll.u32 %v3807_v60, 16  ;;  %v1927_v6 = vsel %vm1129_vm2, %v1895_v30, %v3776_v10  ;;  %v3861_v30 = vld [vmem:[%s3541_s24 + $0xb0] ss:$0 sps:$4 sm:$0x11]  }
  0x92   : > { %v1769_v36 = vpop.permute.xlu1 %1768  ;;  %v683_v45 = vpop.permute.xlu0 %682  ;;  %v637_v44 = vrot.slane %v635_v21, 1 }
  0x93   : > { %v1897_v3 = vsel %vm1096_vm1, %v3568_v15, %v1769_v36  ;;  %v654_v36 = vrot.slane %v652_v14, 1 }
  0x94   : > { %1786 = vrot.lane.b32.xlu1 %v1754_v34, %s3480_s26  ;;  %812 = vrot.lane.b32.xlu0 %v3418_v1, %s3479_s25  ;;  %v1100_v1 = vsel %vm1096_vm1, %v3555_v4, %v683_v45  ;;  %v650_v34 = vor.u32 %v649_v12, %v645_v5  ;;  %v638_v5 = vor.u32 %v637_v44, %v633_v43  ;;  %v3848_v12 = vld [vmem:[%s3541_s24 + $0xa4] ss:$0 sps:$4 sm:$0x11]  }
  0x95   : > { %v1133_v4 = vsel %vm1129_vm2, %v1100_v1, %v795_v11 }
  0x96   : > { %v1801_v53 = vpop.permute.xlu1 %1800  ;;  %v1065_v63 = vpop.permute.xlu0 %1064 }
  0x97   : > { %v1164_v8 = vsel %vm1162_vm3, %v1131_v2, %v1065_v63  ;;  %v1929_v62 = vsel %vm1129_vm2, %v1897_v3, %v1801_v53  ;;  %v655_v53 = vsel %vm487_vm0, %v650_v34, %v654_v36  ;;  %v1850_v3 = vshrl.u32 %v3779_v18, 16  ;;  %v3867_v36 = vld [vmem:[%s3541_s24 + $0xb4] sm:$0xff]  }
  0x98   : > { %1788 = vrot.lane.b32.xlu1 %v1756_v46, %s3480_s26  ;;  %1084 = vrot.lane.b32.xlu0 %v1003_v56, %s3481_s27  ;;  %v1992_v23 = vshll.u32 %v1164_v8, 16  ;;  %v1990_v56 = vshrl.u32 %v1164_v8, 16  ;;  %v642_v63 = vrot.slane %v640_v39, 1  ;;  %v1758_v34 = vshrl.u32 %v3821_v16, 16 }
  0x99   : > { %3263 = vmatprep.mubr.msk.bf16.mxu0 %vm1207_vm4, %v1164_v8 }
  0x9a   : > { %v1865_v15 = vpop.permute.xlu1 %1864  ;;  %v1067_v25 = vpop.permute.xlu0 %1066  ;;  %v1994_v45 = vrot.slane %v1992_v23, 1 }
  0x9b   : > { %v1961_v27 = vsel %vm1162_vm3, %v1929_v62, %v1865_v15  ;;  %v1166_v28 = vsel %vm1162_vm3, %v1133_v4, %v1067_v25  ;;  %v3427_v62 = vld [vmem:[%s3541_s24 + $0xa8] sm:$0xff]   ;;  %v643_v25 = vsel %vm487_vm0, %v638_v5, %v642_v63 }
  0x9c   : > { %1820 = vrot.lane.b32.xlu1 %v3787_v19, %s3479_s25  ;;  %v2002_v37 = vshll.u32 %v1166_v28, 16  ;;  %1086 = vrot.lane.b32.xlu0 %v1015_v17, %s3481_s27  ;;  %v2006_v40 = vshll.u32 %v1961_v27, 16  ;;  %v3428_v19 = vld [vmem:[%s3541_s24 + $0x9c] sm:$0xff]   ;;  %v2000_v48 = vshrl.u32 %v1166_v28, 16  ;;  %v1995_v8 = vor.u32 %v1994_v45, %v1990_v56 }
  0x9d   : > { %3264 = vmatmul.mubr.msk.bf16.vlgmr.msra.gmra.mxu0 %vm1207_vm4, %v1166_v28  ;;  %v1019_v1 = vshll.u32 %v3428_v19, 16  ;;  %v1031_v21 = vshll.u32 %v3427_v62, 16  ;;  %v1017_v23 = vshrl.u32 %v3428_v19, 16  ;;  %v1029_v39 = vshrl.u32 %v3427_v62, 16 }
  0x9e   : > { %v687_v11 = vpop.permute.xlu1 %686  ;;  %v2004_v46 = vrot.slane %v2002_v37, 1  ;;  %v1863_v22 = vpop.permute.xlu0 %1862  ;;  %v2008_v2 = vrot.slane %v2006_v40, 1  ;;  %v3880_v56 = vld [vmem:[%s3541_s24 + $0xbc] ss:$0 sps:$4 sm:$0x11]  }
  0x9f   : > { %v1959_v51 = vsel %vm1162_vm3, %v1927_v6, %v1863_v22  ;;  %v1021_v27 = vrot.slane %v1019_v1, 1  ;;  %v1033_v40 = vrot.slane %v1031_v21, 1  ;;  %v669_v1 = vshrl.u32 %v3867_v36, 16 }
  0xa0   : > { %1884 = vrot.lane.b32.xlu1 %v1852_v29, %s3481_s27  ;;  %v1996_v57 = vshll.u32 %v1959_v51, 16  ;;  %1818 = vrot.lane.b32.xlu0 %v3779_v18, %s3479_s25  ;;  %v2005_v10 = vor.u32 %v2004_v46, %v2000_v48  ;;  %v1024_v29 = vshll.u32 %v3848_v12, 16  ;;  %v1036_v46 = vshll.u32 %v3861_v30, 16 }
  0xa1   : > { %v1022_v44 = vor.u32 %v1021_v27, %v1017_v23  ;;  %v1760_v48 = vshrl.u32 %v3801_v50, 16  ;;  %v1104_v51 = vsel %vm1096_vm1, %v3574_v24, %v687_v11  ;;  %v1034_v63 = vor.u32 %v1033_v40, %v1029_v39  ;;  %v3436_v39 = vld [vmem:[%s3541_s24 + $0xb4] sm:$0xff]  }
  0xa2   : > { %v799_v58 = vpop.permute.xlu1 %798  ;;  %v1998_v14 = vrot.slane %v1996_v57, 1  ;;  %v685_v15 = vpop.permute.xlu0 %684  ;;  %v2009_v4 = vsel %vm487_vm0, %v2005_v10, %v2008_v2  ;;  %v1026_v45 = vrot.slane %v1024_v29, 1  ;;  %v1038_v10 = vrot.slane %v1036_v46, 1  ;;  %v3887_v2 = vld [vmem:[%s3541_s24 + $0xa8] sm:$0xff]  }
  0xa3   : > { %v1102_v43 = vsel %vm1096_vm1, %v3585_v33, %v685_v15  ;;  %v671_v33 = vshll.u32 %v3867_v36, 16  ;;  %v1137_v24 = vsel %vm1129_vm2, %v1104_v51, %v799_v58  ;;  %v676_v15 = vshll.u32 %v3880_v56, 16 }
  0xa4   : > { %706 = vrot.lane.b32.xlu1 %v655_v53, %s3480_s26  ;;  %1882 = vrot.lane.b32.xlu0 %v1850_v3, %s3481_s27  ;;  %v1999_v17 = vsel %vm487_vm0, %v1995_v8, %v1998_v14  ;;  %v1027_v3 = vsel %vm487_vm0, %v1022_v44, %v1026_v45 }
  0xa5   : > { %3297 = vmatprep.mubr.msk.bf16.mxu1 %vm1207_vm4, %v1999_v17  ;;  %v673_v14 = vrot.slane %v671_v33, 1  ;;  %v659_v17 = vshll.u32 %v3887_v2, 16 }
  0xa6   : > { %v3854_v18 = vpop.permute.xlu1 %1770  ;;  %3298 = vmatmul.mubr.msk.bf16.vlgmr.msra.gmra.mxu1 %vm1207_vm4, %v2009_v4  ;;  %v797_v28 = vpop.permute.xlu0 %796 }
  0xa7   : > { %v1135_v6 = vsel %vm1129_vm2, %v1102_v43, %v797_v28  ;;  %v674_v29 = vor.u32 %v673_v14, %v669_v1  ;;  %v678_v28 = vrot.slane %v676_v15, 1  ;;  %v1899_v40 = vsel %vm1096_vm1, %v3592_v41, %v3854_v18 }
  0xa8   : > { %818 = vrot.lane.b32.xlu1 %v3427_v62, %s3479_s25  ;;  %704 = vrot.lane.b32.xlu0 %v643_v25, %s3480_s26  ;;  %v3901_v62 = vld [vmem:[%s3541_s24 + $0xb0] ss:$0 sps:$4 sm:$0x11]   ;;  %v1856_v25 = vshrl.u32 %v3861_v30, 16  ;;  %v661_v44 = vrot.slane %v659_v17, 1  ;;  %v1854_v18 = vshrl.u32 %v3848_v12, 16 }
  0xa9   : > { %v664_v45 = vshll.u32 %v3901_v62, 16  ;;  %v679_v51 = vsel %vm487_vm0, %v674_v29, %v678_v28  ;;  %v1762_v29 = vshrl.u32 %v3901_v62, 16 }
  0xaa   : > { %v1773_v37 = vpop.permute.xlu1 %1772  ;;  %v1069_v22 = vpop.permute.xlu0 %1068 }
  0xab   : > { %v1168_v53 = vsel %vm1162_vm3, %v1135_v6, %v1069_v22  ;;  %v1901_v11 = vsel %vm1096_vm1, %v3581_v31, %v1773_v37  ;;  %v1039_v31 = vsel %vm487_vm0, %v1034_v63, %v1038_v10  ;;  %v657_v37 = vshrl.u32 %v3887_v2, 16 }
  0xac   : > { %1790 = vrot.lane.b32.xlu1 %v1758_v34, %s3480_s26  ;;  %816 = vrot.lane.b32.xlu0 %v3428_v19, %s3479_s25  ;;  %v2012_v21 = vshll.u32 %v1168_v53, 16  ;;  %v2010_v33 = vshrl.u32 %v1168_v53, 16 }
  0xad   : > { %3267 = vmatprep.mubr.msk.bf16.mxu0 %vm1207_vm4, %v1168_v53  ;;  %v3435_v53 = vld [vmem:[%s3541_s24 + $0xc0] sm:$0xff]  }
  0xae   : > { %v1805_v57 = vpop.permute.xlu1 %1804  ;;  %v1071_v5 = vpop.permute.xlu0 %1070  ;;  %v2014_v46 = vrot.slane %v2012_v21, 1 }
  0xaf   : > { %v1170_v19 = vsel %vm1162_vm3, %v1137_v24, %v1071_v5  ;;  %v1933_v58 = vsel %vm1129_vm2, %v1901_v11, %v1805_v57  ;;  %v662_v24 = vor.u32 %v661_v44, %v657_v37  ;;  %v666_v11 = vrot.slane %v664_v45, 1  ;;  %v3923_v5 = vld [vmem:[%s3541_s24 + $0xbc] ss:$0 sps:$4 sm:$0x11]  }
  0xb0   : > { %1792 = vrot.lane.b32.xlu1 %v1760_v48, %s3480_s26  ;;  %1088 = vrot.lane.b32.xlu0 %v1027_v3, %s3481_s27  ;;  %v2022_v27 = vshll.u32 %v1170_v19, 16  ;;  %v1043_v3 = vshll.u32 %v3436_v39, 16  ;;  %v2020_v63 = vshrl.u32 %v1170_v19, 16  ;;  %v2015_v1 = vor.u32 %v2014_v46, %v2010_v33 }
  0xb1   : > { %3268 = vmatmul.mubr.msk.bf16.gmra.mxu0 %vm1207_vm4, %v1170_v19  ;;  %v1041_v19 = vshrl.u32 %v3436_v39, 16  ;;  %v667_v21 = vsel %vm487_vm0, %v662_v24, %v666_v11  ;;  %v1053_v37 = vshrl.u32 %v3435_v53, 16 }
  0xb2   : > { %v1869_v8 = vpop.permute.xlu1 %1868  ;;  %v1803_v23 = vpop.permute.xlu0 %1802  ;;  %v2024_v22 = vrot.slane %v2022_v27, 1 }
  0xb3   : > { %v1965_v4 = vsel %vm1162_vm3, %v1933_v58, %v1869_v8 }
  0xb4   : > { %1824 = vrot.lane.b32.xlu1 %v3861_v30, %s3479_s25  ;;  %1090 = vrot.lane.b32.xlu0 %v1039_v31, %s3481_s27  ;;  %v2026_v43 = vshll.u32 %v1965_v4, 16  ;;  %v1931_v30 = vsel %vm1129_vm2, %v1899_v40, %v1803_v23  ;;  %v2025_v8 = vor.u32 %v2024_v22, %v2020_v63  ;;  %v1055_v31 = vshll.u32 %v3435_v53, 16 }
  0xb5   : > { %v1045_v23 = vrot.slane %v1043_v3, 1  ;;  %v1048_v4 = vshll.u32 %v3923_v5, 16  ;;  %v1764_v22 = vshrl.u32 %v3880_v56, 16 }
  0xb6   : > { %v691_v34 = vpop.permute.xlu1 %690  ;;  %v1867_v6 = vpop.permute.xlu0 %1866  ;;  %v2028_v10 = vrot.slane %v2026_v43, 1  ;;  %v1057_v40 = vrot.slane %v1055_v31, 1 }
  0xb7   : > { %v1963_v48 = vsel %vm1162_vm3, %v1931_v30, %v1867_v6  ;;  %v1046_v44 = vor.u32 %v1045_v23, %v1041_v19  ;;  %v1050_v45 = vrot.slane %v1048_v4, 1 }
  0xb8   : > { %1888 = vrot.lane.b32.xlu1 %v1856_v25, %s3481_s27  ;;  %v2016_v57 = vshll.u32 %v1963_v48, 16  ;;  %1822 = vrot.lane.b32.xlu0 %v3848_v12, %s3479_s25  ;;  %v2029_v17 = vsel %vm487_vm0, %v2025_v8, %v2028_v10  ;;  %v3438_v25 = vld [vmem:[%s3541_s24 + $0xc8] ss:$0 sps:$4 sm:$0x11]   ;;  %v1108_v48 = vsel %vm1096_vm1, %v3616_v7, %v691_v34  ;;  %s254_s24 = scalar_lea.vmem %s4446_s3, %s2906_s21 }
  0xb9   : > { %v1060_v46 = vshll.u32 %v3438_v25, 16  ;;  %v1051_v33 = vsel %vm487_vm0, %v1046_v44, %v1050_v45 }
  0xba   : > { %v803_v41 = vpop.permute.xlu1 %802  ;;  %v2018_v14 = vrot.slane %v2016_v57, 1  ;;  %v689_v15 = vpop.permute.xlu0 %688  ;;  %v1058_v57 = vor.u32 %v1057_v40, %v1053_v37 }
  0xbb   : > { %v1106_v43 = vsel %vm1096_vm1, %v3628_v20, %v689_v15  ;;  %v1141_v3 = vsel %vm1129_vm2, %v1108_v48, %v803_v41 }
  0xbc   : > { %710 = vrot.lane.b32.xlu1 %v679_v51, %s3480_s26  ;;  %1886 = vrot.lane.b32.xlu0 %v1854_v18, %s3481_s27  ;;  %v2019_v58 = vsel %vm487_vm0, %v2015_v1, %v2018_v14  ;;  %v1062_v18 = vrot.slane %v1060_v46, 1 }
  0xbd   : > { %3301 = vmatprep.mubr.msk.bf16.mxu1 %vm1207_vm4, %v2019_v58 }
  0xbe   : > { %v1775_v12 = vpop.permute.xlu1 %1774  ;;  %3302 = vmatmul.mubr.msk.bf16.gmra.mxu1 %vm1207_vm4, %v2029_v17  ;;  %v801_v27 = vpop.permute.xlu0 %800  ;;  %v1063_v24 = vsel %vm487_vm0, %v1058_v57, %v1062_v18 }
  0xbf   : > { %v1139_v30 = vsel %vm1129_vm2, %v1106_v43, %v801_v27  ;;  %v1858_v27 = vshrl.u32 %v3923_v5, 16 }
  0xc0   : > { %822 = vrot.lane.b32.xlu1 %v3435_v53, %s3479_s25  ;;  %708 = vrot.lane.b32.xlu0 %v667_v21, %s3480_s26  ;;  %v1903_v53 = vsel %vm1096_vm1, %v3636_v26, %v1775_v12 }
  0xc2   : > { %v1777_v28 = vpop.permute.xlu1 %1776  ;;  %v1073_v6 = vpop.permute.xlu0 %1072 }
  0xc3   : > { %v1172_v51 = vsel %vm1162_vm3, %v1139_v30, %v1073_v6  ;;  %v1905_v63 = vsel %vm1096_vm1, %v3620_v13, %v1777_v28  ;;  %v1860_v13 = vshrl.u32 %v3438_v25, 16 }
  0xc4   : > { %1794 = vrot.lane.b32.xlu1 %v1762_v29, %s3480_s26  ;;  %820 = vrot.lane.b32.xlu0 %v3436_v39, %s3479_s25  ;;  %v2032_v11 = vshll.u32 %v1172_v51, 16  ;;  %v2030_v23 = vshrl.u32 %v1172_v51, 16 }
  0xc5   : > { %3271 = vmatprep.mubr.msk.bf16.mxu0 %vm1207_vm4, %v1172_v51 }
  0xc6   : > { %v1809_v20 = vpop.permute.xlu1 %1808  ;;  %v1075_v10 = vpop.permute.xlu0 %1074  ;;  %v2034_v58 = vrot.slane %v2032_v11, 1 }
  0xc7   : > { %v1174_v7 = vsel %vm1162_vm3, %v1141_v3, %v1075_v10  ;;  %v1937_v39 = vsel %vm1129_vm2, %v1905_v63, %v1809_v20 }
  0xc8   : > { %1796 = vrot.lane.b32.xlu1 %v1764_v22, %s3480_s26  ;;  %1092 = vrot.lane.b32.xlu0 %v1051_v33, %s3481_s27  ;;  %v2042_v14 = vshll.u32 %v1174_v7, 16  ;;  %v2040_v29 = vshrl.u32 %v1174_v7, 16  ;;  %v2035_v12 = vor.u32 %v2034_v58, %v2030_v23 }
  0xc9   : > { %3272 = vmatmul.mubr.msk.bf16.gmra.mxu0 %vm1207_vm4, %v1174_v7 }
  0xca   : > { %v1873_v34 = vpop.permute.xlu1 %1872  ;;  %v1807_v1 = vpop.permute.xlu0 %1806  ;;  %v2044_v17 = vrot.slane %v2042_v14, 1 }
  0xcb   : > { %v1969_v41 = vsel %vm1162_vm3, %v1937_v39, %v1873_v34  ;;  %v1935_v31 = vsel %vm1129_vm2, %v1903_v53, %v1807_v1 }
  0xcc   : > { %1828 = vrot.lane.b32.xlu1 %v3438_v25, %s3479_s25  ;;  %1094 = vrot.lane.b32.xlu0 %v1063_v24, %s3481_s27  ;;  %v2046_v8 = vshll.u32 %v1969_v41, 16  ;;  %v2045_v40 = vor.u32 %v2044_v17, %v2040_v29 }
  0xce   : > { %v695_v15 = vpop.permute.xlu1 %694  ;;  %v1871_v19 = vpop.permute.xlu0 %1870  ;;  %v2048_v26 = vrot.slane %v2046_v8, 1 }
  0xcf   : > { %v1967_v21 = vsel %vm1162_vm3, %v1935_v31, %v1871_v19  ;;  %v1112_v48 = vsel %vm1096_vm1, %v3659_v52, %v695_v15 }
  0xd0   : > { %1892 = vrot.lane.b32.xlu1 %v1860_v13, %s3481_s27  ;;  %v2036_v4 = vshll.u32 %v1967_v21, 16  ;;  %1826 = vrot.lane.b32.xlu0 %v3923_v5, %s3479_s25  ;;  %v2049_v45 = vsel %vm487_vm0, %v2045_v40, %v2048_v26 }
  0xd2   : > { %v807_v25 = vpop.permute.xlu1 %806  ;;  %v2038_v28 = vrot.slane %v2036_v4, 1  ;;  %v693_v37 = vpop.permute.xlu0 %692 }
  0xd3   : > { %v1110_v5 = vsel %vm1096_vm1, %v3672_v0, %v693_v37  ;;  %v1145_v33 = vsel %vm1129_vm2, %v1112_v48, %v807_v25 }
  0xd4   : > { %1890 = vrot.lane.b32.xlu0 %v1858_v27, %s3481_s27  ;;  %v2039_v43 = vsel %vm487_vm0, %v2035_v12, %v2038_v28 }
  0xd5   : > { %3305 = vmatprep.mubr.msk.bf16.mxu1 %vm1207_vm4, %v2039_v43 }
  0xd6   : > { %v1779_v44 = vpop.permute.xlu1 %1778  ;;  %3306 = vmatmul.mubr.msk.bf16.gmra.mxu1 %vm1207_vm4, %v2049_v45  ;;  %v805_v46 = vpop.permute.xlu0 %804 }
  0xd7   : > { %v1143_v6 = vsel %vm1129_vm2, %v1110_v5, %v805_v46  ;;  %v1907_v24 = vsel %vm1096_vm1, %v3682_v9, %v1779_v44 }
  0xda   : > { %v1781_v30 = vpop.permute.xlu1 %1780  ;;  %v1077_v22 = vpop.permute.xlu0 %1076 }
  0xdb   : > { %v1176_v51 = vsel %vm1162_vm3, %v1143_v6, %v1077_v22  ;;  %v1909_v57 = vsel %vm1096_vm1, %v3665_v59, %v1781_v30 }
  0xdc   : > { %3275 = vmatprep.mubr.msk.bf16.mxu0 %vm1207_vm4, %v1176_v51  ;;  %v2052_v10 = vshll.u32 %v1176_v51, 16  ;;  %v2050_v15 = vshrl.u32 %v1176_v51, 16 }
  0xde   : > { %v1813_v20 = vpop.permute.xlu1 %1812  ;;  %v1079_v18 = vpop.permute.xlu0 %1078  ;;  %v2054_v1 = vrot.slane %v2052_v10, 1 }
  0xdf   : > { %v1178_v3 = vsel %vm1162_vm3, %v1145_v33, %v1079_v18  ;;  %v1941_v63 = vsel %vm1129_vm2, %v1909_v57, %v1813_v20 }
  0xe0   : > { %3276 = vmatmul.mubr.msk.bf16.gmra.mxu0 %vm1207_vm4, %v1178_v3  ;;  %v2062_v34 = vshll.u32 %v1178_v3, 16  ;;  %v2060_v58 = vshrl.u32 %v1178_v3, 16  ;;  %v2055_v19 = vor.u32 %v2054_v1, %v2050_v15 }
  0xe2   : > { %v1877_v0 = vpop.permute.xlu1 %1876  ;;  %v1811_v52 = vpop.permute.xlu0 %1810  ;;  %v2064_v13 = vrot.slane %v2062_v34, 1 }
  0xe3   : > { %v1973_v7 = vsel %vm1162_vm3, %v1941_v63, %v1877_v0  ;;  %v1939_v59 = vsel %vm1129_vm2, %v1907_v24, %v1811_v52 }
  0xe4   : > { %v2066_v11 = vshll.u32 %v1973_v7, 16  ;;  %v2065_v23 = vor.u32 %v2064_v13, %v2060_v58 }
  0xe6   : > { %v699_v39 = vpop.permute.xlu1 %698  ;;  %v1875_v41 = vpop.permute.xlu0 %1874  ;;  %v2068_v31 = vrot.slane %v2066_v11, 1 }
  0xe7   : > { %v1971_v14 = vsel %vm1162_vm3, %v1939_v59, %v1875_v41  ;;  %v1116_v37 = vsel %vm1096_vm1, %v3705_v42, %v699_v39 }
  0xe8   : > { %v2056_v53 = vshll.u32 %v1971_v14, 16  ;;  %v2069_v25 = vsel %vm487_vm0, %v2065_v23, %v2068_v31 }
  0xea   : > { %v811_v8 = vpop.permute.xlu1 %810  ;;  %v2058_v17 = vrot.slane %v2056_v53, 1  ;;  %v697_v21 = vpop.permute.xlu0 %696 }
  0xeb   : > { %v1114_v26 = vsel %vm1096_vm1, %v3717_v55, %v697_v21  ;;  %v1149_v44 = vsel %vm1129_vm2, %v1116_v37, %v811_v8 }
  0xec   : > { %v2059_v4 = vsel %vm487_vm0, %v2055_v19, %v2058_v17 }
  0xed   : > { %3309 = vmatprep.mubr.msk.bf16.mxu1 %vm1207_vm4, %v2059_v4 }
  0xee   : > { %v1783_v9 = vpop.permute.xlu1 %1782  ;;  %3310 = vmatmul.mubr.msk.bf16.gmra.mxu1 %vm1207_vm4, %v2069_v25  ;;  %v809_v27 = vpop.permute.xlu0 %808 }
  0xef   : > { %v1147_v12 = vsel %vm1129_vm2, %v1114_v26, %v809_v27  ;;  %v1911_v20 = vsel %vm1096_vm1, %v3725_v61, %v1783_v9 }
  0xf2   : > { %v1785_v29 = vpop.permute.xlu1 %1784  ;;  %v1081_v28 = vpop.permute.xlu0 %1080 }
  0xf3   : > { %v1180_v40 = vsel %vm1162_vm3, %v1147_v12, %v1081_v28  ;;  %v1913_v45 = vsel %vm1096_vm1, %v3711_v49, %v1785_v29 }
  0xf4   : > { %3279 = vmatprep.mubr.msk.bf16.mxu0 %vm1207_vm4, %v1180_v40  ;;  %v2072_v6 = vshll.u32 %v1180_v40, 16  ;;  %v2070_v63 = vshrl.u32 %v1180_v40, 16 }
  0xf6   : > { %v1817_v43 = vpop.permute.xlu1 %1816  ;;  %v1083_v46 = vpop.permute.xlu0 %1082  ;;  %v2074_v57 = vrot.slane %v2072_v6, 1 }
  0xf7   : > { %v1182_v30 = vsel %vm1162_vm3, %v1149_v44, %v1083_v46  ;;  %v1945_v5 = vsel %vm1129_vm2, %v1913_v45, %v1817_v43 }
  0xf8   : > { %3280 = vmatmul.mubr.msk.bf16.gmra.mxu0 %vm1207_vm4, %v1182_v30  ;;  %v2082_v48 = vshll.u32 %v1182_v30, 16  ;;  %v2080_v7 = vshrl.u32 %v1182_v30, 16  ;;  %v2075_v39 = vor.u32 %v2074_v57, %v2070_v63 }
  0xfa   : > { %v1881_v55 = vpop.permute.xlu1 %1880  ;;  %v1815_v42 = vpop.permute.xlu0 %1814  ;;  %v2084_v3 = vrot.slane %v2082_v48, 1 }
  0xfb   : > { %v1977_v22 = vsel %vm1162_vm3, %v1945_v5, %v1881_v55  ;;  %v1943_v49 = vsel %vm1129_vm2, %v1911_v20, %v1815_v42 }
  0xfc   : > { %v2086_v33 = vshll.u32 %v1977_v22, 16  ;;  %v2085_v1 = vor.u32 %v2084_v3, %v2080_v7 }
  0xfe   : > { %v703_v51 = vpop.permute.xlu1 %702  ;;  %v1879_v18 = vpop.permute.xlu0 %1878  ;;  %v2088_v34 = vrot.slane %v2086_v33, 1 }
  0xff   : > { %v1975_v0 = vsel %vm1162_vm3, %v1943_v49, %v1879_v18  ;;  %v1120_v58 = vsel %vm1096_vm1, %v3745_v32, %v703_v51 }
 0x100   : > { %v2076_v10 = vshll.u32 %v1975_v0, 16  ;;  %v2089_v41 = vsel %vm487_vm0, %v2085_v1, %v2088_v34 }
 0x102   : > { %v815_v52 = vpop.permute.xlu1 %814  ;;  %v2078_v24 = vrot.slane %v2076_v10, 1  ;;  %v701_v11 = vpop.permute.xlu0 %700 }
 0x103   : > { %v1118_v15 = vsel %vm1096_vm1, %v3757_v47, %v701_v11  ;;  %v1153_v17 = vsel %vm1129_vm2, %v1120_v58, %v815_v52 }
 0x104   : > { %v2079_v59 = vsel %vm487_vm0, %v2075_v39, %v2078_v24 }
 0x105   : > { %3313 = vmatprep.mubr.msk.bf16.mxu1 %vm1207_vm4, %v2079_v59 }
 0x106   : > { %v1787_v61 = vpop.permute.xlu1 %1786  ;;  %3314 = vmatmul.mubr.msk.bf16.gmra.mxu1 %vm1207_vm4, %v2089_v41  ;;  %v813_v13 = vpop.permute.xlu0 %812 }
 0x107   : > { %v1151_v53 = vsel %vm1129_vm2, %v1118_v15, %v813_v13  ;;  %v1915_v12 = vsel %vm1096_vm1, %v3765_v54, %v1787_v61 }
 0x10a   : > { %v1789_v14 = vpop.permute.xlu1 %1788  ;;  %v1085_v8 = vpop.permute.xlu0 %1084 }
 0x10b   : > { %v1184_v31 = vsel %vm1162_vm3, %v1151_v53, %v1085_v8  ;;  %v1917_v21 = vsel %vm1096_vm1, %v3751_v38, %v1789_v14 }
 0x10c   : > { %3283 = vmatprep.mubr.msk.bf16.mxu0 %vm1207_vm4, %v1184_v31  ;;  %v2092_v25 = vshll.u32 %v1184_v31, 16  ;;  %v2090_v45 = vshrl.u32 %v1184_v31, 16 }
 0x10e   : > { %v1821_v19 = vpop.permute.xlu1 %1820  ;;  %v1087_v23 = vpop.permute.xlu0 %1086  ;;  %v2094_v37 = vrot.slane %v2092_v25, 1 }
 0x10f   : > { %v1186_v4 = vsel %vm1162_vm3, %v1153_v17, %v1087_v23  ;;  %v1949_v9 = vsel %vm1129_vm2, %v1917_v21, %v1821_v19 }
 0x110   : > { %3284 = vmatmul.mubr.msk.bf16.gmra.mxu0 %vm1207_vm4, %v1186_v4  ;;  %v2102_v29 = vshll.u32 %v1186_v4, 16  ;;  %v2100_v55 = vshrl.u32 %v1186_v4, 16  ;;  %v2095_v6 = vor.u32 %v2094_v37, %v2090_v45 }
 0x112   : > { %v1885_v47 = vpop.permute.xlu1 %1884  ;;  %v1819_v32 = vpop.permute.xlu0 %1818  ;;  %v2104_v43 = vrot.slane %v2102_v29, 1 }
 0x113   : > { %v1981_v27 = vsel %vm1162_vm3, %v1949_v9, %v1885_v47  ;;  %v1947_v38 = vsel %vm1129_vm2, %v1915_v12, %v1819_v32 }
 0x114   : > { %v2106_v28 = vshll.u32 %v1981_v27, 16  ;;  %v2105_v48 = vor.u32 %v2104_v43, %v2100_v55 }
 0x116   : > { %v707_v26 = vpop.permute.xlu1 %706  ;;  %v1883_v40 = vpop.permute.xlu0 %1882  ;;  %v2108_v5 = vrot.slane %v2106_v28, 1 }
 0x117   : > { %v1979_v44 = vsel %vm1162_vm3, %v1947_v38, %v1883_v40  ;;  %v1124_v0 = vsel %vm1096_vm1, %v3792_v35, %v707_v26 }
 0x118   : > { %v2096_v46 = vshll.u32 %v1979_v44, 16  ;;  %v2109_v20 = vsel %vm487_vm0, %v2105_v48, %v2108_v5 }
 0x11a   : > { %v819_v30 = vpop.permute.xlu1 %818  ;;  %v2098_v42 = vrot.slane %v2096_v46, 1  ;;  %v705_v22 = vpop.permute.xlu0 %704 }
 0x11b   : > { %v1122_v49 = vsel %vm1096_vm1, %v3807_v60, %v705_v22  ;;  %v1157_v52 = vsel %vm1129_vm2, %v1124_v0, %v819_v30 }
 0x11c   : > { %v2099_v51 = vsel %vm487_vm0, %v2095_v6, %v2098_v42 }
 0x11d   : > { %3317 = vmatprep.mubr.msk.bf16.mxu1 %vm1207_vm4, %v2099_v51 }
 0x11e   : > { %v1791_v54 = vpop.permute.xlu1 %1790  ;;  %3318 = vmatmul.mubr.msk.bf16.gmra.mxu1 %vm1207_vm4, %v2109_v20  ;;  %v817_v33 = vpop.permute.xlu0 %816 }
 0x11f   : > { %v1155_v18 = vsel %vm1129_vm2, %v1122_v49, %v817_v33  ;;  %v1919_v41 = vsel %vm1096_vm1, %v3821_v16, %v1791_v54 }
 0x122   : > { %v1793_v57 = vpop.permute.xlu1 %1792  ;;  %v1089_v3 = vpop.permute.xlu0 %1088 }
 0x123   : > { %v1188_v63 = vsel %vm1162_vm3, %v1155_v18, %v1089_v3  ;;  %v1921_v7 = vsel %vm1096_vm1, %v3801_v50, %v1793_v57 }
 0x124   : > { %3287 = vmatprep.mubr.msk.bf16.mxu0 %vm1207_vm4, %v1188_v63  ;;  %v2112_v11 = vshll.u32 %v1188_v63, 16  ;;  %v2110_v58 = vshrl.u32 %v1188_v63, 16 }
 0x126   : > { %v1825_v10 = vpop.permute.xlu1 %1824  ;;  %v1091_v34 = vpop.permute.xlu0 %1090  ;;  %v2114_v14 = vrot.slane %v2112_v11, 1 }
 0x127   : > { %v1190_v39 = vsel %vm1162_vm3, %v1157_v52, %v1091_v34  ;;  %v1953_v24 = vsel %vm1129_vm2, %v1921_v7, %v1825_v10 }
 0x128   : > { %3288 = vmatmul.mubr.msk.bf16.gmra.mxu0 %vm1207_vm4, %v1190_v39  ;;  %v2122_v59 = vshll.u32 %v1190_v39, 16  ;;  %v2120_v17 = vshrl.u32 %v1190_v39, 16  ;;  %v2115_v23 = vor.u32 %v2114_v14, %v2110_v58 }
 0x12a   : > { %v1889_v60 = vpop.permute.xlu1 %1888  ;;  %v1823_v35 = vpop.permute.xlu0 %1822  ;;  %v2124_v53 = vrot.slane %v2122_v59, 1 }
 0x12b   : > { %v1985_v1 = vsel %vm1162_vm3, %v1953_v24, %v1889_v60  ;;  %v1951_v50 = vsel %vm1129_vm2, %v1919_v41, %v1823_v35 }
 0x12c   : > { %v2126_v13 = vshll.u32 %v1985_v1, 16  ;;  %v2125_v9 = vor.u32 %v2124_v53, %v2120_v17 }
 0x12e   : > { %v711_v61 = vpop.permute.xlu1 %710  ;;  %v1887_v15 = vpop.permute.xlu0 %1886  ;;  %v2128_v21 = vrot.slane %v2126_v13, 1 }
 0x12f   : > { %v1983_v8 = vsel %vm1162_vm3, %v1951_v50, %v1887_v15  ;;  %v1128_v37 = vsel %vm1096_vm1, %v3867_v36, %v711_v61 }
 0x130   : > { %v2116_v31 = vshll.u32 %v1983_v8, 16  ;;  %v2129_v32 = vsel %vm487_vm0, %v2125_v9, %v2128_v21 }
 0x132   : > { %v823_v19 = vpop.permute.xlu1 %822  ;;  %v2118_v4 = vrot.slane %v2116_v31, 1  ;;  %v709_v47 = vpop.permute.xlu0 %708 }
 0x133   : > { %v1126_v26 = vsel %vm1096_vm1, %v3887_v2, %v709_v47  ;;  %v1161_v43 = vsel %vm1129_vm2, %v1128_v37, %v823_v19 }
 0x134   : > { %v2119_v25 = vsel %vm487_vm0, %v2115_v23, %v2118_v4 }
 0x135   : > { %3321 = vmatprep.mubr.msk.bf16.mxu1 %vm1207_vm4, %v2119_v25 }
 0x136   : > { %v1795_v16 = vpop.permute.xlu1 %1794  ;;  %3322 = vmatmul.mubr.msk.bf16.gmra.mxu1 %vm1207_vm4, %v2129_v32  ;;  %v821_v27 = vpop.permute.xlu0 %820 }
 0x137   : > { %v1159_v12 = vsel %vm1129_vm2, %v1126_v26, %v821_v27  ;;  %v1923_v42 = vsel %vm1096_vm1, %v3901_v62, %v1795_v16 }
 0x13a   : > { %v1797_v29 = vpop.permute.xlu1 %1796  ;;  %v1093_v28 = vpop.permute.xlu0 %1092 }
 0x13b   : > { %v1192_v38 = vsel %vm1162_vm3, %v1159_v12, %v1093_v28  ;;  %v1925_v44 = vsel %vm1096_vm1, %v3880_v56, %v1797_v29 }
 0x13c   : > { %3291 = vmatprep.mubr.msk.bf16.mxu0 %vm1207_vm4, %v1192_v38  ;;  %v2132_v55 = vshll.u32 %v1192_v38, 16  ;;  %v2130_v33 = vshrl.u32 %v1192_v38, 16 }
 0x13e   : > { %v1829_v40 = vpop.permute.xlu1 %1828  ;;  %v1095_v45 = vpop.permute.xlu0 %1094  ;;  %v2134_v48 = vrot.slane %v2132_v55, 1 }
 0x13f   : > { %v1194_v46 = vsel %vm1162_vm3, %v1161_v43, %v1095_v45  ;;  %v1957_v30 = vsel %vm1129_vm2, %v1925_v44, %v1829_v40 }
 0x140   : > { %3292 = vmatmul.mubr.msk.bf16.gmra.mxu0 %vm1207_vm4, %v1194_v46  ;;  %v2142_v6 = vshll.u32 %v1194_v46, 16  ;;  %v2140_v49 = vshrl.u32 %v1194_v46, 16  ;;  %v2135_v3 = vor.u32 %v2134_v48, %v2130_v33 }
 0x142   : > { %v1893_v2 = vpop.permute.xlu1 %1892  ;;  %v1827_v36 = vpop.permute.xlu0 %1826  ;;  %v2144_v54 = vrot.slane %v2142_v6, 1 }
 0x143   : > { %v1989_v5 = vsel %vm1162_vm3, %v1957_v30, %v1893_v2  ;;  %v1955_v56 = vsel %vm1129_vm2, %v1923_v42, %v1827_v36 }
 0x144   : > { %v2146_v22 = vshll.u32 %v1989_v5, 16  ;;  %v2145_v63 = vor.u32 %v2144_v54, %v2140_v49 }
 0x146   : > { %v1891_v51 = vpop.permute.xlu0 %1890  ;;  %v2148_v18 = vrot.slane %v2146_v22, 1 }
 0x147   : > { %v1987_v20 = vsel %vm1162_vm3, %v1955_v56, %v1891_v51 }
 0x148   : > { %v2136_v57 = vshll.u32 %v1987_v20, 16  ;;  %v2149_v10 = vsel %vm487_vm0, %v2145_v63, %v2148_v18 }
 0x14a   : > { %v2138_v0 = vrot.slane %v2136_v57, 1 }
 0x14c   : > { %v2139_v62 = vsel %vm487_vm0, %v2135_v3, %v2138_v0 }
 0x14d   : > { %3325 = vmatprep.mubr.msk.bf16.mxu1 %vm1207_vm4, %v2139_v62 }
 0x14e   : > { %3326 = vmatmul.mubr.msk.bf16.gmra.mxu1 %vm1207_vm4, %v2149_v10 }
 0x15d   : > { %v3265_v52 = vpop.f32.mrf.mxu0 }
 0x15e   : > { %v3164_v7 = vpack.c.bf16 %v3265_v52, %v3265_v52  ;;  %v1634_v35 = vmul.f32 %v3265_v52, %v3265_v52  ;;  %v1565_v50 = vsel %vm1129_vm2, %v3265_v52, 0.0 }
 0x15f   : > { %v1274_v34 = vpop.f32.mrf.mxu0 }
 0x160   : > { %1532 = vst.msk [vmem:[%s4093_s11 + $0x8] sm:$0xf] %vm1529_vm5, %v3164_v7  ;;  %v3162_v39 = vpack.c.bf16 %v1274_v34, %v1274_v34  ;;  %v1632_v24 = vmul.f32 %v1274_v34, %v1274_v34  ;;  %v1562_v59 = vsel %vm1129_vm2, %v1274_v34, 0.0  ;;  %v1667_v17 = vsel %vm1129_vm2, %v1634_v35, 0.0 }
 0x161   : > { %v3266_v60 = vpop.f32.mrf.mxu0 }
 0x162   : > { %1530 = vst.msk [vmem:[%s4093_s11] sm:$0xf] %vm1529_vm5, %v3162_v39  ;;  %v3165_v11 = vpack.c.bf16 %v3266_v60, %v3266_v60  ;;  %v1664_v15 = vsel %vm1129_vm2, %v1632_v24, 0.0  ;;  %v1635_v53 = vmul.f32 %v3266_v60, %v3266_v60  ;;  %v1567_v21 = vsel %vm1129_vm2, %v3266_v60, 0.0 }
 0x163   : > { %v1277_v1 = vpop.f32.mrf.mxu0 }
 0x164   : > { %1533 = vst.msk [vmem:[%s4093_s11 + $0xc] sm:$0xf] %vm1529_vm5, %v3165_v11  ;;  %v3163_v61 = vpack.c.bf16 %v1277_v1, %v1277_v1  ;;  %v1563_v41 = vsel %vm1129_vm2, %v1277_v1, 0.0  ;;  %v1633_v13 = vmul.f32 %v1277_v1, %v1277_v1  ;;  %v1669_v25 = vsel %vm1129_vm2, %v1635_v53, 0.0 }
 0x165   : > { %v1564_v14 = vadd.f32 %v1563_v41, %v1562_v59 }
 0x166   : > { %1531 = vst.msk [vmem:[%s4093_s11 + $0x4] sm:$0xf] %vm1529_vm5, %v3163_v61  ;;  %v1665_v8 = vsel %vm1129_vm2, %v1633_v13, 0.0  ;;  %v3299_v19 = vpop.f32.mrf.mxu1 }
 0x167   : > { %v1566_v58 = vadd.f32 %v1565_v50, %v1564_v14  ;;  %v1666_v31 = vadd.f32 %v1665_v8, %v1664_v15  ;;  %v3197_v23 = vpack.c.bf16 %v3299_v19, %v3299_v19  ;;  %v2604_v12 = vmul.f32 %v3299_v19, %v3299_v19 }
 0x168   : > { %v2244_v47 = vpop.f32.mrf.mxu1  ;;  %v2535_v45 = vsel %vm1129_vm2, %v3299_v19, 0.0 }
 0x169   : > { %v1668_v4 = vadd.f32 %v1667_v17, %v1666_v31  ;;  %v1568_v9 = vadd.f32 %v1567_v21, %v1566_v58  ;;  %3127 = vst.msk [vmem:[%s4093_s11 + $0x88] sm:$0xf] %vm1529_vm5, %v3197_v23  ;;  %v3195_v16 = vpack.c.bf16 %v2244_v47, %v2244_v47  ;;  %v2602_v29 = vmul.f32 %v2244_v47, %v2244_v47 }
 0x16a   : > { %v3300_v32 = vpop.f32.mrf.mxu1  ;;  %v2532_v37 = vsel %vm1129_vm2, %v2244_v47, 0.0  ;;  %v2637_v6 = vsel %vm1129_vm2, %v2604_v12, 0.0 }
 0x16b   : > { %v1670_v27 = vadd.f32 %v1669_v25, %v1668_v4  ;;  %3125 = vst.msk [vmem:[%s4093_s11 + $0x80] sm:$0xf] %vm1529_vm5, %v3195_v16  ;;  %v3198_v26 = vpack.c.bf16 %v3300_v32, %v3300_v32  ;;  %v2634_v46 = vsel %vm1129_vm2, %v2602_v29, 0.0  ;;  %v2605_v2 = vmul.f32 %v3300_v32, %v3300_v32 }
 0x16c   : > { %v2247_v28 = vpop.f32.mrf.mxu1  ;;  %v2537_v42 = vsel %vm1129_vm2, %v3300_v32, 0.0 }
 0x16d   : > { %3128 = vst.msk [vmem:[%s4093_s11 + $0x8c] sm:$0xf] %vm1529_vm5, %v3198_v26  ;;  %v3196_v38 = vpack.c.bf16 %v2247_v28, %v2247_v28  ;;  %v2533_v40 = vsel %vm1129_vm2, %v2247_v28, 0.0  ;;  %v2603_v43 = vmul.f32 %v2247_v28, %v2247_v28  ;;  %v2639_v54 = vsel %vm1129_vm2, %v2605_v2, 0.0 }
 0x16e   : > { %v2534_v44 = vadd.f32 %v2533_v40, %v2532_v37 }
 0x16f   : > { %3126 = vst.msk [vmem:[%s4093_s11 + $0x84] sm:$0xf] %vm1529_vm5, %v3196_v38  ;;  %v2635_v30 = vsel %vm1129_vm2, %v2603_v43, 0.0 }
 0x170   : > { %v2536_v55 = vadd.f32 %v2535_v45, %v2534_v44  ;;  %v2636_v36 = vadd.f32 %v2635_v30, %v2634_v46 }
 0x171   : > { %v3269_v5 = vpop.f32.mrf.mxu0 }
 0x172   : > { %v3168_v22 = vpack.c.bf16 %v3269_v5, %v3269_v5  ;;  %v2638_v48 = vadd.f32 %v2637_v6, %v2636_v36  ;;  %v2538_v51 = vadd.f32 %v2537_v42, %v2536_v55  ;;  %v1638_v52 = vmul.f32 %v3269_v5, %v3269_v5 }
 0x173   : > { %v1290_v56 = vpop.f32.mrf.mxu0  ;;  %v1573_v24 = vsel %vm1129_vm2, %v3269_v5, 0.0 }
 0x174   : > { %1536 = vst.msk [vmem:[%s4093_s11 + $0x18] sm:$0xf] %vm1529_vm5, %v3168_v22  ;;  %v3166_v20 = vpack.c.bf16 %v1290_v56, %v1290_v56  ;;  %v1569_v33 = vsel %vm1129_vm2, %v1290_v56, 0.0  ;;  %v1636_v57 = vmul.f32 %v1290_v56, %v1290_v56  ;;  %v2640_v3 = vadd.f32 %v2639_v54, %v2638_v48 }
 0x175   : > { %v1570_v49 = vadd.f32 %v1569_v33, %v1568_v9  ;;  %v3270_v18 = vpop.f32.mrf.mxu0  ;;  %v1675_v61 = vsel %vm1129_vm2, %v1638_v52, 0.0 }
 0x176   : > { %1534 = vst.msk [vmem:[%s4093_s11 + $0x10] sm:$0xf] %vm1529_vm5, %v3166_v20  ;;  %v1671_v0 = vsel %vm1129_vm2, %v1636_v57, 0.0  ;;  %v3169_v63 = vpack.c.bf16 %v3270_v18, %v3270_v18  ;;  %v1639_v11 = vmul.f32 %v3270_v18, %v3270_v18  ;;  %v1575_v41 = vsel %vm1129_vm2, %v3270_v18, 0.0 }
 0x177   : > { %v1672_v62 = vadd.f32 %v1671_v0, %v1670_v27  ;;  %v1293_v10 = vpop.f32.mrf.mxu0 }
 0x178   : > { %1537 = vst.msk [vmem:[%s4093_s11 + $0x1c] sm:$0xf] %vm1529_vm5, %v3169_v63  ;;  %v3167_v7 = vpack.c.bf16 %v1293_v10, %v1293_v10  ;;  %v1571_v34 = vsel %vm1129_vm2, %v1293_v10, 0.0  ;;  %v1637_v39 = vmul.f32 %v1293_v10, %v1293_v10  ;;  %v1677_v50 = vsel %vm1129_vm2, %v1639_v11, 0.0 }
 0x179   : > { %v1572_v60 = vadd.f32 %v1571_v34, %v1570_v49 }
 0x17a   : > { %1535 = vst.msk [vmem:[%s4093_s11 + $0x14] sm:$0xf] %vm1529_vm5, %v3167_v7  ;;  %v1673_v35 = vsel %vm1129_vm2, %v1637_v39, 0.0 }
 0x17b   : > { %v1574_v1 = vadd.f32 %v1573_v24, %v1572_v60  ;;  %v1674_v59 = vadd.f32 %v1673_v35, %v1672_v62 }
 0x17d   : > { %v1676_v13 = vadd.f32 %v1675_v61, %v1674_v59  ;;  %v1576_v14 = vadd.f32 %v1575_v41, %v1574_v1 }
 0x17e   : > { %v3303_v15 = vpop.f32.mrf.mxu1 }
 0x17f   : > { %v1678_v53 = vadd.f32 %v1677_v50, %v1676_v13  ;;  %v3201_v8 = vpack.c.bf16 %v3303_v15, %v3303_v15  ;;  %v2608_v16 = vmul.f32 %v3303_v15, %v3303_v15  ;;  %v2543_v12 = vsel %vm1129_vm2, %v3303_v15, 0.0 }
 0x180   : > { %v2260_v58 = vpop.f32.mrf.mxu1 }
 0x181   : > { %3131 = vst.msk [vmem:[%s4093_s11 + $0x98] sm:$0xf] %vm1529_vm5, %v3201_v8  ;;  %v3199_v31 = vpack.c.bf16 %v2260_v58, %v2260_v58  ;;  %v2539_v19 = vsel %vm1129_vm2, %v2260_v58, 0.0  ;;  %v2606_v17 = vmul.f32 %v2260_v58, %v2260_v58  ;;  %v2645_v44 = vsel %vm1129_vm2, %v2608_v16, 0.0 }
 0x182   : > { %v2540_v21 = vadd.f32 %v2539_v19, %v2538_v51  ;;  %v3304_v23 = vpop.f32.mrf.mxu1 }
 0x183   : > { %3129 = vst.msk [vmem:[%s4093_s11 + $0x90] sm:$0xf] %vm1529_vm5, %v3199_v31  ;;  %v2641_v4 = vsel %vm1129_vm2, %v2606_v17, 0.0  ;;  %v3202_v47 = vpack.c.bf16 %v3304_v23, %v3304_v23  ;;  %v2609_v28 = vmul.f32 %v3304_v23, %v3304_v23  ;;  %v2545_v45 = vsel %vm1129_vm2, %v3304_v23, 0.0 }
 0x184   : > { %v2642_v9 = vadd.f32 %v2641_v4, %v2640_v3  ;;  %v2263_v25 = vpop.f32.mrf.mxu1 }
 0x185   : > { %3132 = vst.msk [vmem:[%s4093_s11 + $0x9c] sm:$0xf] %vm1529_vm5, %v3202_v47  ;;  %v3200_v32 = vpack.c.bf16 %v2263_v25, %v2263_v25  ;;  %v2541_v27 = vsel %vm1129_vm2, %v2263_v25, 0.0  ;;  %v2607_v29 = vmul.f32 %v2263_v25, %v2263_v25  ;;  %v2647_v36 = vsel %vm1129_vm2, %v2609_v28, 0.0 }
 0x186   : > { %v2542_v26 = vadd.f32 %v2541_v27, %v2540_v21 }
 0x187   : > { %3130 = vst.msk [vmem:[%s4093_s11 + $0x94] sm:$0xf] %vm1529_vm5, %v3200_v32  ;;  %v2643_v37 = vsel %vm1129_vm2, %v2607_v29, 0.0 }
 0x188   : > { %v2544_v38 = vadd.f32 %v2543_v12, %v2542_v26  ;;  %v2644_v40 = vadd.f32 %v2643_v37, %v2642_v9 }
 0x189   : > { %v3273_v43 = vpop.f32.mrf.mxu0 }
 0x18a   : > { %v3172_v46 = vpack.c.bf16 %v3273_v43, %v3273_v43  ;;  %v2646_v2 = vadd.f32 %v2645_v44, %v2644_v40  ;;  %v2546_v55 = vadd.f32 %v2545_v45, %v2544_v38  ;;  %v1642_v57 = vmul.f32 %v3273_v43, %v3273_v43 }
 0x18b   : > { %v1306_v30 = vpop.f32.mrf.mxu0  ;;  %v1581_v63 = vsel %vm1129_vm2, %v3273_v43, 0.0 }
 0x18c   : > { %1540 = vst.msk [vmem:[%s4093_s11 + $0x28] sm:$0xf] %vm1529_vm5, %v3172_v46  ;;  %v3170_v5 = vpack.c.bf16 %v1306_v30, %v1306_v30  ;;  %v1577_v6 = vsel %vm1129_vm2, %v1306_v30, 0.0  ;;  %v1640_v42 = vmul.f32 %v1306_v30, %v1306_v30  ;;  %v2648_v56 = vadd.f32 %v2647_v36, %v2646_v2 }
 0x18d   : > { %v1578_v22 = vadd.f32 %v1577_v6, %v1576_v14  ;;  %v3274_v48 = vpop.f32.mrf.mxu0  ;;  %v1683_v34 = vsel %vm1129_vm2, %v1642_v57, 0.0 }
 0x18e   : > { %1538 = vst.msk [vmem:[%s4093_s11 + $0x20] sm:$0xf] %vm1529_vm5, %v3170_v5  ;;  %v1679_v51 = vsel %vm1129_vm2, %v1640_v42, 0.0  ;;  %v3173_v54 = vpack.c.bf16 %v3274_v48, %v3274_v48  ;;  %v1643_v62 = vmul.f32 %v3274_v48, %v3274_v48  ;;  %v1583_v39 = vsel %vm1129_vm2, %v3274_v48, 0.0 }
 0x18f   : > { %v1680_v20 = vadd.f32 %v1679_v51, %v1678_v53  ;;  %v1309_v33 = vpop.f32.mrf.mxu0 }
 0x190   : > { %1541 = vst.msk [vmem:[%s4093_s11 + $0x2c] sm:$0xf] %vm1529_vm5, %v3173_v54  ;;  %v3171_v49 = vpack.c.bf16 %v1309_v33, %v1309_v33  ;;  %v1579_v18 = vsel %vm1129_vm2, %v1309_v33, 0.0  ;;  %v1641_v3 = vmul.f32 %v1309_v33, %v1309_v33  ;;  %v1685_v11 = vsel %vm1129_vm2, %v1643_v62, 0.0 }
 0x191   : > { %v1580_v0 = vadd.f32 %v1579_v18, %v1578_v22 }
 0x192   : > { %1539 = vst.msk [vmem:[%s4093_s11 + $0x24] sm:$0xf] %vm1529_vm5, %v3171_v49  ;;  %v1681_v10 = vsel %vm1129_vm2, %v1641_v3, 0.0 }
 0x193   : > { %v1582_v52 = vadd.f32 %v1581_v63, %v1580_v0  ;;  %v1682_v7 = vadd.f32 %v1681_v10, %v1680_v20 }
 0x195   : > { %v1684_v60 = vadd.f32 %v1683_v34, %v1682_v7  ;;  %v1584_v24 = vadd.f32 %v1583_v39, %v1582_v52 }
 0x196   : > { %v3307_v35 = vpop.f32.mrf.mxu1 }
 0x197   : > { %v1686_v1 = vadd.f32 %v1685_v11, %v1684_v60  ;;  %v3205_v59 = vpack.c.bf16 %v3307_v35, %v3307_v35  ;;  %v2612_v19 = vmul.f32 %v3307_v35, %v3307_v35  ;;  %v2551_v47 = vsel %vm1129_vm2, %v3307_v35, 0.0 }
 0x198   : > { %v2276_v61 = vpop.f32.mrf.mxu1 }
 0x199   : > { %3135 = vst.msk [vmem:[%s4093_s11 + $0xa8] sm:$0xf] %vm1529_vm5, %v3205_v59  ;;  %v3203_v41 = vpack.c.bf16 %v2276_v61, %v2276_v61  ;;  %v2547_v13 = vsel %vm1129_vm2, %v2276_v61, 0.0  ;;  %v2610_v14 = vmul.f32 %v2276_v61, %v2276_v61  ;;  %v2653_v29 = vsel %vm1129_vm2, %v2612_v19, 0.0 }
 0x19a   : > { %v2548_v50 = vadd.f32 %v2547_v13, %v2546_v55  ;;  %v3308_v15 = vpop.f32.mrf.mxu1 }
 0x19b   : > { %3133 = vst.msk [vmem:[%s4093_s11 + $0xa0] sm:$0xf] %vm1529_vm5, %v3203_v41  ;;  %v2649_v53 = vsel %vm1129_vm2, %v2610_v14, 0.0  ;;  %v3206_v8 = vpack.c.bf16 %v3308_v15, %v3308_v15  ;;  %v2613_v9 = vmul.f32 %v3308_v15, %v3308_v15  ;;  %v2553_v26 = vsel %vm1129_vm2, %v3308_v15, 0.0 }
 0x19c   : > { %v2650_v58 = vadd.f32 %v2649_v53, %v2648_v56  ;;  %v2279_v31 = vpop.f32.mrf.mxu1 }
 0x19d   : > { %3136 = vst.msk [vmem:[%s4093_s11 + $0xac] sm:$0xf] %vm1529_vm5, %v3206_v8  ;;  %v3204_v17 = vpack.c.bf16 %v2279_v31, %v2279_v31  ;;  %v2549_v21 = vsel %vm1129_vm2, %v2279_v31, 0.0  ;;  %v2611_v23 = vmul.f32 %v2279_v31, %v2279_v31  ;;  %v2655_v40 = vsel %vm1129_vm2, %v2613_v9, 0.0 }
 0x19e   : > { %v2550_v4 = vadd.f32 %v2549_v21, %v2548_v50 }
 0x19f   : > { %3134 = vst.msk [vmem:[%s4093_s11 + $0xa4] sm:$0xf] %vm1529_vm5, %v3204_v17  ;;  %v2651_v25 = vsel %vm1129_vm2, %v2611_v23, 0.0 }
 0x1a0   : > { %v2552_v16 = vadd.f32 %v2551_v47, %v2550_v4  ;;  %v2652_v32 = vadd.f32 %v2651_v25, %v2650_v58  ;;  %v3277_v27 = vpop.f32.mrf.mxu0 }
 0x1a1   : > { %v3176_v12 = vpack.c.bf16 %v3277_v27, %v3277_v27  ;;  %v1646_v42 = vmul.f32 %v3277_v27, %v3277_v27  ;;  %v1589_v54 = vsel %vm1129_vm2, %v3277_v27, 0.0 }
 0x1a2   : > { %v2654_v28 = vadd.f32 %v2653_v29, %v2652_v32  ;;  %v1322_v37 = vpop.f32.mrf.mxu0  ;;  %v2554_v38 = vadd.f32 %v2553_v26, %v2552_v16 }
 0x1a3   : > { %1544 = vst.msk [vmem:[%s4093_s11 + $0x38] sm:$0xf] %vm1529_vm5, %v3176_v12  ;;  %v3174_v43 = vpack.c.bf16 %v1322_v37, %v1322_v37  ;;  %v1585_v44 = vsel %vm1129_vm2, %v1322_v37, 0.0  ;;  %v1644_v45 = vmul.f32 %v1322_v37, %v1322_v37  ;;  %v1691_v18 = vsel %vm1129_vm2, %v1646_v42, 0.0 }
 0x1a4   : > { %v1586_v46 = vadd.f32 %v1585_v44, %v1584_v24  ;;  %v3278_v2 = vpop.f32.mrf.mxu0  ;;  %v2656_v30 = vadd.f32 %v2655_v40, %v2654_v28 }
 0x1a5   : > { %1542 = vst.msk [vmem:[%s4093_s11 + $0x30] sm:$0xf] %vm1529_vm5, %v3174_v43  ;;  %v1687_v55 = vsel %vm1129_vm2, %v1644_v45, 0.0  ;;  %v3177_v36 = vpack.c.bf16 %v3278_v2, %v3278_v2  ;;  %v1647_v20 = vmul.f32 %v3278_v2, %v3278_v2  ;;  %v1591_v3 = vsel %vm1129_vm2, %v3278_v2, 0.0 }
 0x1a6   : > { %v1688_v5 = vadd.f32 %v1687_v55, %v1686_v1  ;;  %v1325_v6 = vpop.f32.mrf.mxu0 }
 0x1a7   : > { %1545 = vst.msk [vmem:[%s4093_s11 + $0x3c] sm:$0xf] %vm1529_vm5, %v3177_v36  ;;  %v3175_v22 = vpack.c.bf16 %v1325_v6, %v1325_v6  ;;  %v1587_v48 = vsel %vm1129_vm2, %v1325_v6, 0.0  ;;  %v1645_v56 = vmul.f32 %v1325_v6, %v1325_v6  ;;  %v1693_v62 = vsel %vm1129_vm2, %v1647_v20, 0.0 }
 0x1a8   : > { %v1588_v51 = vadd.f32 %v1587_v48, %v1586_v46 }
 0x1a9   : > { %1543 = vst.msk [vmem:[%s4093_s11 + $0x34] sm:$0xf] %vm1529_vm5, %v3175_v22  ;;  %v1689_v33 = vsel %vm1129_vm2, %v1645_v56, 0.0 }
 0x1aa   : > { %v1590_v57 = vadd.f32 %v1589_v54, %v1588_v51  ;;  %v1690_v49 = vadd.f32 %v1689_v33, %v1688_v5 }
 0x1ac   : > { %v1692_v0 = vadd.f32 %v1691_v18, %v1690_v49  ;;  %v1592_v63 = vadd.f32 %v1591_v3, %v1590_v57 }
 0x1ae   : > { %v3311_v10 = vpop.f32.mrf.mxu1  ;;  %v1694_v52 = vadd.f32 %v1693_v62, %v1692_v0 }
 0x1af   : > { %v3209_v7 = vpack.c.bf16 %v3311_v10, %v3311_v10  ;;  %v2616_v13 = vmul.f32 %v3311_v10, %v3311_v10  ;;  %v2559_v8 = vsel %vm1129_vm2, %v3311_v10, 0.0 }
 0x1b0   : > { %v2292_v34 = vpop.f32.mrf.mxu1 }
 0x1b1   : > { %3139 = vst.msk [vmem:[%s4093_s11 + $0xb8] sm:$0xf] %vm1529_vm5, %v3209_v7  ;;  %v3207_v39 = vpack.c.bf16 %v2292_v34, %v2292_v34  ;;  %v2555_v60 = vsel %vm1129_vm2, %v2292_v34, 0.0  ;;  %v2614_v24 = vmul.f32 %v2292_v34, %v2292_v34  ;;  %v2661_v23 = vsel %vm1129_vm2, %v2616_v13, 0.0 }
 0x1b2   : > { %v2556_v11 = vadd.f32 %v2555_v60, %v2554_v38  ;;  %v3312_v35 = vpop.f32.mrf.mxu1 }
 0x1b3   : > { %3137 = vst.msk [vmem:[%s4093_s11 + $0xb0] sm:$0xf] %vm1529_vm5, %v3207_v39  ;;  %v2657_v1 = vsel %vm1129_vm2, %v2614_v24, 0.0  ;;  %v3210_v59 = vpack.c.bf16 %v3312_v35, %v3312_v35  ;;  %v2617_v58 = vmul.f32 %v3312_v35, %v3312_v35  ;;  %v2561_v4 = vsel %vm1129_vm2, %v3312_v35, 0.0 }
 0x1b4   : > { %v2658_v61 = vadd.f32 %v2657_v1, %v2656_v30  ;;  %v2295_v41 = vpop.f32.mrf.mxu1 }
 0x1b5   : > { %3140 = vst.msk [vmem:[%s4093_s11 + $0xbc] sm:$0xf] %vm1529_vm5, %v3210_v59  ;;  %v3208_v14 = vpack.c.bf16 %v2295_v41, %v2295_v41  ;;  %v2557_v50 = vsel %vm1129_vm2, %v2295_v41, 0.0  ;;  %v2615_v15 = vmul.f32 %v2295_v41, %v2295_v41  ;;  %v2663_v32 = vsel %vm1129_vm2, %v2617_v58, 0.0 }
 0x1b6   : > { %v2558_v53 = vadd.f32 %v2557_v50, %v2556_v11 }
 0x1b7   : > { %3138 = vst.msk [vmem:[%s4093_s11 + $0xb4] sm:$0xf] %vm1529_vm5, %v3208_v14  ;;  %v2659_v31 = vsel %vm1129_vm2, %v2615_v15, 0.0 }
 0x1b8   : > { %v2560_v19 = vadd.f32 %v2559_v8, %v2558_v53  ;;  %v2660_v17 = vadd.f32 %v2659_v31, %v2658_v61  ;;  %v3281_v21 = vpop.f32.mrf.mxu0 }
 0x1b9   : > { %v3180_v47 = vpack.c.bf16 %v3281_v21, %v3281_v21  ;;  %v1650_v45 = vmul.f32 %v3281_v21, %v3281_v21  ;;  %v1597_v36 = vsel %vm1129_vm2, %v3281_v21, 0.0 }
 0x1ba   : > { %v2662_v9 = vadd.f32 %v2661_v23, %v2660_v17  ;;  %v1338_v25 = vpop.f32.mrf.mxu0  ;;  %v4222_v16 = vadd.f32 %v2561_v4, %v2560_v19 }
 0x1bb   : > { %1548 = vst.msk [vmem:[%s4093_s11 + $0x48] sm:$0xf] %vm1529_vm5, %v3180_v47  ;;  %v3178_v27 = vpack.c.bf16 %v1338_v25, %v1338_v25  ;;  %v1593_v29 = vsel %vm1129_vm2, %v1338_v25, 0.0  ;;  %v1648_v26 = vmul.f32 %v1338_v25, %v1338_v25  ;;  %v1699_v48 = vsel %vm1129_vm2, %v1650_v45, 0.0 }
 0x1bc   : > { %v1594_v12 = vadd.f32 %v1593_v29, %v1592_v63  ;;  %v3282_v28 = vpop.f32.mrf.mxu0  ;;  %v4228_v37 = vadd.f32 %v2663_v32, %v2662_v9 }
 0x1bd   : > { %1546 = vst.msk [vmem:[%s4093_s11 + $0x40] sm:$0xf] %vm1529_vm5, %v3178_v27  ;;  %v1695_v38 = vsel %vm1129_vm2, %v1648_v26, 0.0  ;;  %v3181_v40 = vpack.c.bf16 %v3282_v28, %v3282_v28  ;;  %v1651_v5 = vmul.f32 %v3282_v28, %v3282_v28  ;;  %v1599_v56 = vsel %vm1129_vm2, %v3282_v28, 0.0 }
 0x1be   : > { %v1696_v43 = vadd.f32 %v1695_v38, %v1694_v52  ;;  %v1341_v44 = vpop.f32.mrf.mxu0 }
 0x1bf   : > { %1549 = vst.msk [vmem:[%s4093_s11 + $0x4c] sm:$0xf] %vm1529_vm5, %v3181_v40  ;;  %v3179_v46 = vpack.c.bf16 %v1341_v44, %v1341_v44  ;;  %v1595_v2 = vsel %vm1129_vm2, %v1341_v44, 0.0  ;;  %v1649_v30 = vmul.f32 %v1341_v44, %v1341_v44  ;;  %v1701_v20 = vsel %vm1129_vm2, %v1651_v5, 0.0 }
 0x1c0   : > { %v1596_v55 = vadd.f32 %v1595_v2, %v1594_v12 }
 0x1c1   : > { %1547 = vst.msk [vmem:[%s4093_s11 + $0x44] sm:$0xf] %vm1529_vm5, %v3179_v46  ;;  %v1697_v6 = vsel %vm1129_vm2, %v1649_v30, 0.0 }
 0x1c2   : > { %v1598_v42 = vadd.f32 %v1597_v36, %v1596_v55  ;;  %v1698_v22 = vadd.f32 %v1697_v6, %v1696_v43 }
 0x1c4   : > { %v1700_v51 = vadd.f32 %v1699_v48, %v1698_v22  ;;  %v1600_v54 = vadd.f32 %v1599_v56, %v1598_v42 }
 0x1c6   : > { %v4243_v33 = vpop.f32.mrf.mxu1  ;;  %v4245_v57 = vadd.f32 %v1701_v20, %v1700_v51 }
 0x1c7   : > { %v3213_v49 = vpack.c.bf16 %v4243_v33, %v4243_v33  ;;  %v2620_v40 = vmul.f32 %v4243_v33, %v4243_v33  ;;  %v2567_v6 = vsel %vm1129_vm2, %v4243_v33, 0.0 }
 0x1c8   : > { %v2308_v18 = vpop.f32.mrf.mxu1 }
 0x1c9   : > { %3143 = vst.msk [vmem:[%s4093_s11 + $0xc8] sm:$0xf] %vm1529_vm5, %v3213_v49  ;;  %v3211_v3 = vpack.c.bf16 %v2308_v18, %v2308_v18  ;;  %v2618_v53 = vmul.f32 %v2308_v18, %v2308_v18  ;;  %v2563_v19 = vsel %vm1129_vm2, %v2308_v18, 0.0  ;;  %v2669_v22 = vsel %vm1129_vm2, %v2620_v40, 0.0 }
 0x1ca   : > { %v4251_v0 = vpop.f32.mrf.mxu1  ;;  %v2564_v12 = vadd.f32 %v2563_v19, %v4222_v16 }
 0x1cb   : > { %3141 = vst.msk [vmem:[%s4093_s11 + $0xc0] sm:$0xf] %vm1529_vm5, %v3211_v3  ;;  %v3214_v63 = vpack.c.bf16 %v4251_v0, %v4251_v0  ;;  %v2665_v9 = vsel %vm1129_vm2, %v2618_v53, 0.0  ;;  %v2569_v51 = vsel %vm1129_vm2, %v4251_v0, 0.0 }
 0x1cc   : > { %v2311_v62 = vpop.f32.mrf.mxu1  ;;  %v2666_v46 = vadd.f32 %v2665_v9, %v4228_v37 }
 0x1cd   : > { %3144 = vst.msk [vmem:[%s4093_s11 + $0xcc] sm:$0xf] %vm1529_vm5, %v3214_v63  ;;  %v3212_v10 = vpack.c.bf16 %v2311_v62, %v2311_v62  ;;  %v2619_v21 = vmul.f32 %v2311_v62, %v2311_v62  ;;  %v2565_v32 = vsel %vm1129_vm2, %v2311_v62, 0.0 }
 0x1ce   : > { %v2566_v2 = vadd.f32 %v2565_v32, %v2564_v12 }
 0x1cf   : > { %3142 = vst.msk [vmem:[%s4093_s11 + $0xc4] sm:$0xf] %vm1529_vm5, %v3212_v10  ;;  %v2667_v43 = vsel %vm1129_vm2, %v2619_v21, 0.0 }
 0x1d0   : > { %v3285_v52 = vpop.f32.mrf.mxu0  ;;  %v2668_v16 = vadd.f32 %v2667_v43, %v2666_v46  ;;  %v2568_v48 = vadd.f32 %v2567_v6, %v2566_v2 }
 0x1d1   : > { %v3184_v7 = vpack.c.bf16 %v3285_v52, %v3285_v52  ;;  %v1654_v36 = vmul.f32 %v3285_v52, %v3285_v52  ;;  %v1605_v42 = vsel %vm1129_vm2, %v3285_v52, 0.0 }
 0x1d2   : > { %v1354_v34 = vpop.f32.mrf.mxu0  ;;  %v2670_v49 = vadd.f32 %v2669_v22, %v2668_v16 }
 0x1d3   : > { %1552 = vst.msk [vmem:[%s4093_s11 + $0x58] sm:$0xf] %vm1529_vm5, %v3184_v7  ;;  %v3182_v39 = vpack.c.bf16 %v1354_v34, %v1354_v34  ;;  %v1652_v58 = vmul.f32 %v1354_v34, %v1354_v34  ;;  %v1601_v23 = vsel %vm1129_vm2, %v1354_v34, 0.0  ;;  %v1707_v20 = vsel %vm1129_vm2, %v1654_v36, 0.0 }
 0x1d4   : > { %v4263_v60 = vpop.f32.mrf.mxu0  ;;  %v1602_v28 = vadd.f32 %v1601_v23, %v1600_v54  ;;  %v2621_v54 = vmul.f32 %v4251_v0, %v4251_v0  ;;  %v2570_v34 = vadd.f32 %v2569_v51, %v2568_v48 }
 0x1d5   : > { %1550 = vst.msk [vmem:[%s4093_s11 + $0x50] sm:$0xf] %vm1529_vm5, %v3182_v39  ;;  %v3185_v24 = vpack.c.bf16 %v4263_v60, %v4263_v60  ;;  %v1703_v27 = vsel %vm1129_vm2, %v1652_v58, 0.0  ;;  %v1655_v37 = vmul.f32 %v4263_v60, %v4263_v60  ;;  %v1607_v33 = vsel %vm1129_vm2, %v4263_v60, 0.0 }
 0x1d6   : > { %v1357_v11 = vpop.f32.mrf.mxu0  ;;  %v1704_v30 = vadd.f32 %v1703_v27, %v4245_v57  ;;  %v2671_v58 = vsel %vm1129_vm2, %v2621_v54, 0.0 }
 0x1d7   : > { %1553 = vst.msk [vmem:[%s4093_s11 + $0x5c] sm:$0xf] %vm1529_vm5, %v3185_v24  ;;  %v3183_v35 = vpack.c.bf16 %v1357_v11, %v1357_v11  ;;  %v1653_v4 = vmul.f32 %v1357_v11, %v1357_v11  ;;  %v1603_v29 = vsel %vm1129_vm2, %v1357_v11, 0.0  ;;  %v1709_v7 = vsel %vm1129_vm2, %v1655_v37, 0.0 }
 0x1d8   : > { %v1604_v55 = vadd.f32 %v1603_v29, %v1602_v28 }
 0x1d9   : > { %1551 = vst.msk [vmem:[%s4093_s11 + $0x54] sm:$0xf] %vm1529_vm5, %v3183_v35  ;;  %v1705_v44 = vsel %vm1129_vm2, %v1653_v4, 0.0 }
 0x1da   : > { %v1706_v5 = vadd.f32 %v1705_v44, %v1704_v30  ;;  %v1606_v56 = vadd.f32 %v1605_v42, %v1604_v55 }
 0x1dc   : > { %v1708_v18 = vadd.f32 %v1707_v20, %v1706_v5  ;;  %v1608_v60 = vadd.f32 %v1607_v33, %v1606_v56 }
 0x1de   : > { %v4273_v1 = vpop.f32.mrf.mxu1 }
 0x1df   : > { %v3217_v59 = vpack.c.bf16 %v4273_v1, %v4273_v1  ;;  %v2624_v9 = vmul.f32 %v4273_v1, %v4273_v1 }
 0x1e0   : > { %v2324_v61 = vpop.f32.mrf.mxu1 }
 0x1e1   : > { %3147 = vst.msk [vmem:[%s4093_s11 + $0xd8] sm:$0xf] %vm1529_vm5, %v3217_v59  ;;  %v3215_v41 = vpack.c.bf16 %v2324_v61, %v2324_v61  ;;  %v2571_v3 = vsel %vm1129_vm2, %v2324_v61, 0.0  ;;  %v2622_v62 = vmul.f32 %v2324_v61, %v2324_v61  ;;  %v2677_v30 = vsel %vm1129_vm2, %v2624_v9, 0.0 }
 0x1e2   : > { %v4279_v13 = vpop.f32.mrf.mxu1 }
 0x1e3   : > { %3145 = vst.msk [vmem:[%s4093_s11 + $0xd0] sm:$0xf] %vm1529_vm5, %v3215_v41  ;;  %v3218_v14 = vpack.c.bf16 %v4279_v13, %v4279_v13  ;;  %v2572_v41 = vadd.f32 %v2571_v3, %v2570_v34  ;;  %v2625_v12 = vmul.f32 %v4279_v13, %v4279_v13 }
 0x1e4   : > { %v2327_v50 = vpop.f32.mrf.mxu1 }
 0x1e5   : > { %3148 = vst.msk [vmem:[%s4093_s11 + $0xdc] sm:$0xf] %vm1529_vm5, %v3218_v14  ;;  %v3216_v15 = vpack.c.bf16 %v2327_v50, %v2327_v50  ;;  %v2573_v39 = vsel %vm1129_vm2, %v2327_v50, 0.0  ;;  %v2623_v11 = vmul.f32 %v2327_v50, %v2327_v50 }
 0x1e6   : > { %v2574_v21 = vadd.f32 %v2573_v39, %v2572_v41 }
 0x1e7   : > { %3146 = vst.msk [vmem:[%s4093_s11 + $0xd4] sm:$0xf] %vm1529_vm5, %v3216_v15  ;;  %v1710_v15 = vadd.f32 %v1709_v7, %v1708_v18  ;;  %v2675_v32 = vsel %vm1129_vm2, %v2623_v11, 0.0 }
 0x1e8   : > { %v4289_v8 = vpop.f32.mrf.mxu0 }
 0x1e9   : > { %v3188_v31 = vpack.c.bf16 %v4289_v8, %v4289_v8  ;;  %v1658_v27 = vmul.f32 %v4289_v8, %v4289_v8  ;;  %v1613_v40 = vsel %vm1129_vm2, %v4289_v8, 0.0  ;;  %v2679_v8 = vsel %vm1129_vm2, %v2625_v12, 0.0 }
 0x1ea   : > { %v1370_v17 = vpop.f32.mrf.mxu0 }
 0x1eb   : > { %1556 = vst.msk [vmem:[%s4093_s11 + $0x68] sm:$0xf] %vm1529_vm5, %v3188_v31  ;;  %v3186_v47 = vpack.c.bf16 %v1370_v17, %v1370_v17  ;;  %v1656_v57 = vmul.f32 %v1370_v17, %v1370_v17  ;;  %v1609_v10 = vsel %vm1129_vm2, %v1370_v17, 0.0  ;;  %v2673_v31 = vsel %vm1129_vm2, %v2622_v62, 0.0 }
 0x1ec   : > { %v4298_v25 = vpop.f32.mrf.mxu0  ;;  %v1610_v14 = vadd.f32 %v1609_v10, %v1608_v60  ;;  %v2672_v17 = vadd.f32 %v2671_v58, %v2670_v49  ;;  %v1715_v55 = vsel %vm1129_vm2, %v1658_v27, 0.0 }
 0x1ed   : > { %1554 = vst.msk [vmem:[%s4093_s11 + $0x60] sm:$0xf] %vm1529_vm5, %v3186_v47  ;;  %v3189_v26 = vpack.c.bf16 %v4298_v25, %v4298_v25  ;;  %v1711_v35 = vsel %vm1129_vm2, %v1656_v57, 0.0  ;;  %v1615_v42 = vsel %vm1129_vm2, %v4298_v25, 0.0 }
 0x1ee   : > { %v1373_v38 = vpop.f32.mrf.mxu0  ;;  %v1712_v23 = vadd.f32 %v1711_v35, %v1710_v15 }
 0x1ef   : > { %1557 = vst.msk [vmem:[%s4093_s11 + $0x6c] sm:$0xf] %vm1529_vm5, %v3189_v26  ;;  %v3187_v45 = vpack.c.bf16 %v1373_v38, %v1373_v38  ;;  %v1657_v52 = vmul.f32 %v1373_v38, %v1373_v38  ;;  %v1611_v59 = vsel %vm1129_vm2, %v1373_v38, 0.0  ;;  %v2674_v26 = vadd.f32 %v2673_v31, %v2672_v17 }
 0x1f0   : > { %v1612_v4 = vadd.f32 %v1611_v59, %v1610_v14  ;;  %v2575_v38 = vsel %vm1129_vm2, %v4273_v1, 0.0  ;;  %v2577_v1 = vsel %vm1129_vm2, %v4279_v13, 0.0 }
 0x1f1   : > { %1555 = vst.msk [vmem:[%s4093_s11 + $0x64] sm:$0xf] %vm1529_vm5, %v3187_v45  ;;  %v1713_v19 = vsel %vm1129_vm2, %v1657_v52, 0.0  ;;  %v2576_v43 = vadd.f32 %v2575_v38, %v2574_v21  ;;  %v2676_v44 = vadd.f32 %v2675_v32, %v2674_v26  ;;  %v1659_v45 = vmul.f32 %v4298_v25, %v4298_v25 }
 0x1f2   : > { %v1714_v28 = vadd.f32 %v1713_v19, %v1712_v23  ;;  %v1614_v46 = vadd.f32 %v1613_v40, %v1612_v4 }
 0x1f3   : > { %v2678_v56 = vadd.f32 %v2677_v30, %v2676_v44  ;;  %v1717_v51 = vsel %vm1129_vm2, %v1659_v45, 0.0  ;;  %v2578_v13 = vadd.f32 %v2577_v1, %v2576_v43 }
 0x1f4   : > { %v1716_v16 = vadd.f32 %v1715_v55, %v1714_v28  ;;  %v1616_v54 = vadd.f32 %v1615_v42, %v1614_v46 }
 0x1f6   : > { %v4332_v63 = vpop.f32.mrf.mxu1  ;;  %v1718_v10 = vadd.f32 %v1717_v51, %v1716_v16 }
 0x1f7   : > { %v3221_v0 = vpack.c.bf16 %v4332_v63, %v4332_v63  ;;  %v2628_v19 = vmul.f32 %v4332_v63, %v4332_v63  ;;  %v2583_v4 = vsel %vm1129_vm2, %v4332_v63, 0.0 }
 0x1f8   : > { %v2340_v24 = vpop.f32.mrf.mxu1 }
 0x1f9   : > { %3151 = vst.msk [vmem:[%s4093_s11 + $0xe8] sm:$0xf] %vm1529_vm5, %v3221_v0  ;;  %v3219_v61 = vpack.c.bf16 %v2340_v24, %v2340_v24  ;;  %v2626_v5 = vmul.f32 %v2340_v24, %v2340_v24  ;;  %v2579_v57 = vsel %vm1129_vm2, %v2340_v24, 0.0  ;;  %v2680_v24 = vadd.f32 %v2679_v8, %v2678_v56 }
 0x1fa   : > { %v4343_v53 = vpop.f32.mrf.mxu1  ;;  %v2580_v60 = vadd.f32 %v2579_v57, %v2578_v13 }
 0x1fb   : > { %3149 = vst.msk [vmem:[%s4093_s11 + $0xe0] sm:$0xf] %vm1529_vm5, %v3219_v61  ;;  %v3222_v50 = vpack.c.bf16 %v4343_v53, %v4343_v53  ;;  %v2681_v18 = vsel %vm1129_vm2, %v2626_v5, 0.0  ;;  %v2629_v26 = vmul.f32 %v4343_v53, %v4343_v53  ;;  %v2585_v63 = vsel %vm1129_vm2, %v4343_v53, 0.0 }
 0x1fc   : > { %v2343_v47 = vpop.f32.mrf.mxu1  ;;  %v2682_v14 = vadd.f32 %v2681_v18, %v2680_v24 }
 0x1fd   : > { %3152 = vst.msk [vmem:[%s4093_s11 + $0xec] sm:$0xf] %vm1529_vm5, %v3222_v50  ;;  %v3220_v29 = vpack.c.bf16 %v2343_v47, %v2343_v47  ;;  %v2627_v49 = vmul.f32 %v2343_v47, %v2343_v47  ;;  %v2581_v3 = vsel %vm1129_vm2, %v2343_v47, 0.0 }
 0x1fe   : > { %v2582_v15 = vadd.f32 %v2581_v3, %v2580_v60 }
 0x1ff   : > { %3150 = vst.msk [vmem:[%s4093_s11 + $0xe4] sm:$0xf] %vm1529_vm5, %v3220_v29  ;;  %v2683_v59 = vsel %vm1129_vm2, %v2627_v49, 0.0  ;;  %v2685_v29 = vsel %vm1129_vm2, %v2628_v19, 0.0 }
 0x200   : > { %v3293_v2 = vpop.f32.mrf.mxu0  ;;  %v2684_v21 = vadd.f32 %v2683_v59, %v2682_v14  ;;  %v2584_v9 = vadd.f32 %v2583_v4, %v2582_v15 }
 0x201   : > { %v3192_v36 = vpack.c.bf16 %v3293_v2, %v3293_v2  ;;  %v1662_v0 = vmul.f32 %v3293_v2, %v3293_v2  ;;  %v1621_v61 = vsel %vm1129_vm2, %v3293_v2, 0.0 }
 0x202   : > { %v1386_v6 = vpop.f32.mrf.mxu0  ;;  %v2686_v38 = vadd.f32 %v2685_v29, %v2684_v21  ;;  %v2586_v30 = vadd.f32 %v2585_v63, %v2584_v9 }
 0x203   : > { %1560 = vst.msk [vmem:[%s4093_s11 + $0x78] sm:$0xf] %vm1529_vm5, %v3192_v36  ;;  %v3190_v22 = vpack.c.bf16 %v1386_v6, %v1386_v6  ;;  %v1617_v48 = vsel %vm1129_vm2, %v1386_v6, 0.0  ;;  %v1660_v37 = vmul.f32 %v1386_v6, %v1386_v6  ;;  %v1723_v50 = vsel %vm1129_vm2, %v1662_v0, 0.0 }
 0x204   : > { %v3294_v20 = vpop.f32.mrf.mxu0  ;;  %v1618_v62 = vadd.f32 %v1617_v48, %v1616_v54  ;;  %v2687_v36 = vsel %vm1129_vm2, %v2629_v26, 0.0 }
 0x205   : > { %1558 = vst.msk [vmem:[%s4093_s11 + $0x70] sm:$0xf] %vm1529_vm5, %v3190_v22  ;;  %v1719_v25 = vsel %vm1129_vm2, %v1660_v37, 0.0  ;;  %v3193_v33 = vpack.c.bf16 %v3294_v20, %v3294_v20  ;;  %v1663_v17 = vmul.f32 %v3294_v20, %v3294_v20  ;;  %v1623_v47 = vsel %vm1129_vm2, %v3294_v20, 0.0 }
 0x206   : > { %v1389_v52 = vpop.f32.mrf.mxu0  ;;  %v1720_v11 = vadd.f32 %v1719_v25, %v1718_v10  ;;  %v2688_v5 = vadd.f32 %v2687_v36, %v2686_v38 }
 0x207   : > { %1561 = vst.msk [vmem:[%s4093_s11 + $0x7c] sm:$0xf] %vm1529_vm5, %v3193_v33  ;;  %v3191_v7 = vpack.c.bf16 %v1389_v52, %v1389_v52  ;;  %v1619_v34 = vsel %vm1129_vm2, %v1389_v52, 0.0  ;;  %v1661_v39 = vmul.f32 %v1389_v52, %v1389_v52  ;;  %v1725_v12 = vsel %vm1129_vm2, %v1663_v17, 0.0 }
 0x208   : > { %v1620_v35 = vadd.f32 %v1619_v34, %v1618_v62 }
 0x209   : > { %1559 = vst.msk [vmem:[%s4093_s11 + $0x74] sm:$0xf] %vm1529_vm5, %v3191_v7  ;;  %v1721_v41 = vsel %vm1129_vm2, %v1661_v39, 0.0 }
 0x20a   : > { %v1622_v58 = vadd.f32 %v1621_v61, %v1620_v35  ;;  %v1722_v31 = vadd.f32 %v1721_v41, %v1720_v11 }
 0x20c   : > { %v1724_v23 = vadd.f32 %v1723_v50, %v1722_v31  ;;  %v1624_v32 = vadd.f32 %v1623_v47, %v1622_v58 }
 0x20e   : > { %v3327_v27 = vpop.f32.mrf.mxu1  ;;  %v1726_v40 = vadd.f32 %v1725_v12, %v1724_v23  ;;  %v1625_v2 = vrot.slane %v1624_v32, 4 }
 0x20f   : > { %v3225_v28 = vpack.c.bf16 %v3327_v27, %v3327_v27  ;;  %v2632_v42 = vmul.f32 %v3327_v27, %v3327_v27  ;;  %v2591_v54 = vsel %vm1129_vm2, %v3327_v27, 0.0 }
 0x210   : > { %v2356_v43 = vpop.f32.mrf.mxu1  ;;  %v1727_v16 = vrot.slane %v1726_v40, 4  ;;  %v1626_v56 = vadd.f32 %v1625_v2, %v1624_v32 }
 0x211   : > { %3155 = vst.msk [vmem:[%s4093_s11 + $0xf8] sm:$0xf] %vm1529_vm5, %v3225_v28  ;;  %v3223_v44 = vpack.c.bf16 %v2356_v43, %v2356_v43  ;;  %v2587_v45 = vsel %vm1129_vm2, %v2356_v43, 0.0  ;;  %v2630_v46 = vmul.f32 %v2356_v43, %v2356_v43  ;;  %v2693_v18 = vsel %vm1129_vm2, %v2632_v42, 0.0 }
 0x212   : > { %v3328_v55 = vpop.f32.mrf.mxu1  ;;  %v2588_v53 = vadd.f32 %v2587_v45, %v2586_v30  ;;  %v1728_v49 = vadd.f32 %v1727_v16, %v1726_v40  ;;  %v1627_v62 = vrot.slane %v1626_v56, 2 }
 0x213   : > { %3153 = vst.msk [vmem:[%s4093_s11 + $0xf0] sm:$0xf] %vm1529_vm5, %v3223_v44  ;;  %v2689_v1 = vsel %vm1129_vm2, %v2630_v46, 0.0  ;;  %v3226_v8 = vpack.c.bf16 %v3328_v55, %v3328_v55  ;;  %v2633_v20 = vmul.f32 %v3328_v55, %v3328_v55  ;;  %v2593_v3 = vsel %vm1129_vm2, %v3328_v55, 0.0 }
 0x214   : > { %v2359_v6 = vpop.f32.mrf.mxu1  ;;  %v2690_v51 = vadd.f32 %v2689_v1, %v2688_v5  ;;  %v1729_v7 = vrot.slane %v1728_v49, 2  ;;  %v1628_v60 = vadd.f32 %v1627_v62, %v1626_v56 }
 0x215   : > { %3156 = vst.msk [vmem:[%s4093_s11 + $0xfc] sm:$0xf] %vm1529_vm5, %v3226_v8  ;;  %v3224_v22 = vpack.c.bf16 %v2359_v6, %v2359_v6  ;;  %v2589_v48 = vsel %vm1129_vm2, %v2359_v6, 0.0  ;;  %v2631_v37 = vmul.f32 %v2359_v6, %v2359_v6  ;;  %v2695_v0 = vsel %vm1129_vm2, %v2633_v20, 0.0 }
 0x216   : > { %v2590_v13 = vadd.f32 %v2589_v48, %v2588_v53  ;;  %v1730_v35 = vadd.f32 %v1729_v7, %v1728_v49  ;;  %v1629_v41 = vrot.slane %v1628_v60, 1 }
 0x217   : > { %3154 = vst.msk [vmem:[%s4093_s11 + $0xf4] sm:$0xf] %vm1529_vm5, %v3224_v22  ;;  %v2691_v57 = vsel %vm1129_vm2, %v2631_v37, 0.0 }
 0x218   : > { %v2592_v25 = vadd.f32 %v2591_v54, %v2590_v13  ;;  %v2692_v33 = vadd.f32 %v2691_v57, %v2690_v51  ;;  %v1731_v58 = vrot.slane %v1730_v35, 1  ;;  %v1630_v50 = vadd.f32 %v1629_v41, %v1628_v60 }
 0x21a   : > { %v2594_v10 = vadd.f32 %v2593_v3, %v2592_v25  ;;  %v2694_v52 = vadd.f32 %v2693_v18, %v2692_v33  ;;  %v1732_v23 = vadd.f32 %v1731_v58, %v1730_v35 }
 0x21c   : > { %v2595_v34 = vrot.slane %v2594_v10, 4  ;;  %v2696_v39 = vadd.f32 %v2695_v0, %v2694_v52 }
 0x21e   : > { %v2596_v24 = vadd.f32 %v2595_v34, %v2594_v10  ;;  %v2697_v11 = vrot.slane %v2696_v39, 4 }
 0x220   : > { %v2597_v59 = vrot.slane %v2596_v24, 2  ;;  %v2698_v61 = vadd.f32 %v2697_v11, %v2696_v39 }
 0x222   : > { %v2598_v14 = vadd.f32 %v2597_v59, %v2596_v24  ;;  %v2699_v15 = vrot.slane %v2698_v61, 2 }
 0x224   : > { %v2599_v31 = vrot.slane %v2598_v14, 1  ;;  %v2700_v19 = vadd.f32 %v2699_v15, %v2698_v61 }
 0x226   : > { %v2600_v17 = vadd.f32 %v2599_v31, %v2598_v14  ;;  %v2701_v21 = vrot.slane %v2700_v19, 1 }
 0x228   : > { %v2601_v4 = vadd.f32 %v2600_v17, %v1630_v50  ;;  %v2702_v47 = vadd.f32 %v2701_v21, %v2700_v19 }
 0x22a   : > { %v2703_v9 = vadd.f32 %v2702_v47, %v1732_v23 }
 0x22c   : > { %v2705_v32 = vsel %vm2704_vm6, %v2601_v4, %v2703_v9 }
 0x22d   : > { %2707 = vst.msk [vmem:[%s254_s24] sm:$0x3] %vm2706_vm7, %v2705_v32 }
 0x22e PF: > { %s14_s16 = sadd.s32 1, %s3477_s16   ;;  %s4447_s12 = smov %s3469_s14 }
 0x22f   : > { %p11_p7 = scmp.ge.s32.totalorder %s14_s16, 6   ;;  %s4448_s13 = smov %s3473_s15 }
 0x230   : > { %s4449_s14 = smov %s4452_s17  ;;  %s4450_s15 = smov %s4456_s18 }
 0x231   :  { %13 = sbr.rel (!%p11_p7) target bundleno = 3 (0x3), region = 75 }

</bundles_post_ra>
